<compile_context>
chip_gen: v7x
topology: tpu7x:2x2x1
jax: 0.10.0
libtpu: 0.0.40
codegen_flags: <defaults>
</compile_context>

<pallas_src>
import functools

import jax
import jax.numpy as jnp
import numpy as np
from jax.experimental import pallas as pl
from jax.experimental.pallas import tpu as pltpu


def _temporal_modulation_kernel(x_ref, w_ref, o_ref, *, downsample_scale):
    """One (batch element, spatial tile) per grid step.

    x_ref : (T, C_in, s_blk)        activations, S = H*W on the lane axis
    w_ref : (3, planes, C_in)       dense block-diagonal per-tap weight matrices
    o_ref : (T_out, planes, s_blk)  fused conv + temporal-max-pooled output
    """
    T = x_ref.shape[0]
    ds = downsample_scale

    # Tiny constant weights: loaded once from a constant-index VMEM block.
    w0 = w_ref[0].astype(jnp.float32)   # tap applied to x[t-1]
    w1 = w_ref[1].astype(jnp.float32)   # tap applied to x[t]
    w2 = w_ref[2].astype(jnp.float32)   # tap applied to x[t+1]

    def load(t):
        return x_ref[t].astype(jnp.float32)            # (C_in, s_blk)

    def mm(w, xv):
        return jnp.dot(w, xv, preferred_element_type=jnp.float32,
                       precision=jax.lax.Precision.HIGHEST)

    # Streaming over T (static unroll: T is small here).  Each timestep is read
    # from VMEM exactly once; only the running window max is kept in vregs.
    x_prev = None
    x_cur = load(0)
    x_next = load(1) if T > 1 else None
    acc = None
    for t in range(T):
        h = mm(w1, x_cur)
        if x_prev is not None:                          # zero temporal padding
            h = h + mm(w0, x_prev)
        if x_next is not None:
            h = h + mm(w2, x_next)
        acc = h if (t % ds == 0) else jnp.maximum(acc, h)
        if (t + 1) % ds == 0 or t == T - 1:             # window done (ceil_mode)
            o_ref[t // ds] = acc.astype(o_ref.dtype)    # lane-dense slab store
        x_prev, x_cur = x_cur, x_next
        x_next = load(t + 2) if t + 2 < T else None


def temporal_modulation_forward(x, weight, *, downsample_scale=8, groups=32):
    """x: (N, inplanes, T, H, W); weight: (planes, inplanes//groups, 3, 1, 1)."""
    N, C_in, T, H, W = x.shape
    planes, cin_g = weight.shape[0], weight.shape[1]
    assert C_in % groups == 0 and planes % groups == 0
    assert cin_g == C_in // groups
    pl_g = planes // groups
    S = H * W
    T_out = -(-T // downsample_scale)                   # ceil(T / ds)

    # Grouped (3,1,1) conv -> three dense block-diagonal (planes, C_in) tap
    # matrices: W_k[co, ci] = weight[co, ci % cin_g, k] iff co, ci share a group.
    w = weight.reshape(planes, cin_g, 3).astype(jnp.float32)
    co = jnp.arange(planes)
    ci = jnp.arange(C_in)
    same_group = (co[:, None] // pl_g) == (ci[None, :] // cin_g)
    w_dense = jnp.where(same_group[:, :, None], w[:, ci % cin_g, :], 0.0)
    w_taps = jnp.transpose(w_dense, (2, 0, 1))          # (3, planes, C_in)

    # Layout plumbing only (no dtype copy): flatten H*W -> S and put T leading
    # so every kernel access is a leading-index (channels, S) tile.
    xs = jnp.transpose(x.reshape(N, C_in, T, S), (0, 2, 1, 3))   # (N, T, C_in, S)

    # Spatial tiling: keep the lane axis a multiple of 128 when possible so the
    # output stores stay unmasked, and cap the tile to bound VMEM (v7x: 64 MiB).
    if S % 128 == 0 and S > 512:
        s_blk = 512
        while S % s_blk:
            s_blk -= 128
    else:
        s_blk = S

    kernel = functools.partial(_temporal_modulation_kernel,
                               downsample_scale=downsample_scale)
    out = pl.pallas_call(
        kernel,
        out_shape=jax.ShapeDtypeStruct((N, T_out, planes, S), x.dtype),
        grid=(N, S // s_blk),
        in_specs=[
            pl.BlockSpec((None, T, C_in, s_blk), lambda n, s: (n, 0, 0, s)),
            pl.BlockSpec((3, planes, C_in), lambda n, s: (0, 0, 0)),
        ],
        out_specs=pl.BlockSpec((None, T_out, planes, s_blk),
                               lambda n, s: (n, 0, 0, s)),
        compiler_params=pltpu.CompilerParams(
            dimension_semantics=("parallel", "parallel")),
    )(xs, w_taps)                                        # (N, T_out, planes, S)

    return jnp.transpose(out, (0, 2, 1, 3)).reshape(N, planes, T_out, H, W)


def _reference(x, weight, downsample_scale, groups):
    """Pure-JAX (exact f32, elementwise) reference mirroring the PyTorch forward."""
    N, C_in, T, H, W = x.shape
    planes, cin_g = weight.shape[0], weight.shape[1]
    pl_g = planes // groups
    w = weight.reshape(planes, cin_g, 3)
    xp = jnp.pad(x.astype(jnp.float32),
                 ((0, 0), (0, 0), (1, 1), (0, 0), (0, 0)))
    chans = []
    for co in range(planes):
        g = co // pl_g
        acc = jnp.zeros((N, T, H, W), jnp.float32)
        for i in range(cin_g):
            ci = g * cin_g + i
            for k in range(3):
                acc = acc + w[co, i, k] * xp[:, ci, k:k + T]
        chans.append(acc)
    conv = jnp.stack(chans, axis=1)                      # (N, planes, T, H, W)
    ds = downsample_scale
    T_out = -(-T // ds)
    pools = [conv[:, :, wi * ds:min((wi + 1) * ds, T)].max(axis=2, keepdims=True)
             for wi in range(T_out)]
    return jnp.concatenate(pools, axis=2)


if __name__ == "__main__":
    # Small shapes consistent with the module; S = H*W = 128 gives lane-dense
    # stores, and T=12 with ds=8 exercises the ceil_mode partial last window.
    N, inplanes, planes = 2, 32, 16
    T, H, W = 12, 8, 16
    groups, downsample_scale = 8, 8

    key = jax.random.PRNGKey(0)
    kx, kw = jax.random.split(key)
    x = jax.random.normal(kx, (N, inplanes, T, H, W), jnp.float32)
    weight = 0.3 * jax.random.normal(
        kw, (planes, inplanes // groups, 3, 1, 1), jnp.float32)

    out = jax.block_until_ready(
        temporal_modulation_forward(x, weight,
                                    downsample_scale=downsample_scale,
                                    groups=groups))

    ref = _reference(x, weight, downsample_scale, groups)
    expected_shape = (N, planes, -(-T // downsample_scale), H, W)
    assert out.shape == expected_shape and ref.shape == expected_shape
    np.testing.assert_allclose(np.asarray(out), np.asarray(ref),
                               rtol=1e-4, atol=1e-5)
    print("KERNEL_OK")
</pallas_src>

<mosaic_0001>
module attributes {stable_mosaic.version = 11 : i64} {
  func.func @_temporal_modulation_kernel(%arg0: i32, %arg1: i32, %arg2: memref<1x12x32x128xf32, #tpu.memory_space<vmem>>, %arg3: memref<3x16x32xf32, #tpu.memory_space<vmem>>, %arg4: memref<1x2x16x128xf32, #tpu.memory_space<vmem>>) attributes {dimension_semantics = [#tpu.dimension_semantics<parallel>, #tpu.dimension_semantics<parallel>], iteration_bounds = array<i64: 2, 1>, scalar_prefetch = 0 : i64, scratch_operands = 0 : i64, tpu.core_type = #tpu.core_type<tc>, window_params = [{transform_indices = @transform_0, window_bounds = array<i64: 1, 12, 32, 128>}, {pipeline_mode = #tpu.pipeline_mode<synchronous>, transform_indices = @transform_1, window_bounds = array<i64: 3, 16, 32>}, {transform_indices = @transform_2, window_bounds = array<i64: 1, 2, 16, 128>}]} {
    %c0 = arith.constant 0 : index
    %c0_0 = arith.constant 0 : index
    %c0_1 = arith.constant 0 : index
    %0 = vector.load %arg3[%c0, %c0_0, %c0_1] : memref<3x16x32xf32, #tpu.memory_space<vmem>>, vector<1x16x32xf32>
    %1 = vector.shape_cast %0 : vector<1x16x32xf32> to vector<16x32xf32>
    %c1 = arith.constant 1 : index
    %c0_2 = arith.constant 0 : index
    %c0_3 = arith.constant 0 : index
    %2 = vector.load %arg3[%c1, %c0_2, %c0_3] : memref<3x16x32xf32, #tpu.memory_space<vmem>>, vector<1x16x32xf32>
    %3 = vector.shape_cast %2 : vector<1x16x32xf32> to vector<16x32xf32>
    %c2 = arith.constant 2 : index
    %c0_4 = arith.constant 0 : index
    %c0_5 = arith.constant 0 : index
    %4 = vector.load %arg3[%c2, %c0_4, %c0_5] : memref<3x16x32xf32, #tpu.memory_space<vmem>>, vector<1x16x32xf32>
    %5 = vector.shape_cast %4 : vector<1x16x32xf32> to vector<16x32xf32>
    %c0_6 = arith.constant 0 : index
    %c0_7 = arith.constant 0 : index
    %c0_8 = arith.constant 0 : index
    %c0_9 = arith.constant 0 : index
    %6 = vector.load %arg2[%c0_6, %c0_7, %c0_8, %c0_9] : memref<1x12x32x128xf32, #tpu.memory_space<vmem>>, vector<1x1x32x128xf32>
    %7 = vector.shape_cast %6 : vector<1x1x32x128xf32> to vector<32x128xf32>
    %c0_10 = arith.constant 0 : index
    %c1_11 = arith.constant 1 : index
    %c0_12 = arith.constant 0 : index
    %c0_13 = arith.constant 0 : index
    %8 = vector.load %arg2[%c0_10, %c1_11, %c0_12, %c0_13] : memref<1x12x32x128xf32, #tpu.memory_space<vmem>>, vector<1x1x32x128xf32>
    %9 = vector.shape_cast %8 : vector<1x1x32x128xf32> to vector<32x128xf32>
    %cst = arith.constant dense<0.000000e+00> : vector<16x128xf32>
    %10 = tpu.matmul %3, %7, %cst {dimension_numbers = #tpu.dot_dimension_numbers<[1], [0], [0], [1], [0, 0, 1, 1], [], []>, precision = #tpu.contract_precision<fp32>} : vector<16x32xf32>, vector<32x128xf32>, vector<16x128xf32> -> vector<16x128xf32>
    %cst_14 = arith.constant dense<0.000000e+00> : vector<16x128xf32>
    %11 = tpu.matmul %5, %9, %cst_14 {dimension_numbers = #tpu.dot_dimension_numbers<[1], [0], [0], [1], [0, 0, 1, 1], [], []>, precision = #tpu.contract_precision<fp32>} : vector<16x32xf32>, vector<32x128xf32>, vector<16x128xf32> -> vector<16x128xf32>
    %12 = arith.addf %10, %11 : vector<16x128xf32>
    %c0_15 = arith.constant 0 : index
    %c2_16 = arith.constant 2 : index
    %c0_17 = arith.constant 0 : index
    %c0_18 = arith.constant 0 : index
    %13 = vector.load %arg2[%c0_15, %c2_16, %c0_17, %c0_18] : memref<1x12x32x128xf32, #tpu.memory_space<vmem>>, vector<1x1x32x128xf32>
    %14 = vector.shape_cast %13 : vector<1x1x32x128xf32> to vector<32x128xf32>
    %cst_19 = arith.constant dense<0.000000e+00> : vector<16x128xf32>
    %15 = tpu.matmul %3, %9, %cst_19 {dimension_numbers = #tpu.dot_dimension_numbers<[1], [0], [0], [1], [0, 0, 1, 1], [], []>, precision = #tpu.contract_precision<fp32>} : vector<16x32xf32>, vector<32x128xf32>, vector<16x128xf32> -> vector<16x128xf32>
    %cst_20 = arith.constant dense<0.000000e+00> : vector<16x128xf32>
    %16 = tpu.matmul %1, %7, %cst_20 {dimension_numbers = #tpu.dot_dimension_numbers<[1], [0], [0], [1], [0, 0, 1, 1], [], []>, precision = #tpu.contract_precision<fp32>} : vector<16x32xf32>, vector<32x128xf32>, vector<16x128xf32> -> vector<16x128xf32>
    %17 = arith.addf %15, %16 : vector<16x128xf32>
    %cst_21 = arith.constant dense<0.000000e+00> : vector<16x128xf32>
    %18 = tpu.matmul %5, %14, %cst_21 {dimension_numbers = #tpu.dot_dimension_numbers<[1], [0], [0], [1], [0, 0, 1, 1], [], []>, precision = #tpu.contract_precision<fp32>} : vector<16x32xf32>, vector<32x128xf32>, vector<16x128xf32> -> vector<16x128xf32>
    %19 = arith.addf %17, %18 : vector<16x128xf32>
    %20 = arith.maximumf %12, %19 : vector<16x128xf32>
    %c0_22 = arith.constant 0 : index
    %c3 = arith.constant 3 : index
    %c0_23 = arith.constant 0 : index
    %c0_24 = arith.constant 0 : index
    %21 = vector.load %arg2[%c0_22, %c3, %c0_23, %c0_24] : memref<1x12x32x128xf32, #tpu.memory_space<vmem>>, vector<1x1x32x128xf32>
    %22 = vector.shape_cast %21 : vector<1x1x32x128xf32> to vector<32x128xf32>
    %cst_25 = arith.constant dense<0.000000e+00> : vector<16x128xf32>
    %23 = tpu.matmul %3, %14, %cst_25 {dimension_numbers = #tpu.dot_dimension_numbers<[1], [0], [0], [1], [0, 0, 1, 1], [], []>, precision = #tpu.contract_precision<fp32>} : vector<16x32xf32>, vector<32x128xf32>, vector<16x128xf32> -> vector<16x128xf32>
    %cst_26 = arith.constant dense<0.000000e+00> : vector<16x128xf32>
    %24 = tpu.matmul %1, %9, %cst_26 {dimension_numbers = #tpu.dot_dimension_numbers<[1], [0], [0], [1], [0, 0, 1, 1], [], []>, precision = #tpu.contract_precision<fp32>} : vector<16x32xf32>, vector<32x128xf32>, vector<16x128xf32> -> vector<16x128xf32>
    %25 = arith.addf %23, %24 : vector<16x128xf32>
    %cst_27 = arith.constant dense<0.000000e+00> : vector<16x128xf32>
    %26 = tpu.matmul %5, %22, %cst_27 {dimension_numbers = #tpu.dot_dimension_numbers<[1], [0], [0], [1], [0, 0, 1, 1], [], []>, precision = #tpu.contract_precision<fp32>} : vector<16x32xf32>, vector<32x128xf32>, vector<16x128xf32> -> vector<16x128xf32>
    %27 = arith.addf %25, %26 : vector<16x128xf32>
    %28 = arith.maximumf %20, %27 : vector<16x128xf32>
    %c0_28 = arith.constant 0 : index
    %c4 = arith.constant 4 : index
    %c0_29 = arith.constant 0 : index
    %c0_30 = arith.constant 0 : index
    %29 = vector.load %arg2[%c0_28, %c4, %c0_29, %c0_30] : memref<1x12x32x128xf32, #tpu.memory_space<vmem>>, vector<1x1x32x128xf32>
    %30 = vector.shape_cast %29 : vector<1x1x32x128xf32> to vector<32x128xf32>
    %cst_31 = arith.constant dense<0.000000e+00> : vector<16x128xf32>
    %31 = tpu.matmul %3, %22, %cst_31 {dimension_numbers = #tpu.dot_dimension_numbers<[1], [0], [0], [1], [0, 0, 1, 1], [], []>, precision = #tpu.contract_precision<fp32>} : vector<16x32xf32>, vector<32x128xf32>, vector<16x128xf32> -> vector<16x128xf32>
    %cst_32 = arith.constant dense<0.000000e+00> : vector<16x128xf32>
    %32 = tpu.matmul %1, %14, %cst_32 {dimension_numbers = #tpu.dot_dimension_numbers<[1], [0], [0], [1], [0, 0, 1, 1], [], []>, precision = #tpu.contract_precision<fp32>} : vector<16x32xf32>, vector<32x128xf32>, vector<16x128xf32> -> vector<16x128xf32>
    %33 = arith.addf %31, %32 : vector<16x128xf32>
    %cst_33 = arith.constant dense<0.000000e+00> : vector<16x128xf32>
    %34 = tpu.matmul %5, %30, %cst_33 {dimension_numbers = #tpu.dot_dimension_numbers<[1], [0], [0], [1], [0, 0, 1, 1], [], []>, precision = #tpu.contract_precision<fp32>} : vector<16x32xf32>, vector<32x128xf32>, vector<16x128xf32> -> vector<16x128xf32>
    %35 = arith.addf %33, %34 : vector<16x128xf32>
    %36 = arith.maximumf %28, %35 : vector<16x128xf32>
    %c0_34 = arith.constant 0 : index
    %c5 = arith.constant 5 : index
    %c0_35 = arith.constant 0 : index
    %c0_36 = arith.constant 0 : index
    %37 = vector.load %arg2[%c0_34, %c5, %c0_35, %c0_36] : memref<1x12x32x128xf32, #tpu.memory_space<vmem>>, vector<1x1x32x128xf32>
    %38 = vector.shape_cast %37 : vector<1x1x32x128xf32> to vector<32x128xf32>
    %cst_37 = arith.constant dense<0.000000e+00> : vector<16x128xf32>
    %39 = tpu.matmul %3, %30, %cst_37 {dimension_numbers = #tpu.dot_dimension_numbers<[1], [0], [0], [1], [0, 0, 1, 1], [], []>, precision = #tpu.contract_precision<fp32>} : vector<16x32xf32>, vector<32x128xf32>, vector<16x128xf32> -> vector<16x128xf32>
    %cst_38 = arith.constant dense<0.000000e+00> : vector<16x128xf32>
    %40 = tpu.matmul %1, %22, %cst_38 {dimension_numbers = #tpu.dot_dimension_numbers<[1], [0], [0], [1], [0, 0, 1, 1], [], []>, precision = #tpu.contract_precision<fp32>} : vector<16x32xf32>, vector<32x128xf32>, vector<16x128xf32> -> vector<16x128xf32>
    %41 = arith.addf %39, %40 : vector<16x128xf32>
    %cst_39 = arith.constant dense<0.000000e+00> : vector<16x128xf32>
    %42 = tpu.matmul %5, %38, %cst_39 {dimension_numbers = #tpu.dot_dimension_numbers<[1], [0], [0], [1], [0, 0, 1, 1], [], []>, precision = #tpu.contract_precision<fp32>} : vector<16x32xf32>, vector<32x128xf32>, vector<16x128xf32> -> vector<16x128xf32>
    %43 = arith.addf %41, %42 : vector<16x128xf32>
    %44 = arith.maximumf %36, %43 : vector<16x128xf32>
    %c0_40 = arith.constant 0 : index
    %c6 = arith.constant 6 : index
    %c0_41 = arith.constant 0 : index
    %c0_42 = arith.constant 0 : index
    %45 = vector.load %arg2[%c0_40, %c6, %c0_41, %c0_42] : memref<1x12x32x128xf32, #tpu.memory_space<vmem>>, vector<1x1x32x128xf32>
    %46 = vector.shape_cast %45 : vector<1x1x32x128xf32> to vector<32x128xf32>
    %cst_43 = arith.constant dense<0.000000e+00> : vector<16x128xf32>
    %47 = tpu.matmul %3, %38, %cst_43 {dimension_numbers = #tpu.dot_dimension_numbers<[1], [0], [0], [1], [0, 0, 1, 1], [], []>, precision = #tpu.contract_precision<fp32>} : vector<16x32xf32>, vector<32x128xf32>, vector<16x128xf32> -> vector<16x128xf32>
    %cst_44 = arith.constant dense<0.000000e+00> : vector<16x128xf32>
    %48 = tpu.matmul %1, %30, %cst_44 {dimension_numbers = #tpu.dot_dimension_numbers<[1], [0], [0], [1], [0, 0, 1, 1], [], []>, precision = #tpu.contract_precision<fp32>} : vector<16x32xf32>, vector<32x128xf32>, vector<16x128xf32> -> vector<16x128xf32>
    %49 = arith.addf %47, %48 : vector<16x128xf32>
    %cst_45 = arith.constant dense<0.000000e+00> : vector<16x128xf32>
    %50 = tpu.matmul %5, %46, %cst_45 {dimension_numbers = #tpu.dot_dimension_numbers<[1], [0], [0], [1], [0, 0, 1, 1], [], []>, precision = #tpu.contract_precision<fp32>} : vector<16x32xf32>, vector<32x128xf32>, vector<16x128xf32> -> vector<16x128xf32>
    %51 = arith.addf %49, %50 : vector<16x128xf32>
    %52 = arith.maximumf %44, %51 : vector<16x128xf32>
    %c0_46 = arith.constant 0 : index
    %c7 = arith.constant 7 : index
    %c0_47 = arith.constant 0 : index
    %c0_48 = arith.constant 0 : index
    %53 = vector.load %arg2[%c0_46, %c7, %c0_47, %c0_48] : memref<1x12x32x128xf32, #tpu.memory_space<vmem>>, vector<1x1x32x128xf32>
    %54 = vector.shape_cast %53 : vector<1x1x32x128xf32> to vector<32x128xf32>
    %cst_49 = arith.constant dense<0.000000e+00> : vector<16x128xf32>
    %55 = tpu.matmul %3, %46, %cst_49 {dimension_numbers = #tpu.dot_dimension_numbers<[1], [0], [0], [1], [0, 0, 1, 1], [], []>, precision = #tpu.contract_precision<fp32>} : vector<16x32xf32>, vector<32x128xf32>, vector<16x128xf32> -> vector<16x128xf32>
    %cst_50 = arith.constant dense<0.000000e+00> : vector<16x128xf32>
    %56 = tpu.matmul %1, %38, %cst_50 {dimension_numbers = #tpu.dot_dimension_numbers<[1], [0], [0], [1], [0, 0, 1, 1], [], []>, precision = #tpu.contract_precision<fp32>} : vector<16x32xf32>, vector<32x128xf32>, vector<16x128xf32> -> vector<16x128xf32>
    %57 = arith.addf %55, %56 : vector<16x128xf32>
    %cst_51 = arith.constant dense<0.000000e+00> : vector<16x128xf32>
    %58 = tpu.matmul %5, %54, %cst_51 {dimension_numbers = #tpu.dot_dimension_numbers<[1], [0], [0], [1], [0, 0, 1, 1], [], []>, precision = #tpu.contract_precision<fp32>} : vector<16x32xf32>, vector<32x128xf32>, vector<16x128xf32> -> vector<16x128xf32>
    %59 = arith.addf %57, %58 : vector<16x128xf32>
    %60 = arith.maximumf %52, %59 : vector<16x128xf32>
    %c0_52 = arith.constant 0 : index
    %c8 = arith.constant 8 : index
    %c0_53 = arith.constant 0 : index
    %c0_54 = arith.constant 0 : index
    %61 = vector.load %arg2[%c0_52, %c8, %c0_53, %c0_54] : memref<1x12x32x128xf32, #tpu.memory_space<vmem>>, vector<1x1x32x128xf32>
    %62 = vector.shape_cast %61 : vector<1x1x32x128xf32> to vector<32x128xf32>
    %cst_55 = arith.constant dense<0.000000e+00> : vector<16x128xf32>
    %63 = tpu.matmul %3, %54, %cst_55 {dimension_numbers = #tpu.dot_dimension_numbers<[1], [0], [0], [1], [0, 0, 1, 1], [], []>, precision = #tpu.contract_precision<fp32>} : vector<16x32xf32>, vector<32x128xf32>, vector<16x128xf32> -> vector<16x128xf32>
    %cst_56 = arith.constant dense<0.000000e+00> : vector<16x128xf32>
    %64 = tpu.matmul %1, %46, %cst_56 {dimension_numbers = #tpu.dot_dimension_numbers<[1], [0], [0], [1], [0, 0, 1, 1], [], []>, precision = #tpu.contract_precision<fp32>} : vector<16x32xf32>, vector<32x128xf32>, vector<16x128xf32> -> vector<16x128xf32>
    %65 = arith.addf %63, %64 : vector<16x128xf32>
    %cst_57 = arith.constant dense<0.000000e+00> : vector<16x128xf32>
    %66 = tpu.matmul %5, %62, %cst_57 {dimension_numbers = #tpu.dot_dimension_numbers<[1], [0], [0], [1], [0, 0, 1, 1], [], []>, precision = #tpu.contract_precision<fp32>} : vector<16x32xf32>, vector<32x128xf32>, vector<16x128xf32> -> vector<16x128xf32>
    %67 = arith.addf %65, %66 : vector<16x128xf32>
    %68 = arith.maximumf %60, %67 : vector<16x128xf32>
    %c0_58 = arith.constant 0 : index
    %c0_59 = arith.constant 0 : index
    %c0_60 = arith.constant 0 : index
    %c0_61 = arith.constant 0 : index
    %69 = vector.load %arg4[%c0_58, %c0_59, %c0_60, %c0_61] : memref<1x2x16x128xf32, #tpu.memory_space<vmem>>, vector<1x1x16x128xf32>
    %70 = vector.shape_cast %69 : vector<1x1x16x128xf32> to vector<16x128xf32>
    %71 = vector.shape_cast %68 : vector<16x128xf32> to vector<1x1x16x128xf32>
    tpu.vector_store %arg4[%c0_58, %c0_59, %c0_60, %c0_61], %71 {strides = array<i32>} : memref<1x2x16x128xf32, #tpu.memory_space<vmem>>, vector<1x1x16x128xf32>,
    %c0_62 = arith.constant 0 : index
    %c9 = arith.constant 9 : index
    %c0_63 = arith.constant 0 : index
    %c0_64 = arith.constant 0 : index
    %72 = vector.load %arg2[%c0_62, %c9, %c0_63, %c0_64] : memref<1x12x32x128xf32, #tpu.memory_space<vmem>>, vector<1x1x32x128xf32>
    %73 = vector.shape_cast %72 : vector<1x1x32x128xf32> to vector<32x128xf32>
    %cst_65 = arith.constant dense<0.000000e+00> : vector<16x128xf32>
    %74 = tpu.matmul %3, %62, %cst_65 {dimension_numbers = #tpu.dot_dimension_numbers<[1], [0], [0], [1], [0, 0, 1, 1], [], []>, precision = #tpu.contract_precision<fp32>} : vector<16x32xf32>, vector<32x128xf32>, vector<16x128xf32> -> vector<16x128xf32>
    %cst_66 = arith.constant dense<0.000000e+00> : vector<16x128xf32>
    %75 = tpu.matmul %1, %54, %cst_66 {dimension_numbers = #tpu.dot_dimension_numbers<[1], [0], [0], [1], [0, 0, 1, 1], [], []>, precision = #tpu.contract_precision<fp32>} : vector<16x32xf32>, vector<32x128xf32>, vector<16x128xf32> -> vector<16x128xf32>
    %76 = arith.addf %74, %75 : vector<16x128xf32>
    %cst_67 = arith.constant dense<0.000000e+00> : vector<16x128xf32>
    %77 = tpu.matmul %5, %73, %cst_67 {dimension_numbers = #tpu.dot_dimension_numbers<[1], [0], [0], [1], [0, 0, 1, 1], [], []>, precision = #tpu.contract_precision<fp32>} : vector<16x32xf32>, vector<32x128xf32>, vector<16x128xf32> -> vector<16x128xf32>
    %78 = arith.addf %76, %77 : vector<16x128xf32>
    %c0_68 = arith.constant 0 : index
    %c10 = arith.constant 10 : index
    %c0_69 = arith.constant 0 : index
    %c0_70 = arith.constant 0 : index
    %79 = vector.load %arg2[%c0_68, %c10, %c0_69, %c0_70] : memref<1x12x32x128xf32, #tpu.memory_space<vmem>>, vector<1x1x32x128xf32>
    %80 = vector.shape_cast %79 : vector<1x1x32x128xf32> to vector<32x128xf32>
    %cst_71 = arith.constant dense<0.000000e+00> : vector<16x128xf32>
    %81 = tpu.matmul %3, %73, %cst_71 {dimension_numbers = #tpu.dot_dimension_numbers<[1], [0], [0], [1], [0, 0, 1, 1], [], []>, precision = #tpu.contract_precision<fp32>} : vector<16x32xf32>, vector<32x128xf32>, vector<16x128xf32> -> vector<16x128xf32>
    %cst_72 = arith.constant dense<0.000000e+00> : vector<16x128xf32>
    %82 = tpu.matmul %1, %62, %cst_72 {dimension_numbers = #tpu.dot_dimension_numbers<[1], [0], [0], [1], [0, 0, 1, 1], [], []>, precision = #tpu.contract_precision<fp32>} : vector<16x32xf32>, vector<32x128xf32>, vector<16x128xf32> -> vector<16x128xf32>
    %83 = arith.addf %81, %82 : vector<16x128xf32>
    %cst_73 = arith.constant dense<0.000000e+00> : vector<16x128xf32>
    %84 = tpu.matmul %5, %80, %cst_73 {dimension_numbers = #tpu.dot_dimension_numbers<[1], [0], [0], [1], [0, 0, 1, 1], [], []>, precision = #tpu.contract_precision<fp32>} : vector<16x32xf32>, vector<32x128xf32>, vector<16x128xf32> -> vector<16x128xf32>
    %85 = arith.addf %83, %84 : vector<16x128xf32>
    %86 = arith.maximumf %78, %85 : vector<16x128xf32>
    %c0_74 = arith.constant 0 : index
    %c11 = arith.constant 11 : index
    %c0_75 = arith.constant 0 : index
    %c0_76 = arith.constant 0 : index
    %87 = vector.load %arg2[%c0_74, %c11, %c0_75, %c0_76] : memref<1x12x32x128xf32, #tpu.memory_space<vmem>>, vector<1x1x32x128xf32>
    %88 = vector.shape_cast %87 : vector<1x1x32x128xf32> to vector<32x128xf32>
    %cst_77 = arith.constant dense<0.000000e+00> : vector<16x128xf32>
    %89 = tpu.matmul %3, %80, %cst_77 {dimension_numbers = #tpu.dot_dimension_numbers<[1], [0], [0], [1], [0, 0, 1, 1], [], []>, precision = #tpu.contract_precision<fp32>} : vector<16x32xf32>, vector<32x128xf32>, vector<16x128xf32> -> vector<16x128xf32>
    %cst_78 = arith.constant dense<0.000000e+00> : vector<16x128xf32>
    %90 = tpu.matmul %1, %73, %cst_78 {dimension_numbers = #tpu.dot_dimension_numbers<[1], [0], [0], [1], [0, 0, 1, 1], [], []>, precision = #tpu.contract_precision<fp32>} : vector<16x32xf32>, vector<32x128xf32>, vector<16x128xf32> -> vector<16x128xf32>
    %91 = arith.addf %89, %90 : vector<16x128xf32>
    %cst_79 = arith.constant dense<0.000000e+00> : vector<16x128xf32>
    %92 = tpu.matmul %5, %88, %cst_79 {dimension_numbers = #tpu.dot_dimension_numbers<[1], [0], [0], [1], [0, 0, 1, 1], [], []>, precision = #tpu.contract_precision<fp32>} : vector<16x32xf32>, vector<32x128xf32>, vector<16x128xf32> -> vector<16x128xf32>
    %93 = arith.addf %91, %92 : vector<16x128xf32>
    %94 = arith.maximumf %86, %93 : vector<16x128xf32>
    %cst_80 = arith.constant dense<0.000000e+00> : vector<16x128xf32>
    %95 = tpu.matmul %3, %88, %cst_80 {dimension_numbers = #tpu.dot_dimension_numbers<[1], [0], [0], [1], [0, 0, 1, 1], [], []>, precision = #tpu.contract_precision<fp32>} : vector<16x32xf32>, vector<32x128xf32>, vector<16x128xf32> -> vector<16x128xf32>
    %cst_81 = arith.constant dense<0.000000e+00> : vector<16x128xf32>
    %96 = tpu.matmul %1, %80, %cst_81 {dimension_numbers = #tpu.dot_dimension_numbers<[1], [0], [0], [1], [0, 0, 1, 1], [], []>, precision = #tpu.contract_precision<fp32>} : vector<16x32xf32>, vector<32x128xf32>, vector<16x128xf32> -> vector<16x128xf32>
    %97 = arith.addf %95, %96 : vector<16x128xf32>
    %98 = arith.maximumf %94, %97 : vector<16x128xf32>
    %c0_82 = arith.constant 0 : index
    %c1_83 = arith.constant 1 : index
    %c0_84 = arith.constant 0 : index
    %c0_85 = arith.constant 0 : index
    %99 = vector.load %arg4[%c0_82, %c1_83, %c0_84, %c0_85] : memref<1x2x16x128xf32, #tpu.memory_space<vmem>>, vector<1x1x16x128xf32>
    %100 = vector.shape_cast %99 : vector<1x1x16x128xf32> to vector<16x128xf32>
    %101 = vector.shape_cast %98 : vector<16x128xf32> to vector<1x1x16x128xf32>
    tpu.vector_store %arg4[%c0_82, %c1_83, %c0_84, %c0_85], %101 {strides = array<i32>} : memref<1x2x16x128xf32, #tpu.memory_space<vmem>>, vector<1x1x16x128xf32>,
    return
  }
  func.func @transform_0(%arg0: i32, %arg1: i32) -> (i32, i32, i32, i32) {
    %c0_i32 = arith.constant 0 : i32
    %c0_i32_0 = arith.constant 0 : i32
    %c0_i32_1 = arith.constant 0 : i32
    return %arg0, %c0_i32, %c0_i32_0, %arg1 : i32, i32, i32, i32
  }
  func.func @transform_1(%arg0: i32, %arg1: i32) -> (i32, i32, i32) {
    %c0_i32 = arith.constant 0 : i32
    %c0_i32_0 = arith.constant 0 : i32
    %c0_i32_1 = arith.constant 0 : i32
    %c0_i32_2 = arith.constant 0 : i32
    return %c0_i32, %c0_i32_0, %c0_i32_1 : i32, i32, i32
  }
  func.func @transform_2(%arg0: i32, %arg1: i32) -> (i32, i32, i32, i32) {
    %c0_i32 = arith.constant 0 : i32
    %c0_i32_0 = arith.constant 0 : i32
    %c0_i32_1 = arith.constant 0 : i32
    return %arg0, %c0_i32, %c0_i32_0, %arg1 : i32, i32, i32, i32
  }
}

</mosaic_0001>

<bundles_post_ra>
// kernel: tpu_custom_call.1
= control target key start
LH: loop header
LB: loop body
LE: loop exit
PB: predicated region body
PF: predicated region fallthrough
CT: control target
= control target key end

     0   :  { %7 = vsyncpa [#allocation3], 0  ;;  %s26411_s0 = inlined_call_operand.hbm [shape: f32[2,12,32,128], index: 0, kind: input, shape index: {}]   ;;  %s26412_s1 = inlined_call_operand.hbm [shape: f32[3,16,32], index: 1, kind: input, shape index: {}]   ;;  %s26413_s2 = inlined_call_operand.hbm [shape: f32[2,2,16,128], index: 2, kind: output, shape index: {}]  }
   0x1   :  { %9 = vsyncpa [#allocation3 + $0x1], 0 }
   0x2   :  { %10 = vsyncpa [#allocation6], 0 }
   0x3   :  { %11 = vsyncpa [#allocation4], 0 }
   0x4   :  { %13 = vsyncpa [#allocation4 + $0x1], 0  ;;  %s24180_s9 = smov 0   ;;  %s24182_s10 = smov 0  }
   0x5   :  { %s24184_s11 = smov 0   ;;  %s24186_s12 = smov 0  }
   0x6   :  { %s24188_s13 = smov 0   ;;  %s24190_s14 = smov 0  }
   0x7 LB: > { %s18387_s15 = sadd.s32 4294967295, %s24156_s14   ;;  %s18388_s16 = sadd.s32 4294967294, %s24156_s14   ;;  %s24156_s14 = sphi %s24190_s14, %s19_s14   ;;  %s24152_s13 = sphi %s24188_s13, %s26436_s13   ;;  %s24148_s12 = sphi %s24186_s12, %s26435_s12   ;;  %s24144_s11 = sphi %s24184_s11, %s26434_s11   ;;  %s24140_s10 = sphi %s24182_s10, %s26433_s10   ;;  %s24136_s9 = sphi %s24180_s9, %s26432_s9  }
   0x8   : > { %p53_p0 = scmp.ne.s32.totalorder %s24140_s10, %s24136_s9  ;;  %p24214_p1 = scmp.eq.s32.totalorder %s18387_s15, 0 }
   0x9   : > { %p24218_p2 = scmp.eq.s32.totalorder %s18387_s15, 1  ;;  %p106_p3 = scmp.eq.s32.totalorder %s18388_s16, 1 }
   0xa   : > { %s26418_s17 = scalar_select %p24214_p1, 1, 0 }
   0xb   : > { %s26419_s18 = scalar_select %p24218_p2, 1, 0 }
   0xc   : > { %p24224_p4 = por %p24214_p1, %p53_p0  ;;  %p18389_p5 = scmp.ge.s32.totalorder %s24156_s14, 1 }
   0xd   : > { %p24229_p6 = por %p106_p3, %p53_p0  ;;  %p113_p7 = scmp.lt.s32.totalorder %s24156_s14, 3 }
   0xe   : > { %s26420_s19 = scalar_select %p24224_p4, 1, 0 }
   0xf   : > { %s26421_s20 = scalar_select %p24229_p6, 1, 0 }
  0x10   : > { %p24234_p8 = pnand %p18389_p5, %p113_p7  ;;  %s24158_s22 = smov [#allocation5]  }
  0x11   : > { %s125_s23 = sshll.u32 %s24158_s22, 4  ;;  %s31_s25 = sadd.s32 1, %s24152_s13  ;;  %s126_s23 = int_to_ptr.vmem [resolvable:$true] %s125_s23 }
  0x12   : > { %s26422_s21 = scalar_select %p24234_p8, 1, 0 }
  0x13   : > { %p23943_p9 = pneg %p24234_p8  ;;  %s24012_s28 = scalar_lea.hbm %s26412_s1, 768 }
  0x14   : > { %p24013_p12 = scmp.ne.s32.totalorder %s26412_s1, %s24012_s28  ;;  %p24019_p5 = scmp.lt.u32.totalorder %s24012_s28, %s26412_s1 }
  0x15   : > { %p24243_p11 = pnand %p23943_p9, %p24214_p1 }
  0x17   : > { %p24014_p13 = pneg %p24243_p11 }
  0x19   : > { %p24015_p0 = pnand %p24014_p13, %p24013_p12 }
  0x1b   : > { %p24016_p3 = pneg %p24015_p0 }
  0x1d   : > { %p24021_p7 = pnand %p24019_p5, %p24016_p3 }
  0x1f   : > { %24024 = shalt.err (!%p24021_p7)
}
  0x20   : > { %s24025_s5 = scalar_lea.vmem %s126_s23, 768  ;;  %p24033_p1 = scmp.lt.s32.totalorder %s126_s23, %s126_s23 }
  0x21   : > { %p24026_p9 = scmp.ne.s32.totalorder %s126_s23, %s24025_s5  ;;  %p24034_p4 = scmp.lt.s32.totalorder %s24025_s5, %s24025_s5 }
  0x23   : > { %p24028_p10 = pnand %p24026_p9, %p24014_p13  ;;  %p24035_p8 = por %p24034_p4, %p24033_p1 }
  0x25   : > { %p24029_p6 = pneg %p24028_p10 }
  0x27   : > { %p24036_p2 = pnand %p24035_p8, %p24029_p6 }
  0x29   : > { %24039 = shalt.err (!%p24036_p2)
}
  0x2a   : > { %s24159_s6 = smov 128   ;;  %s24160_s7 = smov 8  }
  0x2b   : > { %23946 = dma.hbm_to_vmem [thread:$0]  (!%p24243_p11), %s26412_s1, 768, %s126_s23, [#allocation6], %s24159_s6, %s24159_s6, %s24160_s7  }
  0x2c   : > { %p33_p1 = scmp.ge.s32.totalorder %s31_s25, 2  ;;  %s40_s16 = sadd.s32 1, %s24144_s11 }
  0x2d   : > { %p47_p2 = scmp.ne.s32.totalorder %s24144_s11, %s24140_s10  ;;  %p48_p4 = scmp.eq.s32.totalorder %s24156_s14, 0 }
  0x2e   : > { %s26438_s25 = smov (%p33_p1, %s31_s25), 0  ;;  %p26424_p8 = scmp.ne.s32.totalorder %s26419_s18, 0 }
  0x2f   : > { %p49_p6 = por %p48_p4, %p47_p2  ;;  %s35_s24 = ssub.s32 %s24152_s13, %s26438_s25 }
  0x30   : > { %p24275_p10 = por %p26424_p8, %p47_p2  ;;  %p23956_p12 = scmp.lt.s32.totalorder %s24156_s14, 2 }
  0x31   : > { %p38_p13 = scmp.eq.s32.totalorder %s35_s24, 0  ;;  %s139_s26 = sand.u32 1, %s24144_s11  }
  0x32   : > { %s23932_s27 = smul.u32 384, %s139_s26  ;;  %p24287_p11 = pnand %p23956_p12, %p49_p6 }
  0x33   : > { %s24284_s28 = scalar_select %p38_p13, %s24144_s11, %s40_s16  }
  0x34   : > { %s23933_s23 = smul.u32 6144, %s24152_s13  ;;  %s143_s29 = scalar_lea.vmem [#allocation2], %s23932_s27 }
  0x35   : > { %s151_s30 = sshll.u32 %s143_s29, 4  ;;  %s24298_s8 = scalar_lea.sflag [#allocation3], %s139_s26  ;;  %s24296_s30 = int_to_ptr.vmem [resolvable:$true] %s151_s30 }
  0x36   : > { %s24294_s5 = scalar_lea.hbm %s26411_s0, %s23933_s23  ;;  %p24042_p3 = pneg %p24287_p11 }
  0x37   : > { %s24040_s15 = scalar_lea.hbm %s24294_s5, 6144  ;;  %s24045_s27 = scalar_lea.hbm %s26411_s0, 12288 }
  0x38   : > { %p24041_p0 = scmp.ne.s32.totalorder %s24294_s5, %s24040_s15  ;;  %p24046_p9 = scmp.lt.u32.totalorder %s24294_s5, %s26411_s0 }
  0x39   : > { %p24047_p1 = scmp.lt.u32.totalorder %s24045_s27, %s24040_s15  ;;  %p24049_p4 = scmp.lt.u32.totalorder %s24040_s15, %s24294_s5 }
  0x3a   : > { %p24043_p5 = pnand %p24042_p3, %p24041_p0 }
  0x3b   : > { %p24048_p2 = por %p24047_p1, %p24046_p9 }
  0x3c   : > { %p24044_p7 = pneg %p24043_p5 }
  0x3d   : > { %p24050_p6 = por %p24049_p4, %p24048_p2 }
  0x3f   : > { %p24051_p8 = pnand %p24050_p6, %p24044_p7 }
  0x41   : > { %24054 = shalt.err (!%p24051_p8)
}
  0x42   : > { %s24055_s26 = scalar_lea.vmem %s24296_s30, 6144  ;;  %s24161_s4 = smov [#allocation2]  }
  0x43   : > { %p24056_p12 = scmp.ne.s32.totalorder %s24296_s30, %s24055_s26  ;;  %s24060_s18 = sshll.u32 %s24161_s4, 4  ;;  %s24061_s18 = int_to_ptr.vmem [resolvable:$false] %s24060_s18 }
  0x44   : > { %s24062_s16 = scalar_lea.vmem %s24061_s18, 12288  ;;  %p24063_p5 = scmp.lt.s32.totalorder %s24296_s30, %s24061_s18 }
  0x45   : > { %p24058_p13 = pnand %p24056_p12, %p24042_p3  ;;  %p24064_p9 = scmp.lt.s32.totalorder %s24062_s16, %s24055_s26 }
  0x47   : > { %p24059_p0 = pneg %p24058_p13  ;;  %p24065_p1 = por %p24064_p9, %p24063_p5 }
  0x49   : > { %p24066_p2 = pnand %p24065_p1, %p24059_p0 }
  0x4b   : > { %24069 = shalt.err (!%p24066_p2)
}
  0x4c   : > { %23950 = dma.hbm_to_vmem [thread:$0]  (!%p24287_p11), %s24294_s5, 6144, %s24296_s30, %s24298_s8, %s24159_s6, %s24159_s6, %s24160_s7  }
  0x4d   : > { %p26427_p3 = scmp.ne.s32.totalorder %s26422_s21, 0 }
  0x4e   : > { %s24332_s15 = sand.u32 (!%p26427_p3), 1, %s24140_s10   ;;  %p26428_p7 = scmp.ne.s32.totalorder (!%p26427_p3), %s26420_s19, 0 }
  0x4f   : > { %163 = sbr.rel (%p26427_p3) target bundleno = 1150 (0x47e), region = 28  ;;  %s166_s27 = scalar_lea.sflag (!%p26427_p3), [#allocation3], %s24332_s15 }
  0x50   : > { %s23934_s24 = smul.u32 (!%p26427_p3), 384, %s24332_s15 }
  0x52   : > { %s24336_s23 = scalar_lea.vmem (!%p26427_p3), [#allocation2], %s23934_s24 }
  0x56   : > { %24123 = dma.done.wait (%p26428_p7), %s166_s27, 6144  }
  0x57   : > { %24125 = vsyncadd (%p26428_p7), %s166_s27, 4294961152  ;;  %p26429_p11 = scmp.ne.s32.totalorder %s26418_s17, 0 }
  0x59   : > { %24127 = dma.done.wait (%p26429_p11), [#allocation6], 768  }
  0x5a   : > { %24129 = vsyncadd (%p26429_p11), [#allocation6], 4294966528  ;;  %v18396_v0 = vld [vmem:[%s24336_s23 + $0x20] sm:$0xff]  ;;  %v18397_v1 = vld [vmem:[%s24336_s23 + $0x28] sm:$0xff]  ;;  %vm211_vm0 = vcmask 261120   ;;  %s18395_s17 = sshll.u32 %s24332_s15, 5 }
  0x5b   : > { %v202_v2 = vld [vmem:[%s24336_s23] sm:$0xff]  ;;  %v219_v3 = vand.u32 4294901760, %v18396_v0  ;;  %v222_v4 = vand.u32 4294901760, %v18397_v1  ;;  %v203_v5 = vld [vmem:[%s24336_s23 + $0x8] sm:$0xff]  ;;  %v18398_v7 = vld [vmem:[%s24336_s23 + $0x30] sm:$0xff]  ;;  %s26312_s19 = scalar_lea.vmem [#allocation7], %s18395_s17 }
  0x5c   : > { %v753_v6 = vand.u32 4294901760, %v202_v2  ;;  %v24352_v8 = vld [vmem:[%s24336_s23 + $0x38] sm:$0xff]  ;;  %v756_v9 = vand.u32 4294901760, %v203_v5  ;;  %v225_v10 = vand.u32 4294901760, %v18398_v7  ;;  %v24356_v12 = vld [vmem:[%s24336_s23 + $0x10] sm:$0xff]  ;;  %v200_v17 = vld [vmem:[#allocation5 + $0x20] sm:$0xff] }
  0x5d   : > { %v228_v11 = vand.u32 4294901760, %v24352_v8  ;;  %v24359_v13 = vld [vmem:[%s24336_s23 + $0x18] sm:$0xff]  ;;  %v24361_v14 = vpack.c.bf16 %v222_v4, %v219_v3  ;;  %v759_v15 = vand.u32 4294901760, %v24356_v12  ;;  %v194_v18 = vld [vmem:[#allocation5] sm:$0xff]  ;;  %v213_v21 = vsel %vm211_vm0, %v200_v17, 0  ;;  %v201_v22 = vld [vmem:[#allocation5 + $0x28] sm:$0xff] }
  0x5e   : > { %v762_v16 = vand.u32 4294901760, %v24359_v13  ;;  %v24365_v19 = vpack.c.bf16 %v756_v9, %v753_v6  ;;  %v24375_v24 = vand.u32 4294901760, %v213_v21  ;;  %v195_v25 = vld [vmem:[#allocation5 + $0x8] sm:$0xff]  ;;  %v1286_v26 = vsel %vm211_vm0, %v194_v18, 0  ;;  %s18292_s21 = sshll.u32 %s26312_s19, 4  ;;  %s18447_s6 = sshll.u32 %s24148_s12, 9  ;;  %s26355_s21 = int_to_ptr.vmem [resolvable:$true] %s18292_s21 }
  0x5f   : > { %v24367_v20 = vpack.c.bf16 %v228_v11, %v225_v10  ;;  %21917 = vmatprep.subr.bf16.mxu0 %v24361_v14  ;;  %v216_v27 = vsel %vm211_vm0, %v201_v22, 0  ;;  %v24381_v28 = vsub.f32 %v18396_v0, %v219_v3  ;;  %v24383_v29 = vsub.f32 %v18397_v1, %v222_v4  ;;  %s26360_s3 = scalar_lea.hbm %s26413_s2, %s18447_s6  ;;  %s18278_s12 = scalar_lea.sflag [#allocation4], %s24332_s15 }
  0x60   : > { %v24373_v23 = vpack.c.bf16 %v762_v16, %v759_v15  ;;  %22013 = vmatprep.subr.bf16.mxu1 %v24365_v19  ;;  %21919 = vmatpush3.bf16.msra.mxu0 %v24361_v14  ;;  %v24388_v30 = vsub.f32 %v213_v21, %v24375_v24  ;;  %v24390_v31 = vand.u32 4294901760, %v1286_v26  ;;  %v24393_v32 = vand.u32 4294901760, %v216_v27  ;;  %s24070_s5 = scalar_lea.vmem %s26355_s21, 512  ;;  %s24162_s8 = smov [#allocation7]  }
  0x61   : > { %22015 = vmatpush3.bf16.msra.mxu1 %v24365_v19  ;;  %21921 = vmatprep.subr.bf16.mxu0 %v24367_v20  ;;  %v310_v33 = vand.u32 4294901760, %v24381_v28  ;;  %v317_v34 = vand.u32 4294901760, %v24383_v29  ;;  %v1289_v35 = vsel %vm211_vm0, %v195_v25, 0  ;;  %v24406_v39 = vsub.f32 %v202_v2, %v753_v6  ;;  %p24071_p4 = scmp.ne.s32.totalorder %s26355_s21, %s24070_s5  ;;  %s24074_s29 = sshll.u32 %s24162_s8, 4  ;;  %s24075_s29 = int_to_ptr.vmem [resolvable:$false] %s24074_s29 }
  0x62   : > { %22017 = vmatprep.subr.bf16.mxu1 %v24373_v23  ;;  %v24399_v36 = vand.u32 4294901760, %v24388_v30  ;;  %v24402_v37 = vsub.f32 %v1286_v26, %v24390_v31  ;;  %v24404_v38 = vand.u32 4294901760, %v1289_v35  ;;  %v24410_v40 = vsub.f32 %v216_v27, %v24393_v32  ;;  %s24076_s26 = scalar_lea.vmem %s24075_s29, 1024  ;;  %p24077_p12 = scmp.lt.s32.totalorder %s26355_s21, %s24075_s29 }
  0x63   : > { %v311_v41 = vsub.f32 %v24381_v28, %v310_v33  ;;  %v318_v42 = vsub.f32 %v24383_v29, %v317_v34  ;;  %v24418_v43 = vsub.f32 %v203_v5, %v756_v9  ;;  %v844_v47 = vand.u32 4294901760, %v24406_v39  ;;  %p24072_p6 = pnand %p24071_p4, %p24275_p10  ;;  %p24078_p13 = scmp.lt.s32.totalorder %s24076_s26, %s24070_s5 }
  0x64   : > { %21923 = vmatpush3.bf16.msra.mxu0 %v24367_v20  ;;  %v290_v44 = vsub.f32 %v24388_v30, %v24399_v36  ;;  %v24424_v45 = vand.u32 4294901760, %v24402_v37  ;;  %v24427_v46 = vsub.f32 %v1289_v35, %v24404_v38  ;;  %v24431_v48 = vand.u32 4294901760, %v24410_v40 }
  0x65   : > { %22019 = vmatpush3.bf16.msra.mxu1 %v24373_v23  ;;  %v312_v49 = vand.u32 4294901760, %v311_v41  ;;  %v319_v50 = vand.u32 4294901760, %v318_v42  ;;  %v851_v51 = vand.u32 4294901760, %v24418_v43  ;;  %v845_v55 = vsub.f32 %v24406_v39, %v844_v47  ;;  %v197_v41 = vld [vmem:[#allocation5 + $0x10] sm:$0xff]  ;;  %p24073_p8 = pneg %p24072_p6  ;;  %p24079_p0 = por %p24078_p13, %p24077_p12 }
  0x66   : > { %v24434_v52 = vand.u32 4294901760, %v290_v44  ;;  %v1363_v53 = vsub.f32 %v24402_v37, %v24424_v45  ;;  %v24439_v54 = vand.u32 4294901760, %v24427_v46  ;;  %v300_v56 = vsub.f32 %v24410_v40, %v24431_v48 }
  0x67   : > { %v24446_v57 = vpack.c.bf16 %v319_v50, %v312_v49  ;;  %v852_v58 = vsub.f32 %v24418_v43, %v851_v51  ;;  %v24451_v59 = vsub.f32 %v18398_v7, %v225_v10  ;;  %v846_v62 = vand.u32 4294901760, %v845_v55  ;;  %p24080_p5 = pnand %p24079_p0, %p24073_p8 }
  0x68   : > { %19680 = vmatprep.mubr.f32.mxu0 %v24434_v52  ;;  %v24454_v60 = vand.u32 4294901760, %v1363_v53  ;;  %v1373_v61 = vsub.f32 %v24427_v46, %v24439_v54  ;;  %v24459_v63 = vsub.f32 %v24352_v8, %v228_v11  ;;  %v24461_v0 = vand.u32 4294901760, %v300_v56 }
  0x69   : > { %21925 = vmatprep.subr.bf16.mxu0 %v24446_v57  ;;  %v853_v1 = vand.u32 4294901760, %v852_v58  ;;  %v324_v2 = vand.u32 4294901760, %v24451_v59  ;;  %v24466_v3 = vsub.f32 %v24356_v12, %v759_v15  ;;  %v24475_v6 = vsub.f32 %v24359_v13, %v762_v16 }
  0x6a   : > { %19812 = vmatprep.mubr.f32.mxu1 %v24454_v60  ;;  %v24469_v4 = vand.u32 4294901760, %v1373_v61  ;;  %v331_v5 = vand.u32 4294901760, %v24459_v63  ;;  %19681 = vmatmul.mubr.f32.vlgmr.msra.gmra.mrb[0].mxu0 %v24461_v0  ;;  %v24498_v22 = vpack.c.bf16 %v24383_v29, %v24381_v28  ;;  %v24505_v26 = vpack.c.bf16 %v24418_v43, %v24406_v39  ;;  %v198_v28 = vld [vmem:[#allocation5 + $0x18] sm:$0xff]  ;;  %v18400_v61 = vld [vmem:[%s24336_s23 + $0x40] sm:$0xff] }
  0x6b   : > { %v24478_v7 = vpack.c.bf16 %v853_v1, %v846_v62  ;;  %v325_v8 = vsub.f32 %v24451_v59, %v324_v2  ;;  %v858_v9 = vand.u32 4294901760, %v24466_v3  ;;  %21927 = vmatpush3.bf16.msra.mxu0 %v24446_v57  ;;  %v865_v11 = vand.u32 4294901760, %v24475_v6  ;;  %19691 = vmatprep.mubr.f32.mxu0 %v24375_v24  ;;  %v18401_v62 = vld [vmem:[%s24336_s23 + $0x48] sm:$0xff] }
  0x6c   : > { %19813 = vmatmul.mubr.f32.vlgmr.msra.gmra.mrb[0].mxu1 %v24469_v4  ;;  %v332_v10 = vsub.f32 %v24459_v63, %v331_v5  ;;  %v24512_v27 = vpack.c.bf16 %v24459_v63, %v24451_v59  ;;  %v24519_v35 = vpack.c.bf16 %v24475_v6, %v24466_v3  ;;  %v747_v42 = vsel %vm211_vm0, %v197_v41, 0 }
  0x6d   : > { %22021 = vmatprep.subr.bf16.mxu1 %v24478_v7  ;;  %v326_v12 = vand.u32 4294901760, %v325_v8  ;;  %v859_v13 = vsub.f32 %v24466_v3, %v858_v9  ;;  %v866_v16 = vsub.f32 %v24475_v6, %v865_v11  ;;  %19823 = vmatprep.mubr.f32.mxu1 %v24390_v31  ;;  %v24542_v44 = vpack.c.bf16 %v317_v34, %v310_v33  ;;  %v18403_v3 = vld [vmem:[%s24336_s23 + $0x58] sm:$0xff] }
  0x6e   : > { %22023 = vmatpush3.bf16.msra.mxu1 %v24478_v7  ;;  %v333_v15 = vand.u32 4294901760, %v332_v10  ;;  %v24551_v49 = vpack.c.bf16 %v851_v51, %v844_v47  ;;  %v24553_v50 = vand.u32 4294901760, %v747_v42  ;;  %v24559_v29 = vpack.c.bf16 %v331_v5, %v324_v2  ;;  %v18402_v2 = vld [vmem:[%s24336_s23 + $0x50] sm:$0xff] }
  0x6f   : > { %v860_v17 = vand.u32 4294901760, %v859_v13  ;;  %v867_v21 = vand.u32 4294901760, %v866_v16  ;;  %v24564_v33 = vpack.c.bf16 %v865_v11, %v858_v9  ;;  %v750_v34 = vsel %vm211_vm0, %v198_v28, 0 }
  0x70   : > { %v24494_v18 = vpack.c.bf16 %v333_v15, %v326_v12  ;;  %v24568_v39 = vsub.f32 %v747_v42, %v24553_v50  ;;  %v24576_v43 = vand.u32 4294901760, %v750_v34  ;;  %v2348_v63 = vand.u32 4294901760, %v18400_v61 }
  0x71   : > { %v24501_v25 = vpack.c.bf16 %v867_v21, %v860_v17  ;;  %v2351_v1 = vand.u32 4294901760, %v18401_v62  ;;  %v2354_v5 = vand.u32 4294901760, %v18402_v2  ;;  %v2357_v6 = vand.u32 4294901760, %v18403_v3 }
  0x72   : > { %21929 = vmatprep.subr.bf16.mxu0 %v24494_v18  ;;  %v24581_v47 = vand.u32 4294901760, %v24568_v39  ;;  %v24586_v51 = vsub.f32 %v750_v34, %v24576_v43  ;;  %v18407_v34 = vld [vmem:[%s24336_s23 + $0x78] sm:$0xff] }
  0x73   : > { %21931 = vmatpush3.bf16.msra.mxu0 %v24494_v18  ;;  %22025 = vmatprep.subr.bf16.mxu1 %v24501_v25  ;;  %v24674_v8 = vsub.f32 %v18401_v62, %v2351_v1  ;;  %v24683_v11 = vsub.f32 %v18402_v2, %v2354_v5  ;;  %v24685_v12 = vsub.f32 %v18403_v3, %v2357_v6 }
  0x74   : > { %21933 = vmatprep.subr.bf16.mxu0 %v24498_v22  ;;  %22027 = vmatpush3.bf16.msra.mxu1 %v24501_v25  ;;  %v824_v53 = vsub.f32 %v24568_v39, %v24581_v47  ;;  %v24600_v55 = vand.u32 4294901760, %v24586_v51  ;;  %v24693_v13 = vpack.c.bf16 %v2351_v1, %v2348_v63  ;;  %v24707_v21 = vpack.c.bf16 %v2357_v6, %v2354_v5 }
  0x75   : > { %22029 = vmatprep.subr.bf16.mxu1 %v24505_v26  ;;  %v2446_v10 = vand.u32 4294901760, %v24674_v8  ;;  %v2453_v16 = vand.u32 4294901760, %v24683_v11  ;;  %v2460_v17 = vand.u32 4294901760, %v24685_v12 }
  0x76   : > { %19692 = vmatmul.mubr.f32.vlgmr.msra.gmra.mrb[0].mxu0 %v24393_v32  ;;  %v24603_v56 = vand.u32 4294901760, %v824_v53  ;;  %v834_v58 = vsub.f32 %v24586_v51, %v24600_v55 }
  0x77   : > { %21935 = vmatpush3.bf16.msra.mxu0 %v24498_v22  ;;  %19702 = vmatprep.mubr.f32.mxu0 %v24388_v30 }
  0x78   : > { %19824 = vmatmul.mubr.f32.vlgmr.msra.gmra.mrb[0].mxu1 %v24404_v38  ;;  %21937 = vmatprep.subr.bf16.mxu0 %v24512_v27  ;;  %v24618_v59 = vand.u32 4294901760, %v834_v58  ;;  %v3950_v58 = vand.u32 4294901760, %v18407_v34 }
  0x79   : > { %22031 = vmatpush3.bf16.msra.mxu1 %v24505_v26  ;;  %19834 = vmatprep.mubr.f32.mxu1 %v24402_v37 }
  0x7a   : > { %22033 = vmatprep.subr.bf16.mxu1 %v24519_v35  ;;  %v24882_v3 = vsub.f32 %v18407_v34, %v3950_v58 }
  0x7b   : > { %21939 = vmatpush3.bf16.msra.mxu0 %v24512_v27 }
  0x7c   : > { %21941 = vmatprep.subr.bf16.mxu0 %v24361_v14 }
  0x7d   : > { %22035 = vmatpush3.bf16.msra.mxu1 %v24519_v35 }
  0x7e   : > { %19703 = vmatmul.mubr.f32.vlgmr.msra.gmra.mrb[0].mxu0 %v24410_v40  ;;  %22037 = vmatprep.subr.bf16.mxu1 %v24365_v19 }
  0x7f   : > { %21943 = vmatpush3.bf16.msra.mxu0 %v24361_v14  ;;  %19713 = vmatprep.mubr.f32.mxu0 %v24399_v36 }
  0x80   : > { %19835 = vmatmul.mubr.f32.vlgmr.msra.gmra.mrb[0].mxu1 %v24427_v46  ;;  %21945 = vmatprep.subr.bf16.mxu0 %v24367_v20 }
  0x81   : > { %22039 = vmatpush3.bf16.msra.mxu1 %v24365_v19  ;;  %19845 = vmatprep.mubr.f32.mxu1 %v24424_v45 }
  0x82   : > { %22041 = vmatprep.subr.bf16.mxu1 %v24373_v23 }
  0x83   : > { %21947 = vmatpush3.bf16.msra.mxu0 %v24367_v20 }
  0x84   : > { %21949 = vmatprep.subr.bf16.mxu0 %v24542_v44 }
  0x85   : > { %22043 = vmatpush3.bf16.msra.mxu1 %v24373_v23 }
  0x86   : > { %19714 = vmatmul.mubr.f32.vlgmr.msra.gmra.mrb[0].mxu0 %v24431_v48  ;;  %22045 = vmatprep.subr.bf16.mxu1 %v24551_v49 }
  0x87   : > { %21951 = vmatpush3.bf16.msra.mxu0 %v24542_v44  ;;  %19724 = vmatprep.mubr.f32.mxu0 %v24375_v24 }
  0x88   : > { %19846 = vmatmul.mubr.f32.vlgmr.msra.gmra.mrb[0].mxu1 %v24439_v54  ;;  %21953 = vmatprep.subr.bf16.mxu0 %v24559_v29 }
  0x89   : > { %22047 = vmatpush3.bf16.msra.mxu1 %v24551_v49  ;;  %19856 = vmatprep.mubr.f32.mxu1 %v24390_v31 }
  0x8a   : > { %22049 = vmatprep.subr.bf16.mxu1 %v24564_v33 }
  0x8b   : > { %21955 = vmatpush3.bf16.msra.mxu0 %v24559_v29 }
  0x8c   : > { %21957 = vmatprep.subr.bf16.mxu0 %v24361_v14 }
  0x8d   : > { %22051 = vmatpush3.bf16.msra.mxu1 %v24564_v33 }
  0x8e   : > { %19725 = vmatmul.mubr.f32.vlgmr.msra.gmra.mrb[0].mxu0 %v24393_v32  ;;  %22053 = vmatprep.subr.bf16.mxu1 %v24365_v19 }
  0x8f   : > { %21959 = vmatpush3.bf16.msra.mxu0 %v24361_v14  ;;  %19735 = vmatprep.mubr.f32.mxu0 %v24375_v24 }
  0x90   : > { %19857 = vmatmul.mubr.f32.vlgmr.msra.gmra.mrb[0].mxu1 %v24404_v38  ;;  %21961 = vmatprep.subr.bf16.mxu0 %v24367_v20 }
  0x91   : > { %22055 = vmatpush3.bf16.msra.mxu1 %v24365_v19  ;;  %19867 = vmatprep.mubr.f32.mxu1 %v24390_v31 }
  0x92   : > { %22057 = vmatprep.subr.bf16.mxu1 %v24373_v23 }
  0x93   : > { %21963 = vmatpush3.bf16.msra.mxu0 %v24367_v20 }
  0x94   : > { %21965 = vmatprep.subr.bf16.mxu0 %v24365_v19 }
  0x95   : > { %22059 = vmatpush3.bf16.msra.mxu1 %v24373_v23 }
  0x96   : > { %19736 = vmatmul.mubr.f32.vlgmr.msra.gmra.mrb[0].mxu0 %v24393_v32  ;;  %22061 = vmatprep.subr.bf16.mxu1 %v24361_v14 }
  0x97   : > { %21967 = vmatpush3.bf16.msra.mxu0 %v24365_v19  ;;  %19746 = vmatprep.mubr.f32.mxu0 %v24603_v56 }
  0x98   : > { %19868 = vmatmul.mubr.f32.vlgmr.msra.gmra.mrb[0].mxu1 %v24404_v38  ;;  %21969 = vmatprep.subr.bf16.mxu0 %v24373_v23 }
  0x99   : > { %22063 = vmatpush3.bf16.msra.mxu1 %v24361_v14  ;;  %19878 = vmatprep.mubr.f32.mxu1 %v24603_v56 }
  0x9a   : > { %22065 = vmatprep.subr.bf16.mxu1 %v24367_v20 }
  0x9b   : > { %21971 = vmatpush3.bf16.msra.mxu0 %v24373_v23 }
  0x9c   : > { %21973 = vmatprep.subr.bf16.mxu0 %v24478_v7 }
  0x9d   : > { %22067 = vmatpush3.bf16.msra.mxu1 %v24367_v20 }
  0x9e   : > { %19747 = vmatmul.mubr.f32.vlgmr.msra.gmra.mrb[0].mxu0 %v24618_v59  ;;  %22069 = vmatprep.subr.bf16.mxu1 %v24446_v57 }
  0x9f   : > { %21975 = vmatpush3.bf16.msra.mxu0 %v24478_v7  ;;  %19757 = vmatprep.mubr.f32.mxu0 %v24553_v50  ;;  %v24672_v7 = vsub.f32 %v18400_v61, %v2348_v63 }
  0xa0   : > { %19879 = vmatmul.mubr.f32.vlgmr.msra.gmra.mrb[0].mxu1 %v24618_v59  ;;  %21977 = vmatprep.subr.bf16.mxu0 %v24501_v25 }
  0xa1   : > { %22071 = vmatpush3.bf16.msra.mxu1 %v24446_v57  ;;  %19889 = vmatprep.mubr.f32.mxu1 %v24553_v50  ;;  %v2439_v9 = vand.u32 4294901760, %v24672_v7 }
  0xa2   : > { %22073 = vmatprep.subr.bf16.mxu1 %v24494_v18 }
  0xa3   : > { %21979 = vmatpush3.bf16.msra.mxu0 %v24501_v25  ;;  %v2440_v15 = vsub.f32 %v24672_v7, %v2439_v9 }
  0xa4   : > { %21981 = vmatprep.subr.bf16.mxu0 %v24505_v26 }
  0xa5   : > { %22075 = vmatpush3.bf16.msra.mxu1 %v24494_v18  ;;  %v2441_v25 = vand.u32 4294901760, %v2440_v15 }
  0xa6   : > { %19758 = vmatmul.mubr.f32.vlgmr.msra.gmra.mrb[0].mxu0 %v24576_v43  ;;  %22077 = vmatprep.subr.bf16.mxu1 %v24498_v22 }
  0xa7   : > { %21983 = vmatpush3.bf16.msra.mxu0 %v24505_v26  ;;  %19768 = vmatprep.mubr.f32.mxu0 %v24568_v39 }
  0xa8   : > { %19890 = vmatmul.mubr.f32.vlgmr.msra.gmra.mrb[0].mxu1 %v24576_v43  ;;  %21985 = vmatprep.subr.bf16.mxu0 %v24519_v35 }
  0xa9   : > { %22079 = vmatpush3.bf16.msra.mxu1 %v24498_v22  ;;  %19900 = vmatprep.mubr.f32.mxu1 %v24568_v39 }
  0xaa   : > { %22081 = vmatprep.subr.bf16.mxu1 %v24512_v27 }
  0xab   : > { %21987 = vmatpush3.bf16.msra.mxu0 %v24519_v35  ;;  %v2454_v35 = vsub.f32 %v24683_v11, %v2453_v16 }
  0xac   : > { %21989 = vmatprep.subr.bf16.mxu0 %v24365_v19 }
  0xad   : > { %22083 = vmatpush3.bf16.msra.mxu1 %v24512_v27  ;;  %v2455_v42 = vand.u32 4294901760, %v2454_v35 }
  0xae   : > { %19769 = vmatmul.mubr.f32.vlgmr.msra.gmra.mrb[0].mxu0 %v24586_v51  ;;  %22085 = vmatprep.subr.bf16.mxu1 %v24361_v14 }
  0xaf   : > { %21991 = vmatpush3.bf16.msra.mxu0 %v24365_v19  ;;  %19779 = vmatprep.mubr.f32.mxu0 %v24581_v47 }
  0xb0   : > { %19901 = vmatmul.mubr.f32.vlgmr.msra.gmra.mrb[0].mxu1 %v24586_v51  ;;  %21993 = vmatprep.subr.bf16.mxu0 %v24373_v23 }
  0xb1   : > { %22087 = vmatpush3.bf16.msra.mxu1 %v24361_v14  ;;  %19911 = vmatprep.mubr.f32.mxu1 %v24581_v47 }
  0xb2   : > { %22089 = vmatprep.subr.bf16.mxu1 %v24367_v20 }
  0xb3   : > { %21995 = vmatpush3.bf16.msra.mxu0 %v24373_v23 }
  0xb4   : > { %21997 = vmatprep.subr.bf16.mxu0 %v24551_v49 }
  0xb5   : > { %22091 = vmatpush3.bf16.msra.mxu1 %v24367_v20 }
  0xb6   : > { %19780 = vmatmul.mubr.f32.vlgmr.msra.gmra.mrb[0].mxu0 %v24600_v55  ;;  %22093 = vmatprep.subr.bf16.mxu1 %v24542_v44 }
  0xb7   : > { %21999 = vmatpush3.bf16.msra.mxu0 %v24551_v49  ;;  %19790 = vmatprep.mubr.f32.mxu0 %v24553_v50 }
  0xb8   : > { %19912 = vmatmul.mubr.f32.vlgmr.msra.gmra.mrb[0].mxu1 %v24600_v55  ;;  %22001 = vmatprep.subr.bf16.mxu0 %v24564_v33 }
  0xb9   : > { %22095 = vmatpush3.bf16.msra.mxu1 %v24542_v44  ;;  %19922 = vmatprep.mubr.f32.mxu1 %v24553_v50 }
  0xba   : > { %22097 = vmatprep.subr.bf16.mxu1 %v24559_v29 }
  0xbb   : > { %22003 = vmatpush3.bf16.msra.mxu0 %v24564_v33  ;;  %v24742_v33 = vpack.c.bf16 %v24674_v8, %v24672_v7 }
  0xbc   : > { %22005 = vmatprep.subr.bf16.mxu0 %v24365_v19 }
  0xbd   : > { %22099 = vmatpush3.bf16.msra.mxu1 %v24559_v29 }
  0xbe   : > { %19791 = vmatmul.mubr.f32.vlgmr.msra.gmra.mrb[0].mxu0 %v24576_v43  ;;  %22101 = vmatprep.subr.bf16.mxu1 %v24361_v14 }
  0xbf   : > { %22007 = vmatpush3.bf16.msra.mxu0 %v24365_v19  ;;  %19801 = vmatprep.mubr.f32.mxu0 %v24553_v50  ;;  %v2447_v19 = vsub.f32 %v24674_v8, %v2446_v10 }
  0xc0   : > { %19923 = vmatmul.mubr.f32.vlgmr.msra.gmra.mrb[0].mxu1 %v24576_v43  ;;  %22009 = vmatprep.subr.bf16.mxu0 %v24373_v23 }
  0xc1   : > { %22103 = vmatpush3.bf16.msra.mxu1 %v24361_v14  ;;  %19933 = vmatprep.mubr.f32.mxu1 %v24553_v50  ;;  %v2448_v26 = vand.u32 4294901760, %v2447_v19 }
  0xc2   : > { %22105 = vmatprep.subr.bf16.mxu1 %v24367_v20 }
  0xc3   : > { %22011 = vmatpush3.bf16.msra.mxu0 %v24373_v23  ;;  %v2461_v23 = vsub.f32 %v24685_v12, %v2460_v17  ;;  %v24724_v41 = vpack.c.bf16 %v2448_v26, %v2441_v25 }
  0xc4   : > { %22157 = vmatprep.subr.bf16.mxu0 %v24361_v14 }
  0xc5   : > { %22107 = vmatpush3.bf16.msra.mxu1 %v24367_v20  ;;  %v2462_v49 = vand.u32 4294901760, %v2461_v23  ;;  %v18408_v23 = vld [vmem:[%s24336_s23 + $0x80] sm:$0xff] }
  0xc6   : > { %19802 = vmatmul.mubr.f32.vlgmr.msra.gmra.mrb[0].mxu0 %v24576_v43  ;;  %22109 = vmatprep.subr.bf16.mxu1 %v24693_v13 }
  0xc7   : > { %22159 = vmatpush3.bf16.msra.mxu0 %v24361_v14  ;;  %20010 = vmatprep.mubr.f32.mxu0 %v24454_v60  ;;  %v24731_v28 = vpack.c.bf16 %v2462_v49, %v2455_v42  ;;  %v5534_v49 = vand.u32 4294901760, %v18408_v23 }
  0xc8   : > { %19934 = vmatmul.mubr.f32.vlgmr.msra.gmra.mrb[0].mxu1 %v24576_v43  ;;  %22161 = vmatprep.subr.bf16.mxu0 %v24367_v20 }
  0xc9   : > { %22111 = vmatpush3.bf16.msra.mxu1 %v24693_v13  ;;  %19944 = vmatprep.mubr.f32.mxu1 %v24434_v52 }
  0xca   : > { %22113 = vmatprep.subr.bf16.mxu1 %v24707_v21 }
  0xcb   : > { %22163 = vmatpush3.bf16.msra.mxu0 %v24367_v20 }
  0xcc   : > { %22165 = vmatprep.subr.bf16.mxu0 %v24446_v57 }
  0xcd   : > { %22115 = vmatpush3.bf16.msra.mxu1 %v24707_v21 }
  0xce   : > { %22117 = vmatprep.subr.bf16.mxu1 %v24724_v41  ;;  %20011 = vmatmul.mubr.f32.vlgmr.msra.gmra.mrb[2].mxu0 %v24469_v4 }
  0xcf   : > { %22167 = vmatpush3.bf16.msra.mxu0 %v24446_v57  ;;  %20021 = vmatprep.mubr.f32.mxu0 %v24390_v31  ;;  %v24751_v57 = vpack.c.bf16 %v24685_v12, %v24683_v11 }
  0xd0   : > { %19945 = vmatmul.mubr.f32.vlgmr.msra.gmra.mrb[0].mxu1 %v24461_v0  ;;  %22169 = vmatprep.subr.bf16.mxu0 %v24494_v18 }
  0xd1   : > { %22119 = vmatpush3.bf16.msra.mxu1 %v24724_v41  ;;  %19955 = vmatprep.mubr.f32.mxu1 %v24375_v24 }
  0xd2   : > { %22121 = vmatprep.subr.bf16.mxu1 %v24731_v28 }
  0xd3   : > { %22171 = vmatpush3.bf16.msra.mxu0 %v24494_v18  ;;  %v24776_v18 = vpack.c.bf16 %v2446_v10, %v2439_v9  ;;  %v4053_v9 = vand.u32 4294901760, %v24882_v3 }
  0xd4   : > { %22173 = vmatprep.subr.bf16.mxu0 %v24498_v22 }
  0xd5   : > { %22123 = vmatpush3.bf16.msra.mxu1 %v24731_v28 }
  0xd6   : > { %22125 = vmatprep.subr.bf16.mxu1 %v24742_v33  ;;  %20022 = vmatmul.mubr.f32.vlgmr.msra.gmra.mrb[2].mxu0 %v24404_v38 }
  0xd7   : > { %22175 = vmatpush3.bf16.msra.mxu0 %v24498_v22  ;;  %20032 = vmatprep.mubr.f32.mxu0 %v24402_v37  ;;  %v24787_v22 = vpack.c.bf16 %v2460_v17, %v2453_v16 }
  0xd8   : > { %19956 = vmatmul.mubr.f32.vlgmr.msra.gmra.mrb[0].mxu1 %v24393_v32  ;;  %22177 = vmatprep.subr.bf16.mxu0 %v24512_v27 }
  0xd9   : > { %22127 = vmatpush3.bf16.msra.mxu1 %v24742_v33  ;;  %19966 = vmatprep.mubr.f32.mxu1 %v24388_v30 }
  0xda   : > { %22129 = vmatprep.subr.bf16.mxu1 %v24751_v57 }
  0xdb   : > { %22179 = vmatpush3.bf16.msra.mxu0 %v24512_v27 }
  0xdc   : > { %22181 = vmatprep.subr.bf16.mxu0 %v24361_v14 }
  0xdd   : > { %22131 = vmatpush3.bf16.msra.mxu1 %v24751_v57 }
  0xde   : > { %22133 = vmatprep.subr.bf16.mxu1 %v24693_v13  ;;  %20033 = vmatmul.mubr.f32.vlgmr.msra.gmra.mrb[2].mxu0 %v24427_v46 }
  0xdf   : > { %22183 = vmatpush3.bf16.msra.mxu0 %v24361_v14  ;;  %20043 = vmatprep.mubr.f32.mxu0 %v24424_v45 }
  0xe0   : > { %19967 = vmatmul.mubr.f32.vlgmr.msra.gmra.mrb[0].mxu1 %v24410_v40  ;;  %22185 = vmatprep.subr.bf16.mxu0 %v24367_v20 }
  0xe1   : > { %22135 = vmatpush3.bf16.msra.mxu1 %v24693_v13  ;;  %19977 = vmatprep.mubr.f32.mxu1 %v24399_v36 }
  0xe2   : > { %22137 = vmatprep.subr.bf16.mxu1 %v24707_v21 }
  0xe3   : > { %22187 = vmatpush3.bf16.msra.mxu0 %v24367_v20 }
  0xe4   : > { %22189 = vmatprep.subr.bf16.mxu0 %v24542_v44 }
  0xe5   : > { %22139 = vmatpush3.bf16.msra.mxu1 %v24707_v21 }
  0xe6   : > { %22141 = vmatprep.subr.bf16.mxu1 %v24776_v18  ;;  %20044 = vmatmul.mubr.f32.vlgmr.msra.gmra.mrb[2].mxu0 %v24439_v54 }
  0xe7   : > { %22191 = vmatpush3.bf16.msra.mxu0 %v24542_v44  ;;  %20054 = vmatprep.mubr.f32.mxu0 %v24390_v31 }
  0xe8   : > { %19978 = vmatmul.mubr.f32.vlgmr.msra.gmra.mrb[0].mxu1 %v24431_v48  ;;  %22193 = vmatprep.subr.bf16.mxu0 %v24559_v29 }
  0xe9   : > { %22143 = vmatpush3.bf16.msra.mxu1 %v24776_v18  ;;  %19988 = vmatprep.mubr.f32.mxu1 %v24375_v24 }
  0xea   : > { %22145 = vmatprep.subr.bf16.mxu1 %v24787_v22 }
  0xeb   : > { %22195 = vmatpush3.bf16.msra.mxu0 %v24559_v29  ;;  %v18406_v29 = vld [vmem:[%s24336_s23 + $0x70] sm:$0xff] }
  0xec   : > { %22197 = vmatprep.subr.bf16.mxu0 %v24361_v14  ;;  %v3947_v53 = vand.u32 4294901760, %v18406_v29 }
  0xed   : > { %22147 = vmatpush3.bf16.msra.mxu1 %v24787_v22 }
  0xee   : > { %22149 = vmatprep.subr.bf16.mxu1 %v24693_v13  ;;  %20055 = vmatmul.mubr.f32.vlgmr.msra.gmra.mrb[2].mxu0 %v24404_v38  ;;  %v24880_v2 = vsub.f32 %v18406_v29, %v3947_v53  ;;  %v24905_v10 = vpack.c.bf16 %v3950_v58, %v3947_v53 }
  0xef   : > { %22199 = vmatpush3.bf16.msra.mxu0 %v24361_v14  ;;  %20065 = vmatprep.mubr.f32.mxu0 %v24390_v31  ;;  %v18404_v14 = vld [vmem:[%s24336_s23 + $0x60] sm:$0xff] }
  0xf0   : > { %19989 = vmatmul.mubr.f32.vlgmr.msra.gmra.mrb[0].mxu1 %v24393_v32  ;;  %22201 = vmatprep.subr.bf16.mxu0 %v24367_v20  ;;  %v3941_v27 = vand.u32 4294901760, %v18404_v14  ;;  %v4046_v8 = vand.u32 4294901760, %v24880_v2  ;;  %v24948_v26 = vpack.c.bf16 %v24882_v3, %v24880_v2 }
  0xf1   : > { %22151 = vmatpush3.bf16.msra.mxu1 %v24693_v13  ;;  %19999 = vmatprep.mubr.f32.mxu1 %v24375_v24 }
  0xf2   : > { %22153 = vmatprep.subr.bf16.mxu1 %v24707_v21  ;;  %v24869_v61 = vsub.f32 %v18404_v14, %v3941_v27  ;;  %v4047_v15 = vsub.f32 %v24880_v2, %v4046_v8  ;;  %v24986_v42 = vpack.c.bf16 %v4053_v9, %v4046_v8  ;;  %v25000_v14 = vsub.f32 %v18408_v23, %v5534_v49  ;;  %v18415_v23 = vld [vmem:[%s24336_s23 + $0xb8] sm:$0xff] }
  0xf3   : > { %22203 = vmatpush3.bf16.msra.mxu0 %v24367_v20  ;;  %v18405_v20 = vld [vmem:[%s24336_s23 + $0x68] sm:$0xff] }
  0xf4   : > { %22205 = vmatprep.subr.bf16.mxu0 %v24693_v13  ;;  %v3944_v44 = vand.u32 4294901760, %v18405_v20  ;;  %v4032_v63 = vand.u32 4294901760, %v24869_v61  ;;  %v4048_v16 = vand.u32 4294901760, %v4047_v15 }
  0xf5   : > { %22155 = vmatpush3.bf16.msra.mxu1 %v24707_v21 }
  0xf6   : > { %20066 = vmatmul.mubr.f32.vlgmr.msra.gmra.mrb[2].mxu0 %v24404_v38  ;;  %22301 = vmatprep.subr.bf16.mxu1 %v24693_v13  ;;  %v24871_v62 = vsub.f32 %v18405_v20, %v3944_v44  ;;  %v24889_v5 = vpack.c.bf16 %v3944_v44, %v3941_v27  ;;  %v4033_v6 = vsub.f32 %v24869_v61, %v4032_v63  ;;  %v5625_v27 = vand.u32 4294901760, %v25000_v14 }
  0xf7   : > { %22207 = vmatpush3.bf16.msra.mxu0 %v24693_v13  ;;  %20076 = vmatprep.mubr.f32.mxu0 %v24603_v56 }
  0xf8   : > { %20000 = vmatmul.mubr.f32.vlgmr.msra.gmra.mrb[0].mxu1 %v24393_v32  ;;  %22209 = vmatprep.subr.bf16.mxu0 %v24707_v21  ;;  %v4039_v1 = vand.u32 4294901760, %v24871_v62  ;;  %v4034_v11 = vand.u32 4294901760, %v4033_v6  ;;  %v24939_v25 = vpack.c.bf16 %v24871_v62, %v24869_v61  ;;  %v5626_v58 = vsub.f32 %v25000_v14, %v5625_v27 }
  0xf9   : > { %22303 = vmatpush3.bf16.msra.mxu1 %v24693_v13  ;;  %20208 = vmatprep.mubr.f32.mxu1 %v24454_v60 }
  0xfa   : > { %22305 = vmatprep.subr.bf16.mxu1 %v24707_v21  ;;  %v4040_v7 = vsub.f32 %v24871_v62, %v4039_v1  ;;  %v24973_v35 = vpack.c.bf16 %v4039_v1, %v4032_v63  ;;  %v5627_v2 = vand.u32 4294901760, %v5626_v58 }
  0xfb   : > { %22211 = vmatpush3.bf16.msra.mxu0 %v24707_v21 }
  0xfc   : > { %22213 = vmatprep.subr.bf16.mxu0 %v24724_v41  ;;  %v4041_v12 = vand.u32 4294901760, %v4040_v7 }
  0xfd   : > { %22307 = vmatpush3.bf16.msra.mxu1 %v24707_v21 }
  0xfe   : > { %20077 = vmatmul.mubr.f32.vlgmr.msra.gmra.mrb[2].mxu0 %v24618_v59  ;;  %22309 = vmatprep.subr.bf16.mxu1 %v24724_v41  ;;  %v24921_v19 = vpack.c.bf16 %v4041_v12, %v4034_v11 }
  0xff   : > { %22215 = vmatpush3.bf16.msra.mxu0 %v24724_v41  ;;  %20087 = vmatprep.mubr.f32.mxu0 %v24553_v50 }
 0x100   : > { %20209 = vmatmul.mubr.f32.vlgmr.msra.gmra.mrb[2].mxu1 %v24469_v4  ;;  %22217 = vmatprep.subr.bf16.mxu0 %v24731_v28 }
 0x101   : > { %22311 = vmatpush3.bf16.msra.mxu1 %v24724_v41  ;;  %20219 = vmatprep.mubr.f32.mxu1 %v24390_v31  ;;  %v18409_v41 = vld [vmem:[%s24336_s23 + $0x88] sm:$0xff] }
 0x102   : > { %22313 = vmatprep.subr.bf16.mxu1 %v24731_v28 }
 0x103   : > { %22219 = vmatpush3.bf16.msra.mxu0 %v24731_v28 }
 0x104   : > { %22221 = vmatprep.subr.bf16.mxu0 %v24742_v33 }
 0x105   : > { %22315 = vmatpush3.bf16.msra.mxu1 %v24731_v28  ;;  %v5537_v28 = vand.u32 4294901760, %v18409_v41 }
 0x106   : > { %20088 = vmatmul.mubr.f32.vlgmr.msra.gmra.mrb[2].mxu0 %v24576_v43  ;;  %22317 = vmatprep.subr.bf16.mxu1 %v24742_v33 }
 0x107   : > { %22223 = vmatpush3.bf16.msra.mxu0 %v24742_v33  ;;  %20098 = vmatprep.mubr.f32.mxu0 %v24568_v39  ;;  %v25002_v20 = vsub.f32 %v18409_v41, %v5537_v28  ;;  %v25021_v53 = vpack.c.bf16 %v5537_v28, %v5534_v49 }
 0x108   : > { %20220 = vmatmul.mubr.f32.vlgmr.msra.gmra.mrb[2].mxu1 %v24404_v38  ;;  %22225 = vmatprep.subr.bf16.mxu0 %v24751_v57 }
 0x109   : > { %22319 = vmatpush3.bf16.msra.mxu1 %v24742_v33  ;;  %20230 = vmatprep.mubr.f32.mxu1 %v24402_v37  ;;  %v18410_v33 = vld [vmem:[%s24336_s23 + $0x90] sm:$0xff]  ;;  %v5632_v44 = vand.u32 4294901760, %v25002_v20  ;;  %v25070_v15 = vpack.c.bf16 %v25002_v20, %v25000_v14 }
 0x10a   : > { %22321 = vmatprep.subr.bf16.mxu1 %v24751_v57 }
 0x10b   : > { %22227 = vmatpush3.bf16.msra.mxu0 %v24751_v57  ;;  %v5633_v61 = vsub.f32 %v25002_v20, %v5632_v44 }
 0x10c   : > { %22229 = vmatprep.subr.bf16.mxu0 %v24693_v13 }
 0x10d   : > { %22323 = vmatpush3.bf16.msra.mxu1 %v24751_v57  ;;  %v18411_v57 = vld [vmem:[%s24336_s23 + $0x98] sm:$0xff] }
 0x10e   : > { %20099 = vmatmul.mubr.f32.vlgmr.msra.gmra.mrb[2].mxu0 %v24586_v51  ;;  %22325 = vmatprep.subr.bf16.mxu1 %v24693_v13 }
 0x10f   : > { %22231 = vmatpush3.bf16.msra.mxu0 %v24693_v13  ;;  %20109 = vmatprep.mubr.f32.mxu0 %v24581_v47 }
 0x110   : > { %20231 = vmatmul.mubr.f32.vlgmr.msra.gmra.mrb[2].mxu1 %v24427_v46  ;;  %22233 = vmatprep.subr.bf16.mxu0 %v24707_v21 }
 0x111   : > { %22327 = vmatpush3.bf16.msra.mxu1 %v24693_v13  ;;  %20241 = vmatprep.mubr.f32.mxu1 %v24424_v45 }
 0x112   : > { %22329 = vmatprep.subr.bf16.mxu1 %v24707_v21 }
 0x113   : > { %22235 = vmatpush3.bf16.msra.mxu0 %v24707_v21 }
 0x114   : > { %22237 = vmatprep.subr.bf16.mxu0 %v24776_v18 }
 0x115   : > { %22331 = vmatpush3.bf16.msra.mxu1 %v24707_v21 }
 0x116   : > { %20110 = vmatmul.mubr.f32.vlgmr.msra.gmra.mrb[2].mxu0 %v24600_v55  ;;  %22333 = vmatprep.subr.bf16.mxu1 %v24776_v18 }
 0x117   : > { %22239 = vmatpush3.bf16.msra.mxu0 %v24776_v18  ;;  %20120 = vmatprep.mubr.f32.mxu0 %v24553_v50 }
 0x118   : > { %20242 = vmatmul.mubr.f32.vlgmr.msra.gmra.mrb[2].mxu1 %v24439_v54  ;;  %22241 = vmatprep.subr.bf16.mxu0 %v24787_v22 }
 0x119   : > { %22335 = vmatpush3.bf16.msra.mxu1 %v24776_v18  ;;  %20252 = vmatprep.mubr.f32.mxu1 %v24390_v31  ;;  %v5540_v18 = vand.u32 4294901760, %v18410_v33 }
 0x11a   : > { %22337 = vmatprep.subr.bf16.mxu1 %v24787_v22 }
 0x11b   : > { %22243 = vmatpush3.bf16.msra.mxu0 %v24787_v22  ;;  %v25011_v29 = vsub.f32 %v18410_v33, %v5540_v18 }
 0x11c   : > { %22245 = vmatprep.subr.bf16.mxu0 %v24693_v13 }
 0x11d   : > { %22339 = vmatpush3.bf16.msra.mxu1 %v24787_v22  ;;  %v5543_v22 = vand.u32 4294901760, %v18411_v57  ;;  %v5639_v62 = vand.u32 4294901760, %v25011_v29 }
 0x11e   : > { %20121 = vmatmul.mubr.f32.vlgmr.msra.gmra.mrb[2].mxu0 %v24576_v43  ;;  %22341 = vmatprep.subr.bf16.mxu1 %v24693_v13 }
 0x11f   : > { %22247 = vmatpush3.bf16.msra.mxu0 %v24693_v13  ;;  %20131 = vmatprep.mubr.f32.mxu0 %v24553_v50  ;;  %v25013_v34 = vsub.f32 %v18411_v57, %v5543_v22  ;;  %v25035_v1 = vpack.c.bf16 %v5543_v22, %v5540_v18  ;;  %v5640_v6 = vsub.f32 %v25011_v29, %v5639_v62 }
 0x120   : > { %20253 = vmatmul.mubr.f32.vlgmr.msra.gmra.mrb[2].mxu1 %v24404_v38  ;;  %22249 = vmatprep.subr.bf16.mxu0 %v24707_v21 }
 0x121   : > { %22343 = vmatpush3.bf16.msra.mxu1 %v24693_v13  ;;  %20263 = vmatprep.mubr.f32.mxu1 %v24390_v31  ;;  %v4054_v13 = vsub.f32 %v24882_v3, %v4053_v9  ;;  %v5646_v63 = vand.u32 4294901760, %v25013_v34  ;;  %v5634_v3 = vand.u32 4294901760, %v5633_v61  ;;  %v5641_v9 = vand.u32 4294901760, %v5640_v6 }
 0x122   : > { %22345 = vmatprep.subr.bf16.mxu1 %v24707_v21 }
 0x123   : > { %22251 = vmatpush3.bf16.msra.mxu0 %v24707_v21  ;;  %v4055_v17 = vand.u32 4294901760, %v4054_v13  ;;  %v5647_v7 = vsub.f32 %v25013_v34, %v5646_v63  ;;  %v25052_v8 = vpack.c.bf16 %v5634_v3, %v5627_v2  ;;  %v25079_v13 = vpack.c.bf16 %v25013_v34, %v25011_v29 }
 0x124   : > { %22253 = vmatprep.subr.bf16.mxu0 %v24889_v5 }
 0x125   : > { %22347 = vmatpush3.bf16.msra.mxu1 %v24707_v21  ;;  %v24928_v21 = vpack.c.bf16 %v4055_v17, %v4048_v16  ;;  %v5648_v11 = vand.u32 4294901760, %v5647_v7  ;;  %v25115_v16 = vpack.c.bf16 %v5646_v63, %v5639_v62  ;;  %v18412_v17 = vld [vmem:[%s24336_s23 + $0xa0] sm:$0xff] }
 0x126   : > { %20132 = vmatmul.mubr.f32.vlgmr.msra.gmra.mrb[2].mxu0 %v24576_v43  ;;  %22349 = vmatprep.subr.bf16.mxu1 %v24889_v5 }
 0x127   : > { %22255 = vmatpush3.bf16.msra.mxu0 %v24889_v5  ;;  %20142 = vmatprep.mubr.f32.mxu0 %v24434_v52  ;;  %v25059_v12 = vpack.c.bf16 %v5648_v11, %v5641_v9 }
 0x128   : > { %20264 = vmatmul.mubr.f32.vlgmr.msra.gmra.mrb[2].mxu1 %v24404_v38  ;;  %22257 = vmatprep.subr.bf16.mxu0 %v24905_v10 }
 0x129   : > { %22351 = vmatpush3.bf16.msra.mxu1 %v24889_v5  ;;  %20274 = vmatprep.mubr.f32.mxu1 %v24603_v56 }
 0x12a   : > { %22353 = vmatprep.subr.bf16.mxu1 %v24905_v10 }
 0x12b   : > { %22259 = vmatpush3.bf16.msra.mxu0 %v24905_v10 }
 0x12c   : > { %22261 = vmatprep.subr.bf16.mxu0 %v24921_v19 }
 0x12d   : > { %22355 = vmatpush3.bf16.msra.mxu1 %v24905_v10 }
 0x12e   : > { %20143 = vmatmul.mubr.f32.vlgmr.msra.gmra.mrb[2].mxu0 %v24461_v0  ;;  %22357 = vmatprep.subr.bf16.mxu1 %v24921_v19 }
 0x12f   : > { %22263 = vmatpush3.bf16.msra.mxu0 %v24921_v19  ;;  %20153 = vmatprep.mubr.f32.mxu0 %v24375_v24 }
 0x130   : > { %20275 = vmatmul.mubr.f32.vlgmr.msra.gmra.mrb[2].mxu1 %v24618_v59  ;;  %22265 = vmatprep.subr.bf16.mxu0 %v24928_v21 }
 0x131   : > { %22359 = vmatpush3.bf16.msra.mxu1 %v24921_v19  ;;  %20285 = vmatprep.mubr.f32.mxu1 %v24553_v50 }
 0x132   : > { %22361 = vmatprep.subr.bf16.mxu1 %v24928_v21 }
 0x133   : > { %22267 = vmatpush3.bf16.msra.mxu0 %v24928_v21 }
 0x134   : > { %22269 = vmatprep.subr.bf16.mxu0 %v24939_v25 }
 0x135   : > { %22363 = vmatpush3.bf16.msra.mxu1 %v24928_v21 }
 0x136   : > { %20154 = vmatmul.mubr.f32.vlgmr.msra.gmra.mrb[2].mxu0 %v24393_v32  ;;  %22365 = vmatprep.subr.bf16.mxu1 %v24939_v25 }
 0x137   : > { %22271 = vmatpush3.bf16.msra.mxu0 %v24939_v25  ;;  %20164 = vmatprep.mubr.f32.mxu0 %v24388_v30 }
 0x138   : > { %20286 = vmatmul.mubr.f32.vlgmr.msra.gmra.mrb[2].mxu1 %v24576_v43  ;;  %22273 = vmatprep.subr.bf16.mxu0 %v24948_v26 }
 0x139   : > { %22367 = vmatpush3.bf16.msra.mxu1 %v24939_v25  ;;  %20296 = vmatprep.mubr.f32.mxu1 %v24568_v39 }
 0x13a   : > { %22369 = vmatprep.subr.bf16.mxu1 %v24948_v26 }
 0x13b   : > { %22275 = vmatpush3.bf16.msra.mxu0 %v24948_v26 }
 0x13c   : > { %22277 = vmatprep.subr.bf16.mxu0 %v24889_v5 }
 0x13d   : > { %22371 = vmatpush3.bf16.msra.mxu1 %v24948_v26 }
 0x13e   : > { %20165 = vmatmul.mubr.f32.vlgmr.msra.gmra.mrb[2].mxu0 %v24410_v40  ;;  %22373 = vmatprep.subr.bf16.mxu1 %v24889_v5 }
 0x13f   : > { %22279 = vmatpush3.bf16.msra.mxu0 %v24889_v5  ;;  %20175 = vmatprep.mubr.f32.mxu0 %v24399_v36 }
 0x140   : > { %20297 = vmatmul.mubr.f32.vlgmr.msra.gmra.mrb[2].mxu1 %v24586_v51  ;;  %22281 = vmatprep.subr.bf16.mxu0 %v24905_v10 }
 0x141   : > { %22375 = vmatpush3.bf16.msra.mxu1 %v24889_v5  ;;  %20307 = vmatprep.mubr.f32.mxu1 %v24581_v47 }
 0x142   : > { %22377 = vmatprep.subr.bf16.mxu1 %v24905_v10 }
 0x143   : > { %22283 = vmatpush3.bf16.msra.mxu0 %v24905_v10 }
 0x144   : > { %22285 = vmatprep.subr.bf16.mxu0 %v24973_v35 }
 0x145   : > { %22379 = vmatpush3.bf16.msra.mxu1 %v24905_v10 }
 0x146   : > { %20176 = vmatmul.mubr.f32.vlgmr.msra.gmra.mrb[2].mxu0 %v24431_v48  ;;  %22381 = vmatprep.subr.bf16.mxu1 %v24973_v35 }
 0x147   : > { %22287 = vmatpush3.bf16.msra.mxu0 %v24973_v35  ;;  %20186 = vmatprep.mubr.f32.mxu0 %v24375_v24 }
 0x148   : > { %20308 = vmatmul.mubr.f32.vlgmr.msra.gmra.mrb[2].mxu1 %v24600_v55  ;;  %22289 = vmatprep.subr.bf16.mxu0 %v24986_v42 }
 0x149   : > { %22383 = vmatpush3.bf16.msra.mxu1 %v24973_v35  ;;  %20318 = vmatprep.mubr.f32.mxu1 %v24553_v50 }
 0x14a   : > { %22385 = vmatprep.subr.bf16.mxu1 %v24986_v42 }
 0x14b   : > { %22291 = vmatpush3.bf16.msra.mxu0 %v24986_v42 }
 0x14c   : > { %22293 = vmatprep.subr.bf16.mxu0 %v24889_v5 }
 0x14d   : > { %22387 = vmatpush3.bf16.msra.mxu1 %v24986_v42 }
 0x14e   : > { %20187 = vmatmul.mubr.f32.vlgmr.msra.gmra.mrb[2].mxu0 %v24393_v32  ;;  %22389 = vmatprep.subr.bf16.mxu1 %v24889_v5 }
 0x14f   : > { %22295 = vmatpush3.bf16.msra.mxu0 %v24889_v5  ;;  %20197 = vmatprep.mubr.f32.mxu0 %v24375_v24 }
 0x150   : > { %20319 = vmatmul.mubr.f32.vlgmr.msra.gmra.mrb[2].mxu1 %v24576_v43  ;;  %22297 = vmatprep.subr.bf16.mxu0 %v24905_v10 }
 0x151   : > { %22391 = vmatpush3.bf16.msra.mxu1 %v24889_v5  ;;  %20329 = vmatprep.mubr.f32.mxu1 %v24553_v50 }
 0x152   : > { %22393 = vmatprep.subr.bf16.mxu1 %v24905_v10 }
 0x153   : > { %22299 = vmatpush3.bf16.msra.mxu0 %v24905_v10 }
 0x154   : > { %22445 = vmatprep.subr.bf16.mxu0 %v24889_v5 }
 0x155   : > { %22395 = vmatpush3.bf16.msra.mxu1 %v24905_v10 }
 0x156   : > { %20198 = vmatmul.mubr.f32.vlgmr.msra.gmra.mrb[2].mxu0 %v24393_v32  ;;  %22397 = vmatprep.subr.bf16.mxu1 %v25021_v53 }
 0x157   : > { %22447 = vmatpush3.bf16.msra.mxu0 %v24889_v5  ;;  %20406 = vmatprep.mubr.f32.mxu0 %v24454_v60 }
 0x158   : > { %20330 = vmatmul.mubr.f32.vlgmr.msra.gmra.mrb[2].mxu1 %v24576_v43  ;;  %22449 = vmatprep.subr.bf16.mxu0 %v24905_v10 }
 0x159   : > { %22399 = vmatpush3.bf16.msra.mxu1 %v25021_v53  ;;  %20340 = vmatprep.mubr.f32.mxu1 %v24434_v52 }
 0x15a   : > { %22401 = vmatprep.subr.bf16.mxu1 %v25035_v1 }
 0x15b   : > { %22451 = vmatpush3.bf16.msra.mxu0 %v24905_v10 }
 0x15c   : > { %22453 = vmatprep.subr.bf16.mxu0 %v24921_v19 }
 0x15d   : > { %22403 = vmatpush3.bf16.msra.mxu1 %v25035_v1 }
 0x15e   : > { %22405 = vmatprep.subr.bf16.mxu1 %v25052_v8  ;;  %20407 = vmatmul.mubr.f32.vlgmr.msra.gmra.mrb[4].mxu0 %v24469_v4 }
 0x15f   : > { %22455 = vmatpush3.bf16.msra.mxu0 %v24921_v19  ;;  %20417 = vmatprep.mubr.f32.mxu0 %v24390_v31  ;;  %v25104_v19 = vpack.c.bf16 %v5632_v44, %v5625_v27 }
 0x160   : > { %20341 = vmatmul.mubr.f32.vlgmr.msra.gmra.mrb[2].mxu1 %v24461_v0  ;;  %22457 = vmatprep.subr.bf16.mxu0 %v24928_v21 }
 0x161   : > { %22407 = vmatpush3.bf16.msra.mxu1 %v25052_v8  ;;  %20351 = vmatprep.mubr.f32.mxu1 %v24375_v24 }
 0x162   : > { %22409 = vmatprep.subr.bf16.mxu1 %v25059_v12 }
 0x163   : > { %22459 = vmatpush3.bf16.msra.mxu0 %v24928_v21  ;;  %v18413_v21 = vld [vmem:[%s24336_s23 + $0xa8] sm:$0xff] }
 0x164   : > { %22461 = vmatprep.subr.bf16.mxu0 %v24939_v25 }
 0x165   : > { %22411 = vmatpush3.bf16.msra.mxu1 %v25059_v12 }
 0x166   : > { %22413 = vmatprep.subr.bf16.mxu1 %v25070_v15  ;;  %20418 = vmatmul.mubr.f32.vlgmr.msra.gmra.mrb[4].mxu0 %v24404_v38 }
 0x167   : > { %22463 = vmatpush3.bf16.msra.mxu0 %v24939_v25  ;;  %20428 = vmatprep.mubr.f32.mxu0 %v24402_v37  ;;  %v7127_v25 = vand.u32 4294901760, %v18412_v17 }
 0x168   : > { %20352 = vmatmul.mubr.f32.vlgmr.msra.gmra.mrb[2].mxu1 %v24393_v32  ;;  %22465 = vmatprep.subr.bf16.mxu0 %v24948_v26 }
 0x169   : > { %22415 = vmatpush3.bf16.msra.mxu1 %v25070_v15  ;;  %20362 = vmatprep.mubr.f32.mxu1 %v24388_v30  ;;  %v25201_v49 = vsub.f32 %v18412_v17, %v7127_v25 }
 0x16a   : > { %22417 = vmatprep.subr.bf16.mxu1 %v25079_v13 }
 0x16b   : > { %22467 = vmatpush3.bf16.msra.mxu0 %v24948_v26  ;;  %v7130_v26 = vand.u32 4294901760, %v18413_v21  ;;  %v7218_v33 = vand.u32 4294901760, %v25201_v49 }
 0x16c   : > { %22469 = vmatprep.subr.bf16.mxu0 %v24889_v5 }
 0x16d   : > { %22419 = vmatpush3.bf16.msra.mxu1 %v25079_v13  ;;  %v25203_v28 = vsub.f32 %v18413_v21, %v7130_v26  ;;  %v25221_v14 = vpack.c.bf16 %v7130_v26, %v7127_v25  ;;  %v7219_v20 = vsub.f32 %v25201_v49, %v7218_v33  ;;  %v18418_v25 = vld [vmem:[%s24336_s23 + $0xd0] sm:$0xff]  ;;  %v18419_v26 = vld [vmem:[%s24336_s23 + $0xd8] sm:$0xff] }
 0x16e   : > { %22421 = vmatprep.subr.bf16.mxu1 %v25021_v53  ;;  %20429 = vmatmul.mubr.f32.vlgmr.msra.gmra.mrb[4].mxu0 %v24427_v46 }
 0x16f   : > { %22471 = vmatpush3.bf16.msra.mxu0 %v24889_v5  ;;  %20439 = vmatprep.mubr.f32.mxu0 %v24424_v45  ;;  %v7225_v57 = vand.u32 4294901760, %v25203_v28  ;;  %v7220_v58 = vand.u32 4294901760, %v7219_v20  ;;  %v25271_v6 = vpack.c.bf16 %v25203_v28, %v25201_v49 }
 0x170   : > { %20363 = vmatmul.mubr.f32.vlgmr.msra.gmra.mrb[2].mxu1 %v24410_v40  ;;  %22473 = vmatprep.subr.bf16.mxu0 %v24905_v10 }
 0x171   : > { %22423 = vmatpush3.bf16.msra.mxu1 %v25021_v53  ;;  %20373 = vmatprep.mubr.f32.mxu1 %v24399_v36  ;;  %v7226_v27 = vsub.f32 %v25203_v28, %v7225_v57 }
 0x172   : > { %22425 = vmatprep.subr.bf16.mxu1 %v25035_v1 }
 0x173   : > { %22475 = vmatpush3.bf16.msra.mxu0 %v24905_v10  ;;  %v7227_v61 = vand.u32 4294901760, %v7226_v27 }
 0x174   : > { %22477 = vmatprep.subr.bf16.mxu0 %v24973_v35 }
 0x175   : > { %22427 = vmatpush3.bf16.msra.mxu1 %v25035_v1  ;;  %v25253_v63 = vpack.c.bf16 %v7227_v61, %v7220_v58 }
 0x176   : > { %22429 = vmatprep.subr.bf16.mxu1 %v25104_v19  ;;  %20440 = vmatmul.mubr.f32.vlgmr.msra.gmra.mrb[4].mxu0 %v24439_v54 }
 0x177   : > { %22479 = vmatpush3.bf16.msra.mxu0 %v24973_v35  ;;  %20450 = vmatprep.mubr.f32.mxu0 %v24390_v31  ;;  %v18414_v35 = vld [vmem:[%s24336_s23 + $0xb0] sm:$0xff] }
 0x178   : > { %20374 = vmatmul.mubr.f32.vlgmr.msra.gmra.mrb[2].mxu1 %v24431_v48  ;;  %22481 = vmatprep.subr.bf16.mxu0 %v24986_v42  ;;  %v7133_v41 = vand.u32 4294901760, %v18414_v35 }
 0x179   : > { %22431 = vmatpush3.bf16.msra.mxu1 %v25104_v19  ;;  %20384 = vmatprep.mubr.f32.mxu1 %v24375_v24 }
 0x17a   : > { %22433 = vmatprep.subr.bf16.mxu1 %v25115_v16  ;;  %v25212_v18 = vsub.f32 %v18414_v35, %v7133_v41  ;;  %v8726_v35 = vand.u32 4294901760, %v18418_v25 }
 0x17b   : > { %22483 = vmatpush3.bf16.msra.mxu0 %v24986_v42  ;;  %v7136_v42 = vand.u32 4294901760, %v18415_v23 }
 0x17c   : > { %22485 = vmatprep.subr.bf16.mxu0 %v24889_v5  ;;  %v7232_v44 = vand.u32 4294901760, %v25212_v18 }
 0x17d   : > { %22435 = vmatpush3.bf16.msra.mxu1 %v25115_v16  ;;  %v25214_v22 = vsub.f32 %v18415_v23, %v7136_v42  ;;  %v25237_v34 = vpack.c.bf16 %v7136_v42, %v7133_v41  ;;  %v8729_v23 = vand.u32 4294901760, %v18419_v26 }
 0x17e   : > { %22437 = vmatprep.subr.bf16.mxu1 %v25021_v53  ;;  %20451 = vmatmul.mubr.f32.vlgmr.msra.gmra.mrb[4].mxu0 %v24404_v38  ;;  %v7233_v62 = vsub.f32 %v25212_v18, %v7232_v44 }
 0x17f   : > { %22487 = vmatpush3.bf16.msra.mxu0 %v24889_v5  ;;  %20461 = vmatprep.mubr.f32.mxu0 %v24390_v31  ;;  %v7239_v29 = vand.u32 4294901760, %v25214_v22  ;;  %v25280_v7 = vpack.c.bf16 %v25214_v22, %v25212_v18 }
 0x180   : > { %20385 = vmatmul.mubr.f32.vlgmr.msra.gmra.mrb[2].mxu1 %v24393_v32  ;;  %22489 = vmatprep.subr.bf16.mxu0 %v24905_v10  ;;  %v7234_v2 = vand.u32 4294901760, %v7233_v62 }
 0x181   : > { %22439 = vmatpush3.bf16.msra.mxu1 %v25021_v53  ;;  %20395 = vmatprep.mubr.f32.mxu1 %v24375_v24 }
 0x182   : > { %22441 = vmatprep.subr.bf16.mxu1 %v25035_v1 }
 0x183   : > { %22491 = vmatpush3.bf16.msra.mxu0 %v24905_v10 }
 0x184   : > { %22493 = vmatprep.subr.bf16.mxu0 %v25021_v53 }
 0x185   : > { %22443 = vmatpush3.bf16.msra.mxu1 %v25035_v1 }
 0x186   : > { %20462 = vmatmul.mubr.f32.vlgmr.msra.gmra.mrb[4].mxu0 %v24404_v38  ;;  %22589 = vmatprep.subr.bf16.mxu1 %v25021_v53 }
 0x187   : > { %22495 = vmatpush3.bf16.msra.mxu0 %v25021_v53  ;;  %20472 = vmatprep.mubr.f32.mxu0 %v24603_v56 }
 0x188   : > { %20396 = vmatmul.mubr.f32.vlgmr.msra.gmra.mrb[2].mxu1 %v24393_v32  ;;  %22497 = vmatprep.subr.bf16.mxu0 %v25035_v1 }
 0x189   : > { %22591 = vmatpush3.bf16.msra.mxu1 %v25021_v53  ;;  %20604 = vmatprep.mubr.f32.mxu1 %v24454_v60 }
 0x18a   : > { %22593 = vmatprep.subr.bf16.mxu1 %v25035_v1 }
 0x18b   : > { %22499 = vmatpush3.bf16.msra.mxu0 %v25035_v1 }
 0x18c   : > { %22501 = vmatprep.subr.bf16.mxu0 %v25052_v8 }
 0x18d   : > { %22595 = vmatpush3.bf16.msra.mxu1 %v25035_v1 }
 0x18e   : > { %20473 = vmatmul.mubr.f32.vlgmr.msra.gmra.mrb[4].mxu0 %v24618_v59  ;;  %22597 = vmatprep.subr.bf16.mxu1 %v25052_v8 }
 0x18f   : > { %22503 = vmatpush3.bf16.msra.mxu0 %v25052_v8  ;;  %20483 = vmatprep.mubr.f32.mxu0 %v24553_v50 }
 0x190   : > { %20605 = vmatmul.mubr.f32.vlgmr.msra.gmra.mrb[4].mxu1 %v24469_v4  ;;  %22505 = vmatprep.subr.bf16.mxu0 %v25059_v12 }
 0x191   : > { %22599 = vmatpush3.bf16.msra.mxu1 %v25052_v8  ;;  %20615 = vmatprep.mubr.f32.mxu1 %v24390_v31 }
 0x192   : > { %22601 = vmatprep.subr.bf16.mxu1 %v25059_v12 }
 0x193   : > { %22507 = vmatpush3.bf16.msra.mxu0 %v25059_v12 }
 0x194   : > { %22509 = vmatprep.subr.bf16.mxu0 %v25070_v15 }
 0x195   : > { %22603 = vmatpush3.bf16.msra.mxu1 %v25059_v12 }
 0x196   : > { %20484 = vmatmul.mubr.f32.vlgmr.msra.gmra.mrb[4].mxu0 %v24576_v43  ;;  %22605 = vmatprep.subr.bf16.mxu1 %v25070_v15 }
 0x197   : > { %22511 = vmatpush3.bf16.msra.mxu0 %v25070_v15  ;;  %20494 = vmatprep.mubr.f32.mxu0 %v24568_v39 }
 0x198   : > { %20616 = vmatmul.mubr.f32.vlgmr.msra.gmra.mrb[4].mxu1 %v24404_v38  ;;  %22513 = vmatprep.subr.bf16.mxu0 %v25079_v13 }
 0x199   : > { %22607 = vmatpush3.bf16.msra.mxu1 %v25070_v15  ;;  %v25170_v5 = vpop.f32.mrb[0].mxu0  ;;  %20626 = vmatprep.mubr.f32.mxu1 %v24402_v37  ;;  %v25313_v15 = vpack.c.bf16 %v7225_v57, %v7218_v33  ;;  %v25351_v33 = vsub.f32 %v18418_v25, %v8726_v35  ;;  %v25353_v57 = vsub.f32 %v18419_v26, %v8729_v23 }
 0x19a   : > { %v25173_v10 = vpop.f32.mrb[1].mxu0  ;;  %22609 = vmatprep.subr.bf16.mxu1 %v25079_v13 }
 0x19b   : > { %22515 = vmatpush3.bf16.msra.mxu0 %v25079_v13  ;;  %v8825_v27 = vand.u32 4294901760, %v25351_v33 }
 0x19c   : > { %22517 = vmatprep.subr.bf16.mxu0 %v25021_v53 }
 0x19d   : > { %22611 = vmatpush3.bf16.msra.mxu1 %v25079_v13  ;;  %v18416_v13 = vld [vmem:[%s24336_s23 + $0xc0] sm:$0xff]  ;;  %v8826_v62 = vsub.f32 %v25351_v33, %v8825_v27 }
 0x19e   : > { %20495 = vmatmul.mubr.f32.vlgmr.msra.gmra.mrb[4].mxu0 %v24586_v51  ;;  %22613 = vmatprep.subr.bf16.mxu1 %v25021_v53  ;;  %v8720_v17 = vand.u32 4294901760, %v18416_v13 }
 0x19f   : > { %22519 = vmatpush3.bf16.msra.mxu0 %v25021_v53  ;;  %20505 = vmatprep.mubr.f32.mxu0 %v24581_v47 }
 0x1a0   : > { %20627 = vmatmul.mubr.f32.vlgmr.msra.gmra.mrb[4].mxu1 %v24427_v46  ;;  %22521 = vmatprep.subr.bf16.mxu0 %v25035_v1  ;;  %v25340_v41 = vsub.f32 %v18416_v13, %v8720_v17 }
 0x1a1   : > { %22615 = vmatpush3.bf16.msra.mxu1 %v25021_v53  ;;  %20637 = vmatprep.mubr.f32.mxu1 %v24424_v45 }
 0x1a2   : > { %22617 = vmatprep.subr.bf16.mxu1 %v25035_v1  ;;  %v8811_v49 = vand.u32 4294901760, %v25340_v41 }
 0x1a3   : > { %22523 = vmatpush3.bf16.msra.mxu0 %v25035_v1 }
 0x1a4   : > { %22525 = vmatprep.subr.bf16.mxu0 %v25104_v19 }
 0x1a5   : > { %22619 = vmatpush3.bf16.msra.mxu1 %v25035_v1 }
 0x1a6   : > { %20506 = vmatmul.mubr.f32.vlgmr.msra.gmra.mrb[4].mxu0 %v24600_v55  ;;  %22621 = vmatprep.subr.bf16.mxu1 %v25104_v19 }
 0x1a7   : > { %22527 = vmatpush3.bf16.msra.mxu0 %v25104_v19  ;;  %20516 = vmatprep.mubr.f32.mxu0 %v24553_v50 }
 0x1a8   : > { %20638 = vmatmul.mubr.f32.vlgmr.msra.gmra.mrb[4].mxu1 %v24439_v54  ;;  %22529 = vmatprep.subr.bf16.mxu0 %v25115_v16 }
 0x1a9   : > { %22623 = vmatpush3.bf16.msra.mxu1 %v25104_v19  ;;  %20648 = vmatprep.mubr.f32.mxu1 %v24390_v31  ;;  %v18417_v19 = vld [vmem:[%s24336_s23 + $0xc8] sm:$0xff] }
 0x1aa   : > { %22625 = vmatprep.subr.bf16.mxu1 %v25115_v16  ;;  %v8723_v21 = vand.u32 4294901760, %v18417_v19 }
 0x1ab   : > { %22531 = vmatpush3.bf16.msra.mxu0 %v25115_v16 }
 0x1ac   : > { %22533 = vmatprep.subr.bf16.mxu0 %v25021_v53  ;;  %v25342_v42 = vsub.f32 %v18417_v19, %v8723_v21  ;;  %v25361_v18 = vpack.c.bf16 %v8723_v21, %v8720_v17 }
 0x1ad   : > { %22627 = vmatpush3.bf16.msra.mxu1 %v25115_v16  ;;  %v25326_v16 = vpack.c.bf16 %v7239_v29, %v7232_v44  ;;  %v8832_v44 = vand.u32 4294901760, %v25353_v57 }
 0x1ae   : > { %20517 = vmatmul.mubr.f32.vlgmr.msra.gmra.mrb[4].mxu0 %v24576_v43  ;;  %22629 = vmatprep.subr.bf16.mxu1 %v25021_v53  ;;  %v8818_v28 = vand.u32 4294901760, %v25342_v42  ;;  %v25410_v17 = vpack.c.bf16 %v25342_v42, %v25340_v41 }
 0x1af   : > { %22535 = vmatpush3.bf16.msra.mxu0 %v25021_v53  ;;  %20527 = vmatprep.mubr.f32.mxu0 %v24553_v50 }
 0x1b0   : > { %20649 = vmatmul.mubr.f32.vlgmr.msra.gmra.mrb[4].mxu1 %v24404_v38  ;;  %22537 = vmatprep.subr.bf16.mxu0 %v25035_v1  ;;  %v8819_v20 = vsub.f32 %v25342_v42, %v8818_v28 }
 0x1b1   : > { %22631 = vmatpush3.bf16.msra.mxu1 %v25021_v53  ;;  %20659 = vmatprep.mubr.f32.mxu1 %v24390_v31  ;;  %v7240_v53 = vsub.f32 %v25214_v22, %v7239_v29  ;;  %v8812_v22 = vsub.f32 %v25340_v41, %v8811_v49  ;;  %v25375_v29 = vpack.c.bf16 %v8729_v23, %v8726_v35 }
 0x1b2   : > { %22633 = vmatprep.subr.bf16.mxu1 %v25035_v1  ;;  %v8820_v61 = vand.u32 4294901760, %v8819_v20 }
 0x1b3   : > { %22539 = vmatpush3.bf16.msra.mxu0 %v25035_v1  ;;  %v7241_v3 = vand.u32 4294901760, %v7240_v53  ;;  %v8813_v58 = vand.u32 4294901760, %v8812_v22  ;;  %v8833_v53 = vsub.f32 %v25353_v57, %v8832_v44 }
 0x1b4   : > { %22541 = vmatprep.subr.bf16.mxu0 %v25221_v14 }
 0x1b5   : > { %22635 = vmatpush3.bf16.msra.mxu1 %v25035_v1  ;;  %v25260_v1 = vpack.c.bf16 %v7241_v3, %v7234_v2  ;;  %v25392_v2 = vpack.c.bf16 %v8820_v61, %v8813_v58  ;;  %v8827_v3 = vand.u32 4294901760, %v8826_v62  ;;  %v8834_v13 = vand.u32 4294901760, %v8833_v53 }
 0x1b6   : > { %20528 = vmatmul.mubr.f32.vlgmr.msra.gmra.mrb[4].mxu0 %v24576_v43  ;;  %22637 = vmatprep.subr.bf16.mxu1 %v25221_v14 }
 0x1b7   : > { %22543 = vmatpush3.bf16.msra.mxu0 %v25221_v14  ;;  %20538 = vmatprep.mubr.f32.mxu0 %v24434_v52  ;;  %v25399_v19 = vpack.c.bf16 %v8834_v13, %v8827_v3 }
 0x1b8   : > { %20660 = vmatmul.mubr.f32.vlgmr.msra.gmra.mrb[4].mxu1 %v24404_v38  ;;  %22545 = vmatprep.subr.bf16.mxu0 %v25237_v34 }
 0x1b9   : > { %22639 = vmatpush3.bf16.msra.mxu1 %v25221_v14  ;;  %20670 = vmatprep.mubr.f32.mxu1 %v24603_v56 }
 0x1ba   : > { %22641 = vmatprep.subr.bf16.mxu1 %v25237_v34 }
 0x1bb   : > { %22547 = vmatpush3.bf16.msra.mxu0 %v25237_v34 }
 0x1bc   : > { %22549 = vmatprep.subr.bf16.mxu0 %v25253_v63 }
 0x1bd   : > { %22643 = vmatpush3.bf16.msra.mxu1 %v25237_v34 }
 0x1be   : > { %20539 = vmatmul.mubr.f32.vlgmr.msra.gmra.mrb[4].mxu0 %v24461_v0  ;;  %22645 = vmatprep.subr.bf16.mxu1 %v25253_v63 }
 0x1bf   : > { %22551 = vmatpush3.bf16.msra.mxu0 %v25253_v63  ;;  %20549 = vmatprep.mubr.f32.mxu0 %v24375_v24 }
 0x1c0   : > { %20671 = vmatmul.mubr.f32.vlgmr.msra.gmra.mrb[4].mxu1 %v24618_v59  ;;  %22553 = vmatprep.subr.bf16.mxu0 %v25260_v1 }
 0x1c1   : > { %22647 = vmatpush3.bf16.msra.mxu1 %v25253_v63  ;;  %20681 = vmatprep.mubr.f32.mxu1 %v24553_v50 }
 0x1c2   : > { %22649 = vmatprep.subr.bf16.mxu1 %v25260_v1 }
 0x1c3   : > { %22555 = vmatpush3.bf16.msra.mxu0 %v25260_v1 }
 0x1c4   : > { %22557 = vmatprep.subr.bf16.mxu0 %v25271_v6 }
 0x1c5   : > { %22651 = vmatpush3.bf16.msra.mxu1 %v25260_v1 }
 0x1c6   : > { %20550 = vmatmul.mubr.f32.vlgmr.msra.gmra.mrb[4].mxu0 %v24393_v32  ;;  %22653 = vmatprep.subr.bf16.mxu1 %v25271_v6 }
 0x1c7   : > { %22559 = vmatpush3.bf16.msra.mxu0 %v25271_v6  ;;  %20560 = vmatprep.mubr.f32.mxu0 %v24388_v30 }
 0x1c8   : > { %20682 = vmatmul.mubr.f32.vlgmr.msra.gmra.mrb[4].mxu1 %v24576_v43  ;;  %22561 = vmatprep.subr.bf16.mxu0 %v25280_v7 }
 0x1c9   : > { %22655 = vmatpush3.bf16.msra.mxu1 %v25271_v6  ;;  %20692 = vmatprep.mubr.f32.mxu1 %v24568_v39 }
 0x1ca   : > { %22657 = vmatprep.subr.bf16.mxu1 %v25280_v7 }
 0x1cb   : > { %v25292_v8 = vpop.f32.mrb[0].mxu1  ;;  %22563 = vmatpush3.bf16.msra.mxu0 %v25280_v7 }
 0x1cc   : > { %v2878_v9 = vmax.f32 %v25170_v5, %v25292_v8  ;;  %v25297_v11 = vpop.f32.mrb[1].mxu1  ;;  %22565 = vmatprep.subr.bf16.mxu0 %v25221_v14  ;;  %v18420_v5 = vld [vmem:[%s24336_s23 + $0xe0] sm:$0xff] }
 0x1cd   : > { %v2877_v12 = vmax.f32 %v25173_v10, %v25297_v11  ;;  %22659 = vmatpush3.bf16.msra.mxu1 %v25280_v7  ;;  %v18421_v10 = vld [vmem:[%s24336_s23 + $0xe8] sm:$0xff]  ;;  %v10313_v8 = vand.u32 4294901760, %v18420_v5  ;;  %v18422_v11 = vld [vmem:[%s24336_s23 + $0xf0] sm:$0xff] }
 0x1ce   : > { %20561 = vmatmul.mubr.f32.vlgmr.msra.gmra.mrb[4].mxu0 %v24410_v40  ;;  %22661 = vmatprep.subr.bf16.mxu1 %v25221_v14 }
 0x1cf   : > { %22567 = vmatpush3.bf16.msra.mxu0 %v25221_v14  ;;  %20571 = vmatprep.mubr.f32.mxu0 %v24399_v36  ;;  %v25547_v25 = vsub.f32 %v18420_v5, %v10313_v8 }
 0x1d0   : > { %20693 = vmatmul.mubr.f32.vlgmr.msra.gmra.mrb[4].mxu1 %v24586_v51  ;;  %22569 = vmatprep.subr.bf16.mxu0 %v25237_v34 }
 0x1d1   : > { %22663 = vmatpush3.bf16.msra.mxu1 %v25221_v14  ;;  %20703 = vmatprep.mubr.f32.mxu1 %v24581_v47  ;;  %v10404_v35 = vand.u32 4294901760, %v25547_v25 }
 0x1d2   : > { %22665 = vmatprep.subr.bf16.mxu1 %v25237_v34 }
 0x1d3   : > { %22571 = vmatpush3.bf16.msra.mxu0 %v25237_v34 }
 0x1d4   : > { %22573 = vmatprep.subr.bf16.mxu0 %v25313_v15 }
 0x1d5   : > { %22667 = vmatpush3.bf16.msra.mxu1 %v25237_v34 }
 0x1d6   : > { %20572 = vmatmul.mubr.f32.vlgmr.msra.gmra.mrb[4].mxu0 %v24431_v48  ;;  %22669 = vmatprep.subr.bf16.mxu1 %v25313_v15 }
 0x1d7   : > { %22575 = vmatpush3.bf16.msra.mxu0 %v25313_v15  ;;  %20582 = vmatprep.mubr.f32.mxu0 %v24375_v24 }
 0x1d8   : > { %20704 = vmatmul.mubr.f32.vlgmr.msra.gmra.mrb[4].mxu1 %v24600_v55  ;;  %22577 = vmatprep.subr.bf16.mxu0 %v25326_v16 }
 0x1d9   : > { %22671 = vmatpush3.bf16.msra.mxu1 %v25313_v15  ;;  %20714 = vmatprep.mubr.f32.mxu1 %v24553_v50 }
 0x1da   : > { %22673 = vmatprep.subr.bf16.mxu1 %v25326_v16 }
 0x1db   : > { %22579 = vmatpush3.bf16.msra.mxu0 %v25326_v16 }
 0x1dc   : > { %22581 = vmatprep.subr.bf16.mxu0 %v25221_v14 }
 0x1dd   : > { %22675 = vmatpush3.bf16.msra.mxu1 %v25326_v16 }
 0x1de   : > { %20583 = vmatmul.mubr.f32.vlgmr.msra.gmra.mrb[4].mxu0 %v24393_v32  ;;  %22677 = vmatprep.subr.bf16.mxu1 %v25221_v14 }
 0x1df   : > { %22583 = vmatpush3.bf16.msra.mxu0 %v25221_v14  ;;  %20593 = vmatprep.mubr.f32.mxu0 %v24375_v24 }
 0x1e0   : > { %20715 = vmatmul.mubr.f32.vlgmr.msra.gmra.mrb[4].mxu1 %v24576_v43  ;;  %22585 = vmatprep.subr.bf16.mxu0 %v25237_v34 }
 0x1e1   : > { %22679 = vmatpush3.bf16.msra.mxu1 %v25221_v14  ;;  %20725 = vmatprep.mubr.f32.mxu1 %v24553_v50 }
 0x1e2   : > { %22681 = vmatprep.subr.bf16.mxu1 %v25237_v34 }
 0x1e3   : > { %22587 = vmatpush3.bf16.msra.mxu0 %v25237_v34 }
 0x1e4   : > { %22733 = vmatprep.subr.bf16.mxu0 %v25221_v14 }
 0x1e5   : > { %22683 = vmatpush3.bf16.msra.mxu1 %v25237_v34 }
 0x1e6   : > { %20594 = vmatmul.mubr.f32.vlgmr.msra.gmra.mrb[4].mxu0 %v24393_v32  ;;  %22685 = vmatprep.subr.bf16.mxu1 %v25361_v18 }
 0x1e7   : > { %22735 = vmatpush3.bf16.msra.mxu0 %v25221_v14  ;;  %20802 = vmatprep.mubr.f32.mxu0 %v24454_v60 }
 0x1e8   : > { %20726 = vmatmul.mubr.f32.vlgmr.msra.gmra.mrb[4].mxu1 %v24576_v43  ;;  %22737 = vmatprep.subr.bf16.mxu0 %v25237_v34 }
 0x1e9   : > { %22687 = vmatpush3.bf16.msra.mxu1 %v25361_v18  ;;  %20736 = vmatprep.mubr.f32.mxu1 %v24434_v52 }
 0x1ea   : > { %22689 = vmatprep.subr.bf16.mxu1 %v25375_v29 }
 0x1eb   : > { %22739 = vmatpush3.bf16.msra.mxu0 %v25237_v34 }
 0x1ec   : > { %22741 = vmatprep.subr.bf16.mxu0 %v25253_v63 }
 0x1ed   : > { %22691 = vmatpush3.bf16.msra.mxu1 %v25375_v29 }
 0x1ee   : > { %22693 = vmatprep.subr.bf16.mxu1 %v25392_v2  ;;  %20803 = vmatmul.mubr.f32.vlgmr.msra.gmra.mrb[6].mxu0 %v24469_v4 }
 0x1ef   : > { %22743 = vmatpush3.bf16.msra.mxu0 %v25253_v63  ;;  %20813 = vmatprep.mubr.f32.mxu0 %v24390_v31  ;;  %v25419_v63 = vpack.c.bf16 %v25353_v57, %v25351_v33 }
 0x1f0   : > { %20737 = vmatmul.mubr.f32.vlgmr.msra.gmra.mrb[4].mxu1 %v24461_v0  ;;  %22745 = vmatprep.subr.bf16.mxu0 %v25260_v1 }
 0x1f1   : > { %22695 = vmatpush3.bf16.msra.mxu1 %v25392_v2  ;;  %20747 = vmatprep.mubr.f32.mxu1 %v24375_v24 }
 0x1f2   : > { %22697 = vmatprep.subr.bf16.mxu1 %v25399_v19 }
 0x1f3   : > { %22747 = vmatpush3.bf16.msra.mxu0 %v25260_v1  ;;  %v25444_v1 = vpack.c.bf16 %v8818_v28, %v8811_v49  ;;  %v10405_v28 = vsub.f32 %v25547_v25, %v10404_v35 }
 0x1f4   : > { %22749 = vmatprep.subr.bf16.mxu0 %v25271_v6 }
 0x1f5   : > { %22699 = vmatpush3.bf16.msra.mxu1 %v25399_v19 }
 0x1f6   : > { %22701 = vmatprep.subr.bf16.mxu1 %v25410_v17  ;;  %20814 = vmatmul.mubr.f32.vlgmr.msra.gmra.mrb[6].mxu0 %v24404_v38 }
 0x1f7   : > { %22751 = vmatpush3.bf16.msra.mxu0 %v25271_v6  ;;  %20824 = vmatprep.mubr.f32.mxu0 %v24402_v37  ;;  %v25455_v6 = vpack.c.bf16 %v8832_v44, %v8825_v27  ;;  %v10406_v27 = vand.u32 4294901760, %v10405_v28 }
 0x1f8   : > { %20748 = vmatmul.mubr.f32.vlgmr.msra.gmra.mrb[4].mxu1 %v24393_v32  ;;  %22753 = vmatprep.subr.bf16.mxu0 %v25280_v7 }
 0x1f9   : > { %22703 = vmatpush3.bf16.msra.mxu1 %v25410_v17  ;;  %20758 = vmatprep.mubr.f32.mxu1 %v24388_v30 }
 0x1fa   : > { %22705 = vmatprep.subr.bf16.mxu1 %v25419_v63 }
 0x1fb   : > { %22755 = vmatpush3.bf16.msra.mxu0 %v25280_v7 }
 0x1fc   : > { %22757 = vmatprep.subr.bf16.mxu0 %v25221_v14 }
 0x1fd   : > { %22707 = vmatpush3.bf16.msra.mxu1 %v25419_v63 }
 0x1fe   : > { %22709 = vmatprep.subr.bf16.mxu1 %v25361_v18  ;;  %20825 = vmatmul.mubr.f32.vlgmr.msra.gmra.mrb[6].mxu0 %v24427_v46 }
 0x1ff   : > { %22759 = vmatpush3.bf16.msra.mxu0 %v25221_v14  ;;  %20835 = vmatprep.mubr.f32.mxu0 %v24424_v45 }
 0x200   : > { %20759 = vmatmul.mubr.f32.vlgmr.msra.gmra.mrb[4].mxu1 %v24410_v40  ;;  %22761 = vmatprep.subr.bf16.mxu0 %v25237_v34 }
 0x201   : > { %22711 = vmatpush3.bf16.msra.mxu1 %v25361_v18  ;;  %20769 = vmatprep.mubr.f32.mxu1 %v24399_v36 }
 0x202   : > { %22713 = vmatprep.subr.bf16.mxu1 %v25375_v29 }
 0x203   : > { %22763 = vmatpush3.bf16.msra.mxu0 %v25237_v34 }
 0x204   : > { %22765 = vmatprep.subr.bf16.mxu0 %v25313_v15 }
 0x205   : > { %22715 = vmatpush3.bf16.msra.mxu1 %v25375_v29 }
 0x206   : > { %22717 = vmatprep.subr.bf16.mxu1 %v25444_v1  ;;  %20836 = vmatmul.mubr.f32.vlgmr.msra.gmra.mrb[6].mxu0 %v24439_v54 }
 0x207   : > { %22767 = vmatpush3.bf16.msra.mxu0 %v25313_v15  ;;  %20846 = vmatprep.mubr.f32.mxu0 %v24390_v31 }
 0x208   : > { %20770 = vmatmul.mubr.f32.vlgmr.msra.gmra.mrb[4].mxu1 %v24431_v48  ;;  %22769 = vmatprep.subr.bf16.mxu0 %v25326_v16 }
 0x209   : > { %22719 = vmatpush3.bf16.msra.mxu1 %v25444_v1  ;;  %20780 = vmatprep.mubr.f32.mxu1 %v24375_v24 }
 0x20a   : > { %22721 = vmatprep.subr.bf16.mxu1 %v25455_v6 }
 0x20b   : > { %22771 = vmatpush3.bf16.msra.mxu0 %v25326_v16  ;;  %v10319_v16 = vand.u32 4294901760, %v18422_v11 }
 0x20c   : > { %22773 = vmatprep.subr.bf16.mxu0 %v25221_v14 }
 0x20d   : > { %22723 = vmatpush3.bf16.msra.mxu1 %v25455_v6  ;;  %v25558_v41 = vsub.f32 %v18422_v11, %v10319_v16 }
 0x20e   : > { %22725 = vmatprep.subr.bf16.mxu1 %v25361_v18  ;;  %20847 = vmatmul.mubr.f32.vlgmr.msra.gmra.mrb[6].mxu0 %v24404_v38 }
 0x20f   : > { %22775 = vmatpush3.bf16.msra.mxu0 %v25221_v14  ;;  %20857 = vmatprep.mubr.f32.mxu0 %v24390_v31  ;;  %v10418_v57 = vand.u32 4294901760, %v25558_v41 }
 0x210   : > { %20781 = vmatmul.mubr.f32.vlgmr.msra.gmra.mrb[4].mxu1 %v24393_v32  ;;  %22777 = vmatprep.subr.bf16.mxu0 %v25237_v34 }
 0x211   : > { %22727 = vmatpush3.bf16.msra.mxu1 %v25361_v18  ;;  %20791 = vmatprep.mubr.f32.mxu1 %v24375_v24  ;;  %v10419_v58 = vsub.f32 %v25558_v41, %v10418_v57 }
 0x212   : > { %22729 = vmatprep.subr.bf16.mxu1 %v25375_v29 }
 0x213   : > { %22779 = vmatpush3.bf16.msra.mxu0 %v25237_v34  ;;  %v10420_v62 = vand.u32 4294901760, %v10419_v58 }
 0x214   : > { %22781 = vmatprep.subr.bf16.mxu0 %v25361_v18 }
 0x215   : > { %22731 = vmatpush3.bf16.msra.mxu1 %v25375_v29 }
 0x216   : > { %20858 = vmatmul.mubr.f32.vlgmr.msra.gmra.mrb[6].mxu0 %v24404_v38  ;;  %22877 = vmatprep.subr.bf16.mxu1 %v25361_v18 }
 0x217   : > { %22783 = vmatpush3.bf16.msra.mxu0 %v25361_v18  ;;  %20868 = vmatprep.mubr.f32.mxu0 %v24603_v56 }
 0x218   : > { %20792 = vmatmul.mubr.f32.vlgmr.msra.gmra.mrb[4].mxu1 %v24393_v32  ;;  %22785 = vmatprep.subr.bf16.mxu0 %v25375_v29 }
 0x219   : > { %22879 = vmatpush3.bf16.msra.mxu1 %v25361_v18  ;;  %21000 = vmatprep.mubr.f32.mxu1 %v24454_v60 }
 0x21a   : > { %22881 = vmatprep.subr.bf16.mxu1 %v25375_v29 }
 0x21b   : > { %22787 = vmatpush3.bf16.msra.mxu0 %v25375_v29 }
 0x21c   : > { %22789 = vmatprep.subr.bf16.mxu0 %v25392_v2 }
 0x21d   : > { %22883 = vmatpush3.bf16.msra.mxu1 %v25375_v29 }
 0x21e   : > { %20869 = vmatmul.mubr.f32.vlgmr.msra.gmra.mrb[6].mxu0 %v24618_v59  ;;  %22885 = vmatprep.subr.bf16.mxu1 %v25392_v2 }
 0x21f   : > { %22791 = vmatpush3.bf16.msra.mxu0 %v25392_v2  ;;  %20879 = vmatprep.mubr.f32.mxu0 %v24553_v50 }
 0x220   : > { %21001 = vmatmul.mubr.f32.vlgmr.msra.gmra.mrb[6].mxu1 %v24469_v4  ;;  %22793 = vmatprep.subr.bf16.mxu0 %v25399_v19 }
 0x221   : > { %22887 = vmatpush3.bf16.msra.mxu1 %v25392_v2  ;;  %21011 = vmatprep.mubr.f32.mxu1 %v24390_v31 }
 0x222   : > { %22889 = vmatprep.subr.bf16.mxu1 %v25399_v19 }
 0x223   : > { %22795 = vmatpush3.bf16.msra.mxu0 %v25399_v19 }
 0x224   : > { %22797 = vmatprep.subr.bf16.mxu0 %v25410_v17 }
 0x225   : > { %22891 = vmatpush3.bf16.msra.mxu1 %v25399_v19 }
 0x226   : > { %20880 = vmatmul.mubr.f32.vlgmr.msra.gmra.mrb[6].mxu0 %v24576_v43  ;;  %22893 = vmatprep.subr.bf16.mxu1 %v25410_v17 }
 0x227   : > { %22799 = vmatpush3.bf16.msra.mxu0 %v25410_v17  ;;  %20890 = vmatprep.mubr.f32.mxu0 %v24568_v39 }
 0x228   : > { %21012 = vmatmul.mubr.f32.vlgmr.msra.gmra.mrb[6].mxu1 %v24404_v38  ;;  %22801 = vmatprep.subr.bf16.mxu0 %v25419_v63 }
 0x229   : > { %22895 = vmatpush3.bf16.msra.mxu1 %v25410_v17  ;;  %v20199_v14 = vpop.f32.mrb[2].mxu0  ;;  %21022 = vmatprep.mubr.f32.mxu1 %v24402_v37 }
 0x22a   : > { %v25514_v34 = vmax.f32 %v2878_v9, %v20199_v14  ;;  %v4458_v7 = vpop.f32.mrb[3].mxu0  ;;  %22897 = vmatprep.subr.bf16.mxu1 %v25419_v63  ;;  %v10316_v9 = vand.u32 4294901760, %v18421_v10  ;;  %v18425_v14 = vld [vmem:[%s24336_s23 + $0x108] sm:$0xff] }
 0x22b   : > { %v25520_v15 = vmax.f32 %v2877_v12, %v4458_v7  ;;  %22803 = vmatpush3.bf16.msra.mxu0 %v25419_v63  ;;  %v18423_v12 = vld [vmem:[%s24336_s23 + $0xf8] sm:$0xff] }
 0x22c   : > { %22805 = vmatprep.subr.bf16.mxu0 %v25361_v18  ;;  %v10322_v21 = vand.u32 4294901760, %v18423_v12  ;;  %v25549_v26 = vsub.f32 %v18421_v10, %v10316_v9  ;;  %v25567_v49 = vpack.c.bf16 %v10316_v9, %v10313_v8  ;;  %v11909_v10 = vand.u32 4294901760, %v18425_v14  ;;  %v18426_v8 = vld [vmem:[%s24336_s23 + $0x110] sm:$0xff]  ;;  %v18427_v9 = vld [vmem:[%s24336_s23 + $0x118] sm:$0xff] }
 0x22d   : > { %22899 = vmatpush3.bf16.msra.mxu1 %v25419_v63  ;;  %v11912_v11 = vand.u32 4294901760, %v18426_v8 }
 0x22e   : > { %20891 = vmatmul.mubr.f32.vlgmr.msra.gmra.mrb[6].mxu0 %v24586_v51  ;;  %22901 = vmatprep.subr.bf16.mxu1 %v25361_v18  ;;  %v10411_v23 = vand.u32 4294901760, %v25549_v26  ;;  %v25560_v42 = vsub.f32 %v18423_v12, %v10322_v21  ;;  %v25583_v20 = vpack.c.bf16 %v10322_v21, %v10319_v16  ;;  %v25617_v2 = vpack.c.bf16 %v25549_v26, %v25547_v25 }
 0x22f   : > { %22807 = vmatpush3.bf16.msra.mxu0 %v25361_v18  ;;  %20901 = vmatprep.mubr.f32.mxu0 %v24581_v47  ;;  %v11915_v12 = vand.u32 4294901760, %v18427_v9  ;;  %v25688_v21 = vsub.f32 %v18425_v14, %v11909_v10 }
 0x230   : > { %21023 = vmatmul.mubr.f32.vlgmr.msra.gmra.mrb[6].mxu1 %v24427_v46  ;;  %22809 = vmatprep.subr.bf16.mxu0 %v25375_v29  ;;  %v10412_v33 = vsub.f32 %v25549_v26, %v10411_v23  ;;  %v10425_v22 = vand.u32 4294901760, %v25560_v42  ;;  %v25626_v3 = vpack.c.bf16 %v25560_v42, %v25558_v41 }
 0x231   : > { %22903 = vmatpush3.bf16.msra.mxu1 %v25361_v18  ;;  %21033 = vmatprep.mubr.f32.mxu1 %v24424_v45  ;;  %v12004_v26 = vand.u32 4294901760, %v25688_v21 }
 0x232   : > { %22905 = vmatprep.subr.bf16.mxu1 %v25375_v29  ;;  %v10413_v44 = vand.u32 4294901760, %v10412_v33  ;;  %v25672_v7 = vpack.c.bf16 %v10425_v22, %v10418_v57 }
 0x233   : > { %22811 = vmatpush3.bf16.msra.mxu0 %v25375_v29  ;;  %v12005_v28 = vsub.f32 %v25688_v21, %v12004_v26 }
 0x234   : > { %22813 = vmatprep.subr.bf16.mxu0 %v25444_v1  ;;  %v25599_v61 = vpack.c.bf16 %v10413_v44, %v10406_v27 }
 0x235   : > { %22907 = vmatpush3.bf16.msra.mxu1 %v25375_v29  ;;  %v12006_v44 = vand.u32 4294901760, %v12005_v28 }
 0x236   : > { %20902 = vmatmul.mubr.f32.vlgmr.msra.gmra.mrb[6].mxu0 %v24600_v55  ;;  %22909 = vmatprep.subr.bf16.mxu1 %v25444_v1 }
 0x237   : > { %22815 = vmatpush3.bf16.msra.mxu0 %v25444_v1  ;;  %20912 = vmatprep.mubr.f32.mxu0 %v24553_v50 }
 0x238   : > { %21034 = vmatmul.mubr.f32.vlgmr.msra.gmra.mrb[6].mxu1 %v24439_v54  ;;  %22817 = vmatprep.subr.bf16.mxu0 %v25455_v6 }
 0x239   : > { %22911 = vmatpush3.bf16.msra.mxu1 %v25444_v1  ;;  %21044 = vmatprep.mubr.f32.mxu1 %v24390_v31  ;;  %v25659_v1 = vpack.c.bf16 %v10411_v23, %v10404_v35  ;;  %v25697_v35 = vsub.f32 %v18426_v8, %v11912_v11  ;;  %v25699_v23 = vsub.f32 %v18427_v9, %v11915_v12 }
 0x23a   : > { %22913 = vmatprep.subr.bf16.mxu1 %v25455_v6 }
 0x23b   : > { %22819 = vmatpush3.bf16.msra.mxu0 %v25455_v6  ;;  %v12011_v33 = vand.u32 4294901760, %v25697_v35  ;;  %v12018_v57 = vand.u32 4294901760, %v25699_v23 }
 0x23c   : > { %22821 = vmatprep.subr.bf16.mxu0 %v25361_v18 }
 0x23d   : > { %22915 = vmatpush3.bf16.msra.mxu1 %v25455_v6  ;;  %v18424_v6 = vld [vmem:[%s24336_s23 + $0x100] sm:$0xff]  ;;  %v12012_v58 = vsub.f32 %v25697_v35, %v12011_v33 }
 0x23e   : > { %20913 = vmatmul.mubr.f32.vlgmr.msra.gmra.mrb[6].mxu0 %v24576_v43  ;;  %22917 = vmatprep.subr.bf16.mxu1 %v25361_v18  ;;  %v11906_v5 = vand.u32 4294901760, %v18424_v6 }
 0x23f   : > { %22823 = vmatpush3.bf16.msra.mxu0 %v25361_v18  ;;  %20923 = vmatprep.mubr.f32.mxu0 %v24553_v50 }
 0x240   : > { %21045 = vmatmul.mubr.f32.vlgmr.msra.gmra.mrb[6].mxu1 %v24404_v38  ;;  %22825 = vmatprep.subr.bf16.mxu0 %v25375_v29  ;;  %v25686_v16 = vsub.f32 %v18424_v6, %v11906_v5  ;;  %v25707_v41 = vpack.c.bf16 %v11909_v10, %v11906_v5 }
 0x241   : > { %22919 = vmatpush3.bf16.msra.mxu1 %v25361_v18  ;;  %21055 = vmatprep.mubr.f32.mxu1 %v24390_v31  ;;  %v10426_v18 = vsub.f32 %v25560_v42, %v10425_v22  ;;  %v25721_v22 = vpack.c.bf16 %v11915_v12, %v11912_v11 }
 0x242   : > { %22921 = vmatprep.subr.bf16.mxu1 %v25375_v29  ;;  %v11997_v25 = vand.u32 4294901760, %v25686_v16  ;;  %v25756_v5 = vpack.c.bf16 %v25688_v21, %v25686_v16 }
 0x243   : > { %22827 = vmatpush3.bf16.msra.mxu0 %v25375_v29  ;;  %v10427_v53 = vand.u32 4294901760, %v10426_v18  ;;  %v12019_v18 = vsub.f32 %v25699_v23, %v12018_v57 }
 0x244   : > { %22829 = vmatprep.subr.bf16.mxu0 %v25567_v49  ;;  %v11998_v42 = vsub.f32 %v25686_v16, %v11997_v25 }
 0x245   : > { %22923 = vmatpush3.bf16.msra.mxu1 %v25375_v29  ;;  %v25606_v29 = vpack.c.bf16 %v10427_v53, %v10420_v62  ;;  %v12013_v53 = vand.u32 4294901760, %v12012_v58  ;;  %v12020_v6 = vand.u32 4294901760, %v12019_v18 }
 0x246   : > { %20924 = vmatmul.mubr.f32.vlgmr.msra.gmra.mrb[6].mxu0 %v24576_v43  ;;  %22925 = vmatprep.subr.bf16.mxu1 %v25567_v49  ;;  %v11999_v27 = vand.u32 4294901760, %v11998_v42 }
 0x247   : > { %22831 = vmatpush3.bf16.msra.mxu0 %v25567_v49  ;;  %20934 = vmatprep.mubr.f32.mxu0 %v24434_v52  ;;  %v25745_v14 = vpack.c.bf16 %v12020_v6, %v12013_v53 }
 0x248   : > { %21056 = vmatmul.mubr.f32.vlgmr.msra.gmra.mrb[6].mxu1 %v24404_v38  ;;  %22833 = vmatprep.subr.bf16.mxu0 %v25583_v20  ;;  %v25738_v62 = vpack.c.bf16 %v12006_v44, %v11999_v27 }
 0x249   : > { %22927 = vmatpush3.bf16.msra.mxu1 %v25567_v49  ;;  %21066 = vmatprep.mubr.f32.mxu1 %v24603_v56 }
 0x24a   : > { %22929 = vmatprep.subr.bf16.mxu1 %v25583_v20 }
 0x24b   : > { %22835 = vmatpush3.bf16.msra.mxu0 %v25583_v20 }
 0x24c   : > { %22837 = vmatprep.subr.bf16.mxu0 %v25599_v61 }
 0x24d   : > { %22931 = vmatpush3.bf16.msra.mxu1 %v25583_v20 }
 0x24e   : > { %20935 = vmatmul.mubr.f32.vlgmr.msra.gmra.mrb[6].mxu0 %v24461_v0  ;;  %22933 = vmatprep.subr.bf16.mxu1 %v25599_v61 }
 0x24f   : > { %22839 = vmatpush3.bf16.msra.mxu0 %v25599_v61  ;;  %20945 = vmatprep.mubr.f32.mxu0 %v24375_v24 }
 0x250   : > { %21067 = vmatmul.mubr.f32.vlgmr.msra.gmra.mrb[6].mxu1 %v24618_v59  ;;  %22841 = vmatprep.subr.bf16.mxu0 %v25606_v29 }
 0x251   : > { %22935 = vmatpush3.bf16.msra.mxu1 %v25599_v61  ;;  %21077 = vmatprep.mubr.f32.mxu1 %v24553_v50 }
 0x252   : > { %22937 = vmatprep.subr.bf16.mxu1 %v25606_v29 }
 0x253   : > { %22843 = vmatpush3.bf16.msra.mxu0 %v25606_v29 }
 0x254   : > { %22845 = vmatprep.subr.bf16.mxu0 %v25617_v2 }
 0x255   : > { %22939 = vmatpush3.bf16.msra.mxu1 %v25606_v29 }
 0x256   : > { %20946 = vmatmul.mubr.f32.vlgmr.msra.gmra.mrb[6].mxu0 %v24393_v32  ;;  %22941 = vmatprep.subr.bf16.mxu1 %v25617_v2 }
 0x257   : > { %22847 = vmatpush3.bf16.msra.mxu0 %v25617_v2  ;;  %20956 = vmatprep.mubr.f32.mxu0 %v24388_v30 }
 0x258   : > { %21078 = vmatmul.mubr.f32.vlgmr.msra.gmra.mrb[6].mxu1 %v24576_v43  ;;  %22849 = vmatprep.subr.bf16.mxu0 %v25626_v3 }
 0x259   : > { %22943 = vmatpush3.bf16.msra.mxu1 %v25617_v2  ;;  %21088 = vmatprep.mubr.f32.mxu1 %v24568_v39 }
 0x25a   : > { %22945 = vmatprep.subr.bf16.mxu1 %v25626_v3 }
 0x25b   : > { %v25638_v13 = vpop.f32.mrb[2].mxu1  ;;  %22851 = vmatpush3.bf16.msra.mxu0 %v25626_v3 }
 0x25c   : > { %v6064_v19 = vmax.f32 %v25514_v34, %v25638_v13  ;;  %v25643_v17 = vpop.f32.mrb[3].mxu1  ;;  %22853 = vmatprep.subr.bf16.mxu0 %v25567_v49  ;;  %v18428_v34 = vld [vmem:[%s24336_s23 + $0x120] sm:$0xff] }
 0x25d   : > { %v6063_v63 = vmax.f32 %v25520_v15, %v25643_v17  ;;  %22947 = vmatpush3.bf16.msra.mxu1 %v25626_v3  ;;  %v18429_v15 = vld [vmem:[%s24336_s23 + $0x128] sm:$0xff]  ;;  %v13501_v13 = vand.u32 4294901760, %v18428_v34  ;;  %v18430_v17 = vld [vmem:[%s24336_s23 + $0x130] sm:$0xff] }
 0x25e   : > { %20957 = vmatmul.mubr.f32.vlgmr.msra.gmra.mrb[6].mxu0 %v24410_v40  ;;  %22949 = vmatprep.subr.bf16.mxu1 %v25567_v49 }
 0x25f   : > { %22855 = vmatpush3.bf16.msra.mxu0 %v25567_v49  ;;  %20967 = vmatprep.mubr.f32.mxu0 %v24399_v36  ;;  %v25893_v8 = vsub.f32 %v18428_v34, %v13501_v13 }
 0x260   : > { %21089 = vmatmul.mubr.f32.vlgmr.msra.gmra.mrb[6].mxu1 %v24586_v51  ;;  %22857 = vmatprep.subr.bf16.mxu0 %v25583_v20 }
 0x261   : > { %22951 = vmatpush3.bf16.msra.mxu1 %v25567_v49  ;;  %21099 = vmatprep.mubr.f32.mxu1 %v24581_v47  ;;  %v13592_v11 = vand.u32 4294901760, %v25893_v8 }
 0x262   : > { %22953 = vmatprep.subr.bf16.mxu1 %v25583_v20 }
 0x263   : > { %22859 = vmatpush3.bf16.msra.mxu0 %v25583_v20 }
 0x264   : > { %22861 = vmatprep.subr.bf16.mxu0 %v25659_v1 }
 0x265   : > { %22955 = vmatpush3.bf16.msra.mxu1 %v25583_v20 }
 0x266   : > { %20968 = vmatmul.mubr.f32.vlgmr.msra.gmra.mrb[6].mxu0 %v24431_v48  ;;  %22957 = vmatprep.subr.bf16.mxu1 %v25659_v1 }
 0x267   : > { %22863 = vmatpush3.bf16.msra.mxu0 %v25659_v1  ;;  %20978 = vmatprep.mubr.f32.mxu0 %v24375_v24 }
 0x268   : > { %21100 = vmatmul.mubr.f32.vlgmr.msra.gmra.mrb[6].mxu1 %v24600_v55  ;;  %22865 = vmatprep.subr.bf16.mxu0 %v25672_v7 }
 0x269   : > { %22959 = vmatpush3.bf16.msra.mxu1 %v25659_v1  ;;  %21110 = vmatprep.mubr.f32.mxu1 %v24553_v50 }
 0x26a   : > { %22961 = vmatprep.subr.bf16.mxu1 %v25672_v7 }
 0x26b   : > { %22867 = vmatpush3.bf16.msra.mxu0 %v25672_v7 }
 0x26c   : > { %22869 = vmatprep.subr.bf16.mxu0 %v25567_v49 }
 0x26d   : > { %22963 = vmatpush3.bf16.msra.mxu1 %v25672_v7 }
 0x26e   : > { %20979 = vmatmul.mubr.f32.vlgmr.msra.gmra.mrb[6].mxu0 %v24393_v32  ;;  %22965 = vmatprep.subr.bf16.mxu1 %v25567_v49 }
 0x26f   : > { %22871 = vmatpush3.bf16.msra.mxu0 %v25567_v49  ;;  %20989 = vmatprep.mubr.f32.mxu0 %v24375_v24 }
 0x270   : > { %21111 = vmatmul.mubr.f32.vlgmr.msra.gmra.mrb[6].mxu1 %v24576_v43  ;;  %22873 = vmatprep.subr.bf16.mxu0 %v25583_v20 }
 0x271   : > { %22967 = vmatpush3.bf16.msra.mxu1 %v25567_v49  ;;  %21121 = vmatprep.mubr.f32.mxu1 %v24553_v50 }
 0x272   : > { %22969 = vmatprep.subr.bf16.mxu1 %v25583_v20 }
 0x273   : > { %22875 = vmatpush3.bf16.msra.mxu0 %v25583_v20 }
 0x274   : > { %23021 = vmatprep.subr.bf16.mxu0 %v25567_v49 }
 0x275   : > { %22971 = vmatpush3.bf16.msra.mxu1 %v25583_v20 }
 0x276   : > { %20990 = vmatmul.mubr.f32.vlgmr.msra.gmra.mrb[6].mxu0 %v24393_v32  ;;  %22973 = vmatprep.subr.bf16.mxu1 %v25707_v41 }
 0x277   : > { %23023 = vmatpush3.bf16.msra.mxu0 %v25567_v49  ;;  %21198 = vmatprep.mubr.f32.mxu0 %v24454_v60 }
 0x278   : > { %21122 = vmatmul.mubr.f32.vlgmr.msra.gmra.mrb[6].mxu1 %v24576_v43  ;;  %23025 = vmatprep.subr.bf16.mxu0 %v25583_v20 }
 0x279   : > { %22975 = vmatpush3.bf16.msra.mxu1 %v25707_v41  ;;  %21132 = vmatprep.mubr.f32.mxu1 %v24434_v52 }
 0x27a   : > { %22977 = vmatprep.subr.bf16.mxu1 %v25721_v22 }
 0x27b   : > { %23027 = vmatpush3.bf16.msra.mxu0 %v25583_v20 }
 0x27c   : > { %23029 = vmatprep.subr.bf16.mxu0 %v25599_v61 }
 0x27d   : > { %22979 = vmatpush3.bf16.msra.mxu1 %v25721_v22 }
 0x27e   : > { %22981 = vmatprep.subr.bf16.mxu1 %v25738_v62  ;;  %21199 = vmatmul.mubr.f32.vlgmr.msra.gmra.mrb[8].mxu0 %v24469_v4 }
 0x27f   : > { %23031 = vmatpush3.bf16.msra.mxu0 %v25599_v61  ;;  %21209 = vmatprep.mubr.f32.mxu0 %v24390_v31  ;;  %v25765_v61 = vpack.c.bf16 %v25699_v23, %v25697_v35 }
 0x280   : > { %21133 = vmatmul.mubr.f32.vlgmr.msra.gmra.mrb[6].mxu1 %v24461_v0  ;;  %23033 = vmatprep.subr.bf16.mxu0 %v25606_v29 }
 0x281   : > { %22983 = vmatpush3.bf16.msra.mxu1 %v25738_v62  ;;  %21143 = vmatprep.mubr.f32.mxu1 %v24375_v24 }
 0x282   : > { %22985 = vmatprep.subr.bf16.mxu1 %v25745_v14 }
 0x283   : > { %23035 = vmatpush3.bf16.msra.mxu0 %v25606_v29  ;;  %v25790_v29 = vpack.c.bf16 %v12004_v26, %v11997_v25  ;;  %v13593_v26 = vsub.f32 %v25893_v8, %v13592_v11 }
 0x284   : > { %23037 = vmatprep.subr.bf16.mxu0 %v25617_v2 }
 0x285   : > { %22987 = vmatpush3.bf16.msra.mxu1 %v25745_v14 }
 0x286   : > { %22989 = vmatprep.subr.bf16.mxu1 %v25756_v5  ;;  %21210 = vmatmul.mubr.f32.vlgmr.msra.gmra.mrb[8].mxu0 %v24404_v38 }
 0x287   : > { %23039 = vmatpush3.bf16.msra.mxu0 %v25617_v2  ;;  %21220 = vmatprep.mubr.f32.mxu0 %v24402_v37  ;;  %v25801_v2 = vpack.c.bf16 %v12018_v57, %v12011_v33  ;;  %v13594_v33 = vand.u32 4294901760, %v13593_v26 }
 0x288   : > { %21144 = vmatmul.mubr.f32.vlgmr.msra.gmra.mrb[6].mxu1 %v24393_v32  ;;  %23041 = vmatprep.subr.bf16.mxu0 %v25626_v3 }
 0x289   : > { %22991 = vmatpush3.bf16.msra.mxu1 %v25756_v5  ;;  %21154 = vmatprep.mubr.f32.mxu1 %v24388_v30 }
 0x28a   : > { %22993 = vmatprep.subr.bf16.mxu1 %v25765_v61 }
 0x28b   : > { %23043 = vmatpush3.bf16.msra.mxu0 %v25626_v3 }
 0x28c   : > { %23045 = vmatprep.subr.bf16.mxu0 %v25567_v49 }
 0x28d   : > { %22995 = vmatpush3.bf16.msra.mxu1 %v25765_v61 }
 0x28e   : > { %22997 = vmatprep.subr.bf16.mxu1 %v25707_v41  ;;  %21221 = vmatmul.mubr.f32.vlgmr.msra.gmra.mrb[8].mxu0 %v24427_v46 }
 0x28f   : > { %23047 = vmatpush3.bf16.msra.mxu0 %v25567_v49  ;;  %21231 = vmatprep.mubr.f32.mxu0 %v24424_v45 }
 0x290   : > { %21155 = vmatmul.mubr.f32.vlgmr.msra.gmra.mrb[6].mxu1 %v24410_v40  ;;  %23049 = vmatprep.subr.bf16.mxu0 %v25583_v20 }
 0x291   : > { %22999 = vmatpush3.bf16.msra.mxu1 %v25707_v41  ;;  %21165 = vmatprep.mubr.f32.mxu1 %v24399_v36 }
 0x292   : > { %23001 = vmatprep.subr.bf16.mxu1 %v25721_v22 }
 0x293   : > { %23051 = vmatpush3.bf16.msra.mxu0 %v25583_v20 }
 0x294   : > { %23053 = vmatprep.subr.bf16.mxu0 %v25659_v1 }
 0x295   : > { %23003 = vmatpush3.bf16.msra.mxu1 %v25721_v22 }
 0x296   : > { %23005 = vmatprep.subr.bf16.mxu1 %v25790_v29  ;;  %21232 = vmatmul.mubr.f32.vlgmr.msra.gmra.mrb[8].mxu0 %v24439_v54 }
 0x297   : > { %23055 = vmatpush3.bf16.msra.mxu0 %v25659_v1  ;;  %21242 = vmatprep.mubr.f32.mxu0 %v24390_v31 }
 0x298   : > { %21166 = vmatmul.mubr.f32.vlgmr.msra.gmra.mrb[6].mxu1 %v24431_v48  ;;  %23057 = vmatprep.subr.bf16.mxu0 %v25672_v7 }
 0x299   : > { %23007 = vmatpush3.bf16.msra.mxu1 %v25790_v29  ;;  %21176 = vmatprep.mubr.f32.mxu1 %v24375_v24 }
 0x29a   : > { %23009 = vmatprep.subr.bf16.mxu1 %v25801_v2 }
 0x29b   : > { %23059 = vmatpush3.bf16.msra.mxu0 %v25672_v7  ;;  %v13507_v7 = vand.u32 4294901760, %v18430_v17 }
 0x29c   : > { %23061 = vmatprep.subr.bf16.mxu0 %v25567_v49 }
 0x29d   : > { %23011 = vmatpush3.bf16.msra.mxu1 %v25801_v2  ;;  %v25904_v16 = vsub.f32 %v18430_v17, %v13507_v7 }
 0x29e   : > { %23013 = vmatprep.subr.bf16.mxu1 %v25707_v41  ;;  %21243 = vmatmul.mubr.f32.vlgmr.msra.gmra.mrb[8].mxu0 %v24404_v38 }
 0x29f   : > { %23063 = vmatpush3.bf16.msra.mxu0 %v25567_v49  ;;  %21253 = vmatprep.mubr.f32.mxu0 %v24390_v31  ;;  %v13606_v23 = vand.u32 4294901760, %v25904_v16 }
 0x2a0   : > { %21177 = vmatmul.mubr.f32.vlgmr.msra.gmra.mrb[6].mxu1 %v24393_v32  ;;  %23065 = vmatprep.subr.bf16.mxu0 %v25583_v20 }
 0x2a1   : > { %23015 = vmatpush3.bf16.msra.mxu1 %v25707_v41  ;;  %21187 = vmatprep.mubr.f32.mxu1 %v24375_v24  ;;  %v13607_v27 = vsub.f32 %v25904_v16, %v13606_v23 }
 0x2a2   : > { %23017 = vmatprep.subr.bf16.mxu1 %v25721_v22 }
 0x2a3   : > { %23067 = vmatpush3.bf16.msra.mxu0 %v25583_v20  ;;  %v13608_v58 = vand.u32 4294901760, %v13607_v27 }
 0x2a4   : > { %23069 = vmatprep.subr.bf16.mxu0 %v25707_v41 }
 0x2a5   : > { %23019 = vmatpush3.bf16.msra.mxu1 %v25721_v22 }
 0x2a6   : > { %21254 = vmatmul.mubr.f32.vlgmr.msra.gmra.mrb[8].mxu0 %v24404_v38  ;;  %23165 = vmatprep.subr.bf16.mxu1 %v25707_v41 }
 0x2a7   : > { %23071 = vmatpush3.bf16.msra.mxu0 %v25707_v41  ;;  %21264 = vmatprep.mubr.f32.mxu0 %v24603_v56 }
 0x2a8   : > { %21188 = vmatmul.mubr.f32.vlgmr.msra.gmra.mrb[6].mxu1 %v24393_v32  ;;  %23073 = vmatprep.subr.bf16.mxu0 %v25721_v22 }
 0x2a9   : > { %23167 = vmatpush3.bf16.msra.mxu1 %v25707_v41  ;;  %21396 = vmatprep.mubr.f32.mxu1 %v24454_v60 }
 0x2aa   : > { %23169 = vmatprep.subr.bf16.mxu1 %v25721_v22 }
 0x2ab   : > { %23075 = vmatpush3.bf16.msra.mxu0 %v25721_v22 }
 0x2ac   : > { %23077 = vmatprep.subr.bf16.mxu0 %v25738_v62 }
 0x2ad   : > { %23171 = vmatpush3.bf16.msra.mxu1 %v25721_v22 }
 0x2ae   : > { %21265 = vmatmul.mubr.f32.vlgmr.msra.gmra.mrb[8].mxu0 %v24618_v59  ;;  %23173 = vmatprep.subr.bf16.mxu1 %v25738_v62 }
 0x2af   : > { %23079 = vmatpush3.bf16.msra.mxu0 %v25738_v62  ;;  %21275 = vmatprep.mubr.f32.mxu0 %v24553_v50 }
 0x2b0   : > { %21397 = vmatmul.mubr.f32.vlgmr.msra.gmra.mrb[8].mxu1 %v24469_v4  ;;  %23081 = vmatprep.subr.bf16.mxu0 %v25745_v14 }
 0x2b1   : > { %23175 = vmatpush3.bf16.msra.mxu1 %v25738_v62  ;;  %21407 = vmatprep.mubr.f32.mxu1 %v24390_v31 }
 0x2b2   : > { %23177 = vmatprep.subr.bf16.mxu1 %v25745_v14 }
 0x2b3   : > { %23083 = vmatpush3.bf16.msra.mxu0 %v25745_v14 }
 0x2b4   : > { %23085 = vmatprep.subr.bf16.mxu0 %v25756_v5 }
 0x2b5   : > { %23179 = vmatpush3.bf16.msra.mxu1 %v25745_v14 }
 0x2b6   : > { %21276 = vmatmul.mubr.f32.vlgmr.msra.gmra.mrb[8].mxu0 %v24576_v43  ;;  %23181 = vmatprep.subr.bf16.mxu1 %v25756_v5 }
 0x2b7   : > { %23087 = vmatpush3.bf16.msra.mxu0 %v25756_v5  ;;  %21286 = vmatprep.mubr.f32.mxu0 %v24568_v39 }
 0x2b8   : > { %21408 = vmatmul.mubr.f32.vlgmr.msra.gmra.mrb[8].mxu1 %v24404_v38  ;;  %23089 = vmatprep.subr.bf16.mxu0 %v25765_v61 }
 0x2b9   : > { %23183 = vmatpush3.bf16.msra.mxu1 %v25756_v5  ;;  %v20595_v49 = vpop.f32.mrb[4].mxu0  ;;  %21418 = vmatprep.mubr.f32.mxu1 %v24402_v37 }
 0x2ba   : > { %v25860_v20 = vmax.f32 %v6064_v19, %v20595_v49  ;;  %v7644_v3 = vpop.f32.mrb[5].mxu0  ;;  %23185 = vmatprep.subr.bf16.mxu1 %v25765_v61  ;;  %v13504_v19 = vand.u32 4294901760, %v18429_v15  ;;  %v18433_v49 = vld [vmem:[%s24336_s23 + $0x148] sm:$0xff] }
 0x2bb   : > { %v25866_v1 = vmax.f32 %v6063_v63, %v7644_v3  ;;  %23091 = vmatpush3.bf16.msra.mxu0 %v25765_v61  ;;  %v18431_v63 = vld [vmem:[%s24336_s23 + $0x138] sm:$0xff] }
 0x2bc   : > { %23093 = vmatprep.subr.bf16.mxu0 %v25707_v41  ;;  %v13510_v10 = vand.u32 4294901760, %v18431_v63  ;;  %v25895_v9 = vsub.f32 %v18429_v15, %v13504_v19  ;;  %v25913_v25 = vpack.c.bf16 %v13504_v19, %v13501_v13  ;;  %v15095_v15 = vand.u32 4294901760, %v18433_v49  ;;  %v18434_v13 = vld [vmem:[%s24336_s23 + $0x150] sm:$0xff]  ;;  %v18435_v19 = vld [vmem:[%s24336_s23 + $0x158] sm:$0xff] }
 0x2bd   : > { %23187 = vmatpush3.bf16.msra.mxu1 %v25765_v61  ;;  %v15098_v17 = vand.u32 4294901760, %v18434_v13 }
 0x2be   : > { %21287 = vmatmul.mubr.f32.vlgmr.msra.gmra.mrb[8].mxu0 %v24586_v51  ;;  %23189 = vmatprep.subr.bf16.mxu1 %v25707_v41  ;;  %v13599_v12 = vand.u32 4294901760, %v25895_v9  ;;  %v25906_v21 = vsub.f32 %v18431_v63, %v13510_v10  ;;  %v25929_v28 = vpack.c.bf16 %v13510_v10, %v13507_v7  ;;  %v25963_v62 = vpack.c.bf16 %v25895_v9, %v25893_v8 }
 0x2bf   : > { %23095 = vmatpush3.bf16.msra.mxu0 %v25707_v41  ;;  %21297 = vmatprep.mubr.f32.mxu0 %v24581_v47  ;;  %v15101_v63 = vand.u32 4294901760, %v18435_v19  ;;  %v26034_v10 = vsub.f32 %v18433_v49, %v15095_v15 }
 0x2c0   : > { %21419 = vmatmul.mubr.f32.vlgmr.msra.gmra.mrb[8].mxu1 %v24427_v46  ;;  %23097 = vmatprep.subr.bf16.mxu0 %v25721_v22  ;;  %v13600_v35 = vsub.f32 %v25895_v9, %v13599_v12  ;;  %v13613_v42 = vand.u32 4294901760, %v25906_v21  ;;  %v25972_v53 = vpack.c.bf16 %v25906_v21, %v25904_v16 }
 0x2c1   : > { %23191 = vmatpush3.bf16.msra.mxu1 %v25707_v41  ;;  %21429 = vmatprep.mubr.f32.mxu1 %v24424_v45  ;;  %v15190_v9 = vand.u32 4294901760, %v26034_v10 }
 0x2c2   : > { %23193 = vmatprep.subr.bf16.mxu1 %v25721_v22  ;;  %v13601_v57 = vand.u32 4294901760, %v13600_v35  ;;  %v26018_v3 = vpack.c.bf16 %v13613_v42, %v13606_v23 }
 0x2c3   : > { %23099 = vmatpush3.bf16.msra.mxu0 %v25721_v22  ;;  %v15191_v26 = vsub.f32 %v26034_v10, %v15190_v9 }
 0x2c4   : > { %23101 = vmatprep.subr.bf16.mxu0 %v25790_v29  ;;  %v25945_v44 = vpack.c.bf16 %v13601_v57, %v13594_v33 }
 0x2c5   : > { %23195 = vmatpush3.bf16.msra.mxu1 %v25721_v22  ;;  %v15192_v57 = vand.u32 4294901760, %v15191_v26 }
 0x2c6   : > { %21298 = vmatmul.mubr.f32.vlgmr.msra.gmra.mrb[8].mxu0 %v24600_v55  ;;  %23197 = vmatprep.subr.bf16.mxu1 %v25790_v29 }
 0x2c7   : > { %23103 = vmatpush3.bf16.msra.mxu0 %v25790_v29  ;;  %21308 = vmatprep.mubr.f32.mxu0 %v24553_v50 }
 0x2c8   : > { %21430 = vmatmul.mubr.f32.vlgmr.msra.gmra.mrb[8].mxu1 %v24439_v54  ;;  %23105 = vmatprep.subr.bf16.mxu0 %v25801_v2 }
 0x2c9   : > { %23199 = vmatpush3.bf16.msra.mxu1 %v25790_v29  ;;  %21440 = vmatprep.mubr.f32.mxu1 %v24390_v31  ;;  %v26005_v29 = vpack.c.bf16 %v13599_v12, %v13592_v11  ;;  %v26043_v11 = vsub.f32 %v18434_v13, %v15098_v17  ;;  %v26045_v12 = vsub.f32 %v18435_v19, %v15101_v63 }
 0x2ca   : > { %23201 = vmatprep.subr.bf16.mxu1 %v25801_v2 }
 0x2cb   : > { %23107 = vmatpush3.bf16.msra.mxu0 %v25801_v2  ;;  %v15197_v35 = vand.u32 4294901760, %v26043_v11  ;;  %v15204_v23 = vand.u32 4294901760, %v26045_v12 }
 0x2cc   : > { %23109 = vmatprep.subr.bf16.mxu0 %v25707_v41 }
 0x2cd   : > { %23203 = vmatpush3.bf16.msra.mxu1 %v25801_v2  ;;  %v18432_v2 = vld [vmem:[%s24336_s23 + $0x140] sm:$0xff]  ;;  %v15198_v27 = vsub.f32 %v26043_v11, %v15197_v35 }
 0x2ce   : > { %21309 = vmatmul.mubr.f32.vlgmr.msra.gmra.mrb[8].mxu0 %v24576_v43  ;;  %23205 = vmatprep.subr.bf16.mxu1 %v25707_v41  ;;  %v15092_v34 = vand.u32 4294901760, %v18432_v2 }
 0x2cf   : > { %23111 = vmatpush3.bf16.msra.mxu0 %v25707_v41  ;;  %21319 = vmatprep.mubr.f32.mxu0 %v24553_v50 }
 0x2d0   : > { %21441 = vmatmul.mubr.f32.vlgmr.msra.gmra.mrb[8].mxu1 %v24404_v38  ;;  %23113 = vmatprep.subr.bf16.mxu0 %v25721_v22  ;;  %v26032_v7 = vsub.f32 %v18432_v2, %v15092_v34  ;;  %v26053_v16 = vpack.c.bf16 %v15095_v15, %v15092_v34 }
 0x2d1   : > { %23207 = vmatpush3.bf16.msra.mxu1 %v25707_v41  ;;  %21451 = vmatprep.mubr.f32.mxu1 %v24390_v31  ;;  %v13614_v41 = vsub.f32 %v25906_v21, %v13613_v42  ;;  %v26067_v42 = vpack.c.bf16 %v15101_v63, %v15098_v17 }
 0x2d2   : > { %23209 = vmatprep.subr.bf16.mxu1 %v25721_v22  ;;  %v15183_v8 = vand.u32 4294901760, %v26032_v7  ;;  %v26102_v34 = vpack.c.bf16 %v26034_v10, %v26032_v7 }
 0x2d3   : > { %23115 = vmatpush3.bf16.msra.mxu0 %v25721_v22  ;;  %v13615_v18 = vand.u32 4294901760, %v13614_v41  ;;  %v15205_v41 = vsub.f32 %v26045_v12, %v15204_v23 }
 0x2d4   : > { %23117 = vmatprep.subr.bf16.mxu0 %v25913_v25  ;;  %v15184_v21 = vsub.f32 %v26032_v7, %v15183_v8 }
 0x2d5   : > { %23211 = vmatpush3.bf16.msra.mxu1 %v25721_v22  ;;  %v25952_v22 = vpack.c.bf16 %v13615_v18, %v13608_v58  ;;  %v15199_v18 = vand.u32 4294901760, %v15198_v27  ;;  %v15206_v2 = vand.u32 4294901760, %v15205_v41 }
 0x2d6   : > { %21320 = vmatmul.mubr.f32.vlgmr.msra.gmra.mrb[8].mxu0 %v24576_v43  ;;  %23213 = vmatprep.subr.bf16.mxu1 %v25913_v25  ;;  %v15185_v33 = vand.u32 4294901760, %v15184_v21 }
 0x2d7   : > { %23119 = vmatpush3.bf16.msra.mxu0 %v25913_v25  ;;  %21330 = vmatprep.mubr.f32.mxu0 %v24434_v52  ;;  %v26091_v49 = vpack.c.bf16 %v15206_v2, %v15199_v18 }
 0x2d8   : > { %21452 = vmatmul.mubr.f32.vlgmr.msra.gmra.mrb[8].mxu1 %v24404_v38  ;;  %23121 = vmatprep.subr.bf16.mxu0 %v25929_v28  ;;  %v26084_v58 = vpack.c.bf16 %v15192_v57, %v15185_v33 }
 0x2d9   : > { %23215 = vmatpush3.bf16.msra.mxu1 %v25913_v25  ;;  %21462 = vmatprep.mubr.f32.mxu1 %v24603_v56 }
 0x2da   : > { %23217 = vmatprep.subr.bf16.mxu1 %v25929_v28 }
 0x2db   : > { %23123 = vmatpush3.bf16.msra.mxu0 %v25929_v28 }
 0x2dc   : > { %23125 = vmatprep.subr.bf16.mxu0 %v25945_v44 }
 0x2dd   : > { %23219 = vmatpush3.bf16.msra.mxu1 %v25929_v28 }
 0x2de   : > { %21331 = vmatmul.mubr.f32.vlgmr.msra.gmra.mrb[8].mxu0 %v24461_v0  ;;  %23221 = vmatprep.subr.bf16.mxu1 %v25945_v44 }
 0x2df   : > { %23127 = vmatpush3.bf16.msra.mxu0 %v25945_v44  ;;  %21341 = vmatprep.mubr.f32.mxu0 %v24375_v24 }
 0x2e0   : > { %21463 = vmatmul.mubr.f32.vlgmr.msra.gmra.mrb[8].mxu1 %v24618_v59  ;;  %23129 = vmatprep.subr.bf16.mxu0 %v25952_v22 }
 0x2e1   : > { %23223 = vmatpush3.bf16.msra.mxu1 %v25945_v44  ;;  %21473 = vmatprep.mubr.f32.mxu1 %v24553_v50 }
 0x2e2   : > { %23225 = vmatprep.subr.bf16.mxu1 %v25952_v22 }
 0x2e3   : > { %23131 = vmatpush3.bf16.msra.mxu0 %v25952_v22 }
 0x2e4   : > { %23133 = vmatprep.subr.bf16.mxu0 %v25963_v62 }
 0x2e5   : > { %23227 = vmatpush3.bf16.msra.mxu1 %v25952_v22 }
 0x2e6   : > { %21342 = vmatmul.mubr.f32.vlgmr.msra.gmra.mrb[8].mxu0 %v24393_v32  ;;  %23229 = vmatprep.subr.bf16.mxu1 %v25963_v62 }
 0x2e7   : > { %23135 = vmatpush3.bf16.msra.mxu0 %v25963_v62  ;;  %21352 = vmatprep.mubr.f32.mxu0 %v24388_v30 }
 0x2e8   : > { %21474 = vmatmul.mubr.f32.vlgmr.msra.gmra.mrb[8].mxu1 %v24576_v43  ;;  %23137 = vmatprep.subr.bf16.mxu0 %v25972_v53 }
 0x2e9   : > { %23231 = vmatpush3.bf16.msra.mxu1 %v25963_v62  ;;  %21484 = vmatprep.mubr.f32.mxu1 %v24568_v39 }
 0x2ea   : > { %23233 = vmatprep.subr.bf16.mxu1 %v25972_v53 }
 0x2eb   : > { %v25984_v6 = vpop.f32.mrb[4].mxu1  ;;  %23139 = vmatpush3.bf16.msra.mxu0 %v25972_v53 }
 0x2ec   : > { %v9250_v14 = vmax.f32 %v25860_v20, %v25984_v6  ;;  %v25989_v5 = vpop.f32.mrb[5].mxu1  ;;  %23141 = vmatprep.subr.bf16.mxu0 %v25913_v25  ;;  %v18437_v20 = vld [vmem:[%s24336_s23 + $0x168] sm:$0xff]  ;;  %v18438_v6 = vld [vmem:[%s24336_s23 + $0x170] sm:$0xff] }
 0x2ed   : > { %v9249_v61 = vmax.f32 %v25866_v1, %v25989_v5  ;;  %23235 = vmatpush3.bf16.msra.mxu1 %v25972_v53 }
 0x2ee   : > { %21353 = vmatmul.mubr.f32.vlgmr.msra.gmra.mrb[8].mxu0 %v24410_v40  ;;  %23237 = vmatprep.subr.bf16.mxu1 %v25913_v25 }
 0x2ef   : > { %23143 = vmatpush3.bf16.msra.mxu0 %v25913_v25  ;;  %21363 = vmatprep.mubr.f32.mxu0 %v24399_v36 }
 0x2f0   : > { %21485 = vmatmul.mubr.f32.vlgmr.msra.gmra.mrb[8].mxu1 %v24586_v51  ;;  %23145 = vmatprep.subr.bf16.mxu0 %v25929_v28 }
 0x2f1   : > { %23239 = vmatpush3.bf16.msra.mxu1 %v25913_v25  ;;  %21495 = vmatprep.mubr.f32.mxu1 %v24581_v47 }
 0x2f2   : > { %23241 = vmatprep.subr.bf16.mxu1 %v25929_v28 }
 0x2f3   : > { %23147 = vmatpush3.bf16.msra.mxu0 %v25929_v28 }
 0x2f4   : > { %23149 = vmatprep.subr.bf16.mxu0 %v26005_v29 }
 0x2f5   : > { %23243 = vmatpush3.bf16.msra.mxu1 %v25929_v28 }
 0x2f6   : > { %21364 = vmatmul.mubr.f32.vlgmr.msra.gmra.mrb[8].mxu0 %v24431_v48  ;;  %23245 = vmatprep.subr.bf16.mxu1 %v26005_v29 }
 0x2f7   : > { %23151 = vmatpush3.bf16.msra.mxu0 %v26005_v29  ;;  %21374 = vmatprep.mubr.f32.mxu0 %v24375_v24 }
 0x2f8   : > { %21496 = vmatmul.mubr.f32.vlgmr.msra.gmra.mrb[8].mxu1 %v24600_v55  ;;  %23153 = vmatprep.subr.bf16.mxu0 %v26018_v3 }
 0x2f9   : > { %23247 = vmatpush3.bf16.msra.mxu1 %v26005_v29  ;;  %21506 = vmatprep.mubr.f32.mxu1 %v24553_v50 }
 0x2fa   : > { %23249 = vmatprep.subr.bf16.mxu1 %v26018_v3 }
 0x2fb   : > { %23155 = vmatpush3.bf16.msra.mxu0 %v26018_v3 }
 0x2fc   : > { %23157 = vmatprep.subr.bf16.mxu0 %v25913_v25 }
 0x2fd   : > { %23251 = vmatpush3.bf16.msra.mxu1 %v26018_v3 }
 0x2fe   : > { %21375 = vmatmul.mubr.f32.vlgmr.msra.gmra.mrb[8].mxu0 %v24393_v32  ;;  %23253 = vmatprep.subr.bf16.mxu1 %v25913_v25 }
 0x2ff   : > { %23159 = vmatpush3.bf16.msra.mxu0 %v25913_v25  ;;  %21385 = vmatprep.mubr.f32.mxu0 %v24375_v24 }
 0x300   : > { %21507 = vmatmul.mubr.f32.vlgmr.msra.gmra.mrb[8].mxu1 %v24576_v43  ;;  %23161 = vmatprep.subr.bf16.mxu0 %v25929_v28 }
 0x301   : > { %23255 = vmatpush3.bf16.msra.mxu1 %v25913_v25  ;;  %21517 = vmatprep.mubr.f32.mxu1 %v24553_v50 }
 0x302   : > { %23257 = vmatprep.subr.bf16.mxu1 %v25929_v28 }
 0x303   : > { %23163 = vmatpush3.bf16.msra.mxu0 %v25929_v28 }
 0x304   : > { %23309 = vmatprep.subr.bf16.mxu0 %v25913_v25 }
 0x305   : > { %23259 = vmatpush3.bf16.msra.mxu1 %v25929_v28 }
 0x306   : > { %21386 = vmatmul.mubr.f32.vlgmr.msra.gmra.mrb[8].mxu0 %v24393_v32  ;;  %23261 = vmatprep.subr.bf16.mxu1 %v26053_v16 }
 0x307   : > { %23311 = vmatpush3.bf16.msra.mxu0 %v25913_v25  ;;  %21594 = vmatprep.mubr.f32.mxu0 %v24454_v60 }
 0x308   : > { %21518 = vmatmul.mubr.f32.vlgmr.msra.gmra.mrb[8].mxu1 %v24576_v43  ;;  %23313 = vmatprep.subr.bf16.mxu0 %v25929_v28 }
 0x309   : > { %23263 = vmatpush3.bf16.msra.mxu1 %v26053_v16  ;;  %21528 = vmatprep.mubr.f32.mxu1 %v24434_v52 }
 0x30a   : > { %23265 = vmatprep.subr.bf16.mxu1 %v26067_v42 }
 0x30b   : > { %23315 = vmatpush3.bf16.msra.mxu0 %v25929_v28 }
 0x30c   : > { %23317 = vmatprep.subr.bf16.mxu0 %v25945_v44 }
 0x30d   : > { %23267 = vmatpush3.bf16.msra.mxu1 %v26067_v42 }
 0x30e   : > { %23269 = vmatprep.subr.bf16.mxu1 %v26084_v58  ;;  %21595 = vmatmul.mubr.f32.vlgmr.msra.gmra.mrb[10].mxu0 %v24469_v4 }
 0x30f   : > { %23319 = vmatpush3.bf16.msra.mxu0 %v25945_v44  ;;  %21605 = vmatprep.mubr.f32.mxu0 %v24390_v31  ;;  %v26111_v44 = vpack.c.bf16 %v26045_v12, %v26043_v11 }
 0x310   : > { %21529 = vmatmul.mubr.f32.vlgmr.msra.gmra.mrb[8].mxu1 %v24461_v0  ;;  %23321 = vmatprep.subr.bf16.mxu0 %v25952_v22 }
 0x311   : > { %23271 = vmatpush3.bf16.msra.mxu1 %v26084_v58  ;;  %21539 = vmatprep.mubr.f32.mxu1 %v24375_v24 }
 0x312   : > { %23273 = vmatprep.subr.bf16.mxu1 %v26091_v49 }
 0x313   : > { %23323 = vmatpush3.bf16.msra.mxu0 %v25952_v22  ;;  %v26136_v22 = vpack.c.bf16 %v15190_v9, %v15183_v8 }
 0x314   : > { %23325 = vmatprep.subr.bf16.mxu0 %v25963_v62 }
 0x315   : > { %23275 = vmatpush3.bf16.msra.mxu1 %v26091_v49 }
 0x316   : > { %23277 = vmatprep.subr.bf16.mxu1 %v26102_v34  ;;  %21606 = vmatmul.mubr.f32.vlgmr.msra.gmra.mrb[10].mxu0 %v24404_v38 }
 0x317   : > { %23327 = vmatpush3.bf16.msra.mxu0 %v25963_v62  ;;  %21616 = vmatprep.mubr.f32.mxu0 %v24402_v37  ;;  %v26147_v62 = vpack.c.bf16 %v15204_v23, %v15197_v35 }
 0x318   : > { %21540 = vmatmul.mubr.f32.vlgmr.msra.gmra.mrb[8].mxu1 %v24393_v32  ;;  %23329 = vmatprep.subr.bf16.mxu0 %v25972_v53 }
 0x319   : > { %23279 = vmatpush3.bf16.msra.mxu1 %v26102_v34  ;;  %21550 = vmatprep.mubr.f32.mxu1 %v24388_v30 }
 0x31a   : > { %23281 = vmatprep.subr.bf16.mxu1 %v26111_v44 }
 0x31b   : > { %23331 = vmatpush3.bf16.msra.mxu0 %v25972_v53  ;;  %v16688_v53 = vand.u32 4294901760, %v18437_v20 }
 0x31c   : > { %23333 = vmatprep.subr.bf16.mxu0 %v25913_v25 }
 0x31d   : > { %23283 = vmatpush3.bf16.msra.mxu1 %v26111_v44 }
 0x31e   : > { %23285 = vmatprep.subr.bf16.mxu1 %v26053_v16  ;;  %21617 = vmatmul.mubr.f32.vlgmr.msra.gmra.mrb[10].mxu0 %v24427_v46 }
 0x31f   : > { %23335 = vmatpush3.bf16.msra.mxu0 %v25913_v25  ;;  %21627 = vmatprep.mubr.f32.mxu0 %v24424_v45 }
 0x320   : > { %21551 = vmatmul.mubr.f32.vlgmr.msra.gmra.mrb[8].mxu1 %v24410_v40  ;;  %23337 = vmatprep.subr.bf16.mxu0 %v25929_v28 }
 0x321   : > { %23287 = vmatpush3.bf16.msra.mxu1 %v26053_v16  ;;  %21561 = vmatprep.mubr.f32.mxu1 %v24399_v36 }
 0x322   : > { %23289 = vmatprep.subr.bf16.mxu1 %v26067_v42 }
 0x323   : > { %23339 = vmatpush3.bf16.msra.mxu0 %v25929_v28 }
 0x324   : > { %23341 = vmatprep.subr.bf16.mxu0 %v26005_v29 }
 0x325   : > { %23291 = vmatpush3.bf16.msra.mxu1 %v26067_v42 }
 0x326   : > { %23293 = vmatprep.subr.bf16.mxu1 %v26136_v22  ;;  %21628 = vmatmul.mubr.f32.vlgmr.msra.gmra.mrb[10].mxu0 %v24439_v54 }
 0x327   : > { %23343 = vmatpush3.bf16.msra.mxu0 %v26005_v29  ;;  %21638 = vmatprep.mubr.f32.mxu0 %v24390_v31 }
 0x328   : > { %21562 = vmatmul.mubr.f32.vlgmr.msra.gmra.mrb[8].mxu1 %v24431_v48  ;;  %23345 = vmatprep.subr.bf16.mxu0 %v26018_v3 }
 0x329   : > { %23295 = vmatpush3.bf16.msra.mxu1 %v26136_v22  ;;  %21572 = vmatprep.mubr.f32.mxu1 %v24375_v24 }
 0x32a   : > { %23297 = vmatprep.subr.bf16.mxu1 %v26147_v62 }
 0x32b   : > { %23347 = vmatpush3.bf16.msra.mxu0 %v26018_v3 }
 0x32c   : > { %23349 = vmatprep.subr.bf16.mxu0 %v25913_v25 }
 0x32d   : > { %23299 = vmatpush3.bf16.msra.mxu1 %v26147_v62 }
 0x32e   : > { %23301 = vmatprep.subr.bf16.mxu1 %v26053_v16  ;;  %21639 = vmatmul.mubr.f32.vlgmr.msra.gmra.mrb[10].mxu0 %v24404_v38 }
 0x32f   : > { %23351 = vmatpush3.bf16.msra.mxu0 %v25913_v25  ;;  %21649 = vmatprep.mubr.f32.mxu0 %v24390_v31 }
 0x330   : > { %21573 = vmatmul.mubr.f32.vlgmr.msra.gmra.mrb[8].mxu1 %v24393_v32  ;;  %23353 = vmatprep.subr.bf16.mxu0 %v25929_v28 }
 0x331   : > { %23303 = vmatpush3.bf16.msra.mxu1 %v26053_v16  ;;  %21583 = vmatprep.mubr.f32.mxu1 %v24375_v24 }
 0x332   : > { %23305 = vmatprep.subr.bf16.mxu1 %v26067_v42 }
 0x333   : > { %23355 = vmatpush3.bf16.msra.mxu0 %v25929_v28 }
 0x334   : > { %23357 = vmatprep.subr.bf16.mxu0 %v26053_v16 }
 0x335   : > { %23307 = vmatpush3.bf16.msra.mxu1 %v26067_v42 }
 0x336   : > { %21650 = vmatmul.mubr.f32.vlgmr.msra.gmra.mrb[10].mxu0 %v24404_v38  ;;  %23453 = vmatprep.subr.bf16.mxu1 %v26053_v16 }
 0x337   : > { %23359 = vmatpush3.bf16.msra.mxu0 %v26053_v16  ;;  %21660 = vmatprep.mubr.f32.mxu0 %v24603_v56 }
 0x338   : > { %21584 = vmatmul.mubr.f32.vlgmr.msra.gmra.mrb[8].mxu1 %v24393_v32  ;;  %23361 = vmatprep.subr.bf16.mxu0 %v26067_v42 }
 0x339   : > { %23455 = vmatpush3.bf16.msra.mxu1 %v26053_v16  ;;  %21792 = vmatprep.mubr.f32.mxu1 %v24454_v60 }
 0x33a   : > { %23457 = vmatprep.subr.bf16.mxu1 %v26067_v42 }
 0x33b   : > { %23363 = vmatpush3.bf16.msra.mxu0 %v26067_v42 }
 0x33c   : > { %23365 = vmatprep.subr.bf16.mxu0 %v26084_v58 }
 0x33d   : > { %23459 = vmatpush3.bf16.msra.mxu1 %v26067_v42 }
 0x33e   : > { %21661 = vmatmul.mubr.f32.vlgmr.msra.gmra.mrb[10].mxu0 %v24618_v59  ;;  %23461 = vmatprep.subr.bf16.mxu1 %v26084_v58 }
 0x33f   : > { %23367 = vmatpush3.bf16.msra.mxu0 %v26084_v58  ;;  %21671 = vmatprep.mubr.f32.mxu0 %v24553_v50 }
 0x340   : > { %21793 = vmatmul.mubr.f32.vlgmr.msra.gmra.mrb[10].mxu1 %v24469_v4  ;;  %23369 = vmatprep.subr.bf16.mxu0 %v26091_v49 }
 0x341   : > { %23463 = vmatpush3.bf16.msra.mxu1 %v26084_v58  ;;  %21803 = vmatprep.mubr.f32.mxu1 %v24390_v31 }
 0x342   : > { %23465 = vmatprep.subr.bf16.mxu1 %v26091_v49 }
 0x343   : > { %23371 = vmatpush3.bf16.msra.mxu0 %v26091_v49 }
 0x344   : > { %23373 = vmatprep.subr.bf16.mxu0 %v26102_v34 }
 0x345   : > { %23467 = vmatpush3.bf16.msra.mxu1 %v26091_v49 }
 0x346   : > { %21672 = vmatmul.mubr.f32.vlgmr.msra.gmra.mrb[10].mxu0 %v24576_v43  ;;  %23469 = vmatprep.subr.bf16.mxu1 %v26102_v34 }
 0x347   : > { %23375 = vmatpush3.bf16.msra.mxu0 %v26102_v34  ;;  %21682 = vmatprep.mubr.f32.mxu0 %v24568_v39 }
 0x348   : > { %21804 = vmatmul.mubr.f32.vlgmr.msra.gmra.mrb[10].mxu1 %v24404_v38  ;;  %23377 = vmatprep.subr.bf16.mxu0 %v26111_v44 }
 0x349   : > { %23471 = vmatpush3.bf16.msra.mxu1 %v26102_v34  ;;  %v20991_v60 = vpop.f32.mrb[6].mxu0  ;;  %21814 = vmatprep.mubr.f32.mxu1 %v24402_v37  ;;  %v18436_v37 = vld [vmem:[%s24336_s23 + $0x160] sm:$0xff] }
 0x34a   : > { %v26206_v4 = vmax.f32 %v9250_v14, %v20991_v60  ;;  %v10830_v25 = vpop.f32.mrb[7].mxu0  ;;  %23473 = vmatprep.subr.bf16.mxu1 %v26111_v44  ;;  %v16685_v1 = vand.u32 4294901760, %v18436_v37 }
 0x34b   : > { %v26212_v28 = vmax.f32 %v9249_v61, %v10830_v25  ;;  %23379 = vmatpush3.bf16.msra.mxu0 %v26111_v44  ;;  %v26241_v61 = vsub.f32 %v18437_v20, %v16688_v53 }
 0x34c   : > { %23381 = vmatprep.subr.bf16.mxu0 %v26053_v16  ;;  %v26239_v5 = vsub.f32 %v18436_v37, %v16685_v1  ;;  %v26259_v13 = vpack.c.bf16 %v16688_v53, %v16685_v1 }
 0x34d   : > { %23475 = vmatpush3.bf16.msra.mxu1 %v26111_v44  ;;  %v16783_v29 = vand.u32 4294901760, %v26241_v61 }
 0x34e   : > { %21683 = vmatmul.mubr.f32.vlgmr.msra.gmra.mrb[10].mxu0 %v24586_v51  ;;  %23477 = vmatprep.subr.bf16.mxu1 %v26053_v16 }
 0x34f   : > { %23383 = vmatpush3.bf16.msra.mxu0 %v26053_v16  ;;  %21693 = vmatprep.mubr.f32.mxu0 %v24581_v47  ;;  %v16784_v17 = vsub.f32 %v26241_v61, %v16783_v29 }
 0x350   : > { %21815 = vmatmul.mubr.f32.vlgmr.msra.gmra.mrb[10].mxu1 %v24427_v46  ;;  %23385 = vmatprep.subr.bf16.mxu0 %v26067_v42  ;;  %v18439_v46 = vld [vmem:[%s24336_s23 + $0x178] sm:$0xff] }
 0x351   : > { %23479 = vmatpush3.bf16.msra.mxu1 %v26053_v16  ;;  %21825 = vmatprep.mubr.f32.mxu1 %v24424_v45  ;;  %v16691_v45 = vand.u32 4294901760, %v18438_v6  ;;  %v16694_v14 = vand.u32 4294901760, %v18439_v46  ;;  %v16785_v9 = vand.u32 4294901760, %v16784_v17 }
 0x352   : > { %23481 = vmatprep.subr.bf16.mxu1 %v26067_v42 }
 0x353   : > { %23387 = vmatpush3.bf16.msra.mxu0 %v26067_v42  ;;  %v26250_v3 = vsub.f32 %v18438_v6, %v16691_v45  ;;  %v26252_v15 = vsub.f32 %v18439_v46, %v16694_v14  ;;  %v26275_v10 = vpack.c.bf16 %v16694_v14, %v16691_v45 }
 0x354   : > { %23389 = vmatprep.subr.bf16.mxu0 %v26136_v22 }
 0x355   : > { %23483 = vmatpush3.bf16.msra.mxu1 %v26067_v42  ;;  %v16790_v63 = vand.u32 4294901760, %v26250_v3  ;;  %v16797_v7 = vand.u32 4294901760, %v26252_v15 }
 0x356   : > { %21694 = vmatmul.mubr.f32.vlgmr.msra.gmra.mrb[10].mxu0 %v24600_v55  ;;  %23485 = vmatprep.subr.bf16.mxu1 %v26136_v22 }
 0x357   : > { %23391 = vmatpush3.bf16.msra.mxu0 %v26136_v22  ;;  %21704 = vmatprep.mubr.f32.mxu0 %v24553_v50  ;;  %v16791_v11 = vsub.f32 %v26250_v3, %v16790_v63  ;;  %v16798_v12 = vsub.f32 %v26252_v15, %v16797_v7 }
 0x358   : > { %21826 = vmatmul.mubr.f32.vlgmr.msra.gmra.mrb[10].mxu1 %v24439_v54  ;;  %23393 = vmatprep.subr.bf16.mxu0 %v26147_v62  ;;  %v16776_v54 = vand.u32 4294901760, %v26239_v5 }
 0x359   : > { %23487 = vmatpush3.bf16.msra.mxu1 %v26136_v22  ;;  %21836 = vmatprep.mubr.f32.mxu1 %v24390_v31  ;;  %v16799_v21 = vand.u32 4294901760, %v16798_v12 }
 0x35a   : > { %23489 = vmatprep.subr.bf16.mxu1 %v26147_v62  ;;  %v16777_v19 = vsub.f32 %v26239_v5, %v16776_v54 }
 0x35b   : > { %23395 = vmatpush3.bf16.msra.mxu0 %v26147_v62 }
 0x35c   : > { %23397 = vmatprep.subr.bf16.mxu0 %v26053_v16  ;;  %v16778_v8 = vand.u32 4294901760, %v16777_v19 }
 0x35d   : > { %23491 = vmatpush3.bf16.msra.mxu1 %v26147_v62 }
 0x35e   : > { %21705 = vmatmul.mubr.f32.vlgmr.msra.gmra.mrb[10].mxu0 %v24576_v43  ;;  %23493 = vmatprep.subr.bf16.mxu1 %v26053_v16 }
 0x35f   : > { %23399 = vmatpush3.bf16.msra.mxu0 %v26053_v16  ;;  %21715 = vmatprep.mubr.f32.mxu0 %v24553_v50 }
 0x360   : > { %21837 = vmatmul.mubr.f32.vlgmr.msra.gmra.mrb[10].mxu1 %v24404_v38  ;;  %23401 = vmatprep.subr.bf16.mxu0 %v26067_v42 }
 0x361   : > { %23495 = vmatpush3.bf16.msra.mxu1 %v26053_v16  ;;  %21847 = vmatprep.mubr.f32.mxu1 %v24390_v31  ;;  %v23412_v31 = vpack.c.bf16 %v16785_v9, %v16778_v8  ;;  %v16792_v16 = vand.u32 4294901760, %v16791_v11 }
 0x362   : > { %23497 = vmatprep.subr.bf16.mxu1 %v26067_v42 }
 0x363   : > { %23403 = vmatpush3.bf16.msra.mxu0 %v26067_v42  ;;  %v23416_v26 = vpack.c.bf16 %v16799_v21, %v16792_v16 }
 0x364   : > { %23405 = vmatprep.subr.bf16.mxu0 %v26259_v13 }
 0x365   : > { %23499 = vmatpush3.bf16.msra.mxu1 %v26067_v42 }
 0x366   : > { %21716 = vmatmul.mubr.f32.vlgmr.msra.gmra.mrb[10].mxu0 %v24576_v43  ;;  %23501 = vmatprep.subr.bf16.mxu1 %v26259_v13 }
 0x367   : > { %23407 = vmatpush3.bf16.msra.mxu0 %v26259_v13  ;;  %21726 = vmatprep.mubr.f32.mxu0 %v24434_v52  ;;  %v23424_v52 = vpack.c.bf16 %v26252_v15, %v26250_v3 }
 0x368   : > { %21848 = vmatmul.mubr.f32.vlgmr.msra.gmra.mrb[10].mxu1 %v24404_v38  ;;  %23409 = vmatprep.subr.bf16.mxu0 %v26275_v10  ;;  %v23420_v38 = vpack.c.bf16 %v26241_v61, %v26239_v5 }
 0x369   : > { %23503 = vmatpush3.bf16.msra.mxu1 %v26259_v13  ;;  %21858 = vmatprep.mubr.f32.mxu1 %v24603_v56 }
 0x36a   : > { %23505 = vmatprep.subr.bf16.mxu1 %v26275_v10 }
 0x36b   : > { %23411 = vmatpush3.bf16.msra.mxu0 %v26275_v10 }
 0x36c   : > { %23413 = vmatprep.subr.bf16.mxu0 %v23412_v31 }
 0x36d   : > { %23507 = vmatpush3.bf16.msra.mxu1 %v26275_v10 }
 0x36e   : > { %21727 = vmatmul.mubr.f32.vlgmr.msra.gmra.mrb[10].mxu0 %v24461_v0  ;;  %23509 = vmatprep.subr.bf16.mxu1 %v23412_v31 }
 0x36f   : > { %23415 = vmatpush3.bf16.msra.mxu0 %v23412_v31  ;;  %21737 = vmatprep.mubr.f32.mxu0 %v24375_v24 }
 0x370   : > { %21859 = vmatmul.mubr.f32.vlgmr.msra.gmra.mrb[10].mxu1 %v24618_v59  ;;  %23417 = vmatprep.subr.bf16.mxu0 %v23416_v26 }
 0x371   : > { %23511 = vmatpush3.bf16.msra.mxu1 %v23412_v31  ;;  %21869 = vmatprep.mubr.f32.mxu1 %v24553_v50 }
 0x372   : > { %23513 = vmatprep.subr.bf16.mxu1 %v23416_v26 }
 0x373   : > { %23419 = vmatpush3.bf16.msra.mxu0 %v23416_v26 }
 0x374   : > { %23421 = vmatprep.subr.bf16.mxu0 %v23420_v38 }
 0x375   : > { %23515 = vmatpush3.bf16.msra.mxu1 %v23416_v26 }
 0x376   : > { %21738 = vmatmul.mubr.f32.vlgmr.msra.gmra.mrb[10].mxu0 %v24393_v32  ;;  %23517 = vmatprep.subr.bf16.mxu1 %v23420_v38 }
 0x377   : > { %23423 = vmatpush3.bf16.msra.mxu0 %v23420_v38  ;;  %21748 = vmatprep.mubr.f32.mxu0 %v24388_v30  ;;  %v23436_v30 = vpack.c.bf16 %v16783_v29, %v16776_v54 }
 0x378   : > { %21870 = vmatmul.mubr.f32.vlgmr.msra.gmra.mrb[10].mxu1 %v24576_v43  ;;  %23425 = vmatprep.subr.bf16.mxu0 %v23424_v52 }
 0x379   : > { %23519 = vmatpush3.bf16.msra.mxu1 %v23420_v38  ;;  %21880 = vmatprep.mubr.f32.mxu1 %v24568_v39 }
 0x37a   : > { %23521 = vmatprep.subr.bf16.mxu1 %v23424_v52 }
 0x37b   : > { %v21189_v0 = vpop.f32.mrb[6].mxu1  ;;  %23427 = vmatpush3.bf16.msra.mxu0 %v23424_v52 }
 0x37c   : > { %v12436_v56 = vmax.f32 %v26206_v4, %v21189_v0  ;;  %v12423_v59 = vpop.f32.mrb[7].mxu1  ;;  %23429 = vmatprep.subr.bf16.mxu0 %v26259_v13 }
 0x37d   : > { %v12435_v35 = vmax.f32 %v26212_v28, %v12423_v59  ;;  %23523 = vmatpush3.bf16.msra.mxu1 %v23424_v52 }
 0x37e   : > { %12438 = vst [vmem:[%s26312_s19 + $0x8] sm:$0xff] %v12436_v56  ;;  %21749 = vmatmul.mubr.f32.vlgmr.msra.gmra.mrb[10].mxu0 %v24410_v40  ;;  %23525 = vmatprep.subr.bf16.mxu1 %v26259_v13 }
 0x37f   : > { %12437 = vst [vmem:[%s26312_s19] sm:$0xff] %v12435_v35  ;;  %23431 = vmatpush3.bf16.msra.mxu0 %v26259_v13  ;;  %21759 = vmatprep.mubr.f32.mxu0 %v24399_v36  ;;  %v23440_v36 = vpack.c.bf16 %v16797_v7, %v16790_v63 }
 0x380   : > { %21881 = vmatmul.mubr.f32.vlgmr.msra.gmra.mrb[10].mxu1 %v24586_v51  ;;  %23433 = vmatprep.subr.bf16.mxu0 %v26275_v10 }
 0x381   : > { %23527 = vmatpush3.bf16.msra.mxu1 %v26259_v13  ;;  %21891 = vmatprep.mubr.f32.mxu1 %v24581_v47 }
 0x382   : > { %23529 = vmatprep.subr.bf16.mxu1 %v26275_v10 }
 0x383   : > { %23435 = vmatpush3.bf16.msra.mxu0 %v26275_v10 }
 0x384   : > { %23437 = vmatprep.subr.bf16.mxu0 %v23436_v30 }
 0x385   : > { %23531 = vmatpush3.bf16.msra.mxu1 %v26275_v10 }
 0x386   : > { %21760 = vmatmul.mubr.f32.vlgmr.msra.gmra.mrb[10].mxu0 %v24431_v48  ;;  %23533 = vmatprep.subr.bf16.mxu1 %v23436_v30 }
 0x387   : > { %23439 = vmatpush3.bf16.msra.mxu0 %v23436_v30  ;;  %21770 = vmatprep.mubr.f32.mxu0 %v24375_v24 }
 0x388   : > { %21892 = vmatmul.mubr.f32.vlgmr.msra.gmra.mrb[10].mxu1 %v24600_v55  ;;  %23441 = vmatprep.subr.bf16.mxu0 %v23440_v36 }
 0x389   : > { %23535 = vmatpush3.bf16.msra.mxu1 %v23436_v30  ;;  %21902 = vmatprep.mubr.f32.mxu1 %v24553_v50 }
 0x38a   : > { %23537 = vmatprep.subr.bf16.mxu1 %v23440_v36 }
 0x38b   : > { %23443 = vmatpush3.bf16.msra.mxu0 %v23440_v36 }
 0x38c   : > { %23445 = vmatprep.subr.bf16.mxu0 %v26259_v13 }
 0x38d   : > { %23539 = vmatpush3.bf16.msra.mxu1 %v23440_v36 }
 0x38e   : > { %21771 = vmatmul.mubr.f32.vlgmr.msra.gmra.mrb[10].mxu0 %v24393_v32  ;;  %23541 = vmatprep.subr.bf16.mxu1 %v26259_v13 }
 0x38f   : > { %23447 = vmatpush3.bf16.msra.mxu0 %v26259_v13  ;;  %21781 = vmatprep.mubr.f32.mxu0 %v24375_v24 }
 0x390   : > { %21903 = vmatmul.mubr.f32.vlgmr.msra.gmra.mrb[10].mxu1 %v24576_v43  ;;  %23449 = vmatprep.subr.bf16.mxu0 %v26275_v10 }
 0x391   : > { %23543 = vmatpush3.bf16.msra.mxu1 %v26259_v13  ;;  %21913 = vmatprep.mubr.f32.mxu1 %v24553_v50 }
 0x392   : > { %23545 = vmatprep.subr.bf16.mxu1 %v26275_v10 }
 0x393   : > { %23451 = vmatpush3.bf16.msra.mxu0 %v26275_v10 }
 0x395   : > { %23547 = vmatpush3.bf16.msra.mxu1 %v26275_v10 }
 0x396   : > { %21782 = vmatmul.mubr.f32.vlgmr.msra.gmra.mrb[10].mxu0 %v24393_v32 }
 0x398   : > { %21914 = vmatmul.mubr.f32.vlgmr.msra.gmra.mrb[10].mxu1 %v24576_v43 }
 0x3d9   : > { %v21387_v24 = vpop.f32.mrb[8].mxu0 }
 0x3da   : > { %v14018_v40 = vpop.f32.mrb[9].mxu0 }
 0x40b   : > { %v21585_v48 = vpop.f32.mrb[8].mxu1 }
 0x40c   : > { %v15622_v39 = vmax.f32 %v21387_v24, %v21585_v48  ;;  %v15609_v47 = vpop.f32.mrb[9].mxu1 }
 0x40d   : > { %v15621_v51 = vmax.f32 %v14018_v40, %v15609_v47 }
 0x469   : > { %v21783_v50 = vpop.f32.mrb[10].mxu0 }
 0x46a   : > { %v17215_v55 = vmax.f32 %v15622_v39, %v21783_v50  ;;  %v17202_v23 = vpop.f32.mrb[11].mxu0 }
 0x46b   : > { %v21915_v32 = vpop.f32.mrb[10].mxu1  ;;  %v17214_v43 = vmax.f32 %v15621_v51, %v17202_v23 }
 0x46c   : > { %v18273_v42 = vmax.f32 %v17215_v55, %v21915_v32  ;;  %v18262_v33 = vpop.f32.mrb[11].mxu1 }
 0x46d   : > { %v18272_v57 = vmax.f32 %v17214_v43, %v18262_v33 }
 0x46e   : > { %18441 = vst [vmem:[%s26312_s19 + $0x18] sm:$0xff] %v18273_v42 }
 0x46f   : > { %18440 = vst [vmem:[%s26312_s19 + $0x10] sm:$0xff] %v18272_v57 }
 0x470   : > { %24083 = shalt.err (!%p24080_p5)
}
 0x471   : > { %s24084_s4 = scalar_lea.hbm %s26360_s3, 512  ;;  %s24088_s24 = scalar_lea.hbm %s26413_s2, 1024 }
 0x472   : > { %p24085_p9 = scmp.ne.s32.totalorder %s26360_s3, %s24084_s4  ;;  %p24089_p3 = scmp.lt.u32.totalorder %s26360_s3, %s26413_s2 }
 0x473   : > { %p24090_p7 = scmp.lt.u32.totalorder %s24088_s24, %s24084_s4  ;;  %p24092_p4 = scmp.lt.u32.totalorder %s24084_s4, %s26360_s3 }
 0x474   : > { %p24086_p1 = pnand %p24085_p9, %p24275_p10 }
 0x475   : > { %p24091_p11 = por %p24090_p7, %p24089_p3 }
 0x476   : > { %p24087_p2 = pneg %p24086_p1 }
 0x477   : > { %p24093_p6 = por %p24092_p4, %p24091_p11 }
 0x479   : > { %p24094_p8 = pnand %p24093_p6, %p24087_p2 }
 0x47b   : > { %24097 = shalt.err (!%p24094_p8)
}
 0x47c   : > { %s24163_s17 = smov 128   ;;  %s24164_s19 = smov 8  }
 0x47d   : > { %23941 = dma.vmem_to_hbm [thread:$0]  (%p24275_p10), %s26355_s21, 512, %s26360_s3, %s18278_s12, %s24163_s17, %s24163_s17, %s24164_s19  }
 0x47e PF: > { %s18307_s6 = sand.u32 1, %s24136_s9   ;;  %p26430_p12 = scmp.ne.s32.totalorder %s26421_s20, 0 }
 0x47f   : > { %p26431_p13 = scmp.ge.s32.totalorder %s24156_s14, 2  ;;  %s18308_s7 = scalar_lea.sflag [#allocation4], %s18307_s6 }
 0x481   : > { %p23952_p0 = pnand %p26431_p13, %p26430_p12 }
 0x483   : > { %24131 = dma.done.wait (!%p23952_p0), %s18308_s7, 512  }
 0x484   : > { %24133 = vsyncadd (!%p23952_p0), %s18308_s7, 4294966784  ;;  %s19_s14 = sadd.s32 1, %s24156_s14   ;;  %s26432_s9 = smov %s24140_s10 }
 0x485   : > { %p16_p5 = scmp.ge.s32.totalorder %s19_s14, 4   ;;  %s26433_s10 = smov %s24144_s11 }
 0x486   : > { %s26434_s11 = smov %s24284_s28  ;;  %s26435_s12 = smov %s24152_s13 }
 0x487   : > { %s26436_s13 = smov %s26438_s25  ;;  %18 = sbr.rel (!%p16_p5) target bundleno = 7 (0x7), region = 91 }
 0x48e   :  { %18313 = vsyncpa [#allocation3], 1 }
 0x48f   :  { %18315 = vsyncpa [#allocation3 + $0x1], 1 }
 0x490   :  { %18316 = vsyncpa [#allocation6], 1 }
 0x491   :  { %18317 = vsyncpa [#allocation4], 1 }
 0x492   :  { %18319 = vsyncpa [#allocation4 + $0x1], 1 }

</bundles_post_ra>
